<compile_context>
chip_gen: v7x
topology: tpu7x:2x2x1
jax: 0.10.0
libtpu: 0.0.40
codegen_flags: <defaults>
</compile_context>

<pallas_src>
import functools

import jax
import jax.numpy as jnp
from jax import lax
from jax.experimental import pallas as pl
from jax.experimental.pallas import tpu as pltpu


_LN_EPS = 1e-5          # torch nn.LayerNorm default
_NEG_INF = -1e30


def _layer_norm(t, gamma, beta):
    mu = jnp.mean(t, axis=-1, keepdims=True)
    d = t - mu
    var = jnp.mean(d * d, axis=-1, keepdims=True)
    return d * lax.rsqrt(var + _LN_EPS) * gamma + beta


def _recip(x):
    # EUP reciprocal + one Newton step -> ~f32 accuracy, no VPU divide.
    inv = pl.reciprocal(x, approx=True)
    return inv * (2.0 - x * inv)


def _gelu_erf(x):
    # Exact-erf GELU (torch nn.GELU() default). Mosaic has no erf primitive, so
    # erf uses Abramowitz–Stegun 7.1.26 (|abs err| <= 1.5e-7): only exp (EUP),
    # the EUP reciprocal and VPU mul/add/select.
    z = x * 0.7071067811865476
    az = jnp.abs(z)
    t = _recip(1.0 + 0.3275911 * az)
    poly = ((((1.061405429 * t - 1.453152027) * t + 1.421413741) * t
             - 0.284496736) * t + 0.254829592) * t
    erf_abs = 1.0 - poly * jnp.exp(-az * az)
    erf = jnp.where(z < 0.0, -erf_abs, erf_abs)
    return 0.5 * x * (1.0 + erf)


def transformer_kernel(x_ref, w_fci_ref, b_fci_ref, cls_ref,
                       ln1_g_ref, ln1_b_ref, w_qkv_ref, w_ao_ref, b_ao_ref,
                       ln2_g_ref, ln2_b_ref, w_ff1_ref, b_ff1_ref,
                       w_ff2_ref, b_ff2_ref, w_head_ref, b_head_ref,
                       out_ref, *, heads, n_tok):
    f32 = jnp.float32
    cdt = w_qkv_ref.dtype                     # matmul-operand dtype (f32 / bf16)
    depth, hidden, three_inner = w_qkv_ref.shape
    inner = three_inner // 3
    dh = inner // heads
    _, bt, n_pad, in_dim = x_ref.shape
    m = bt * n_pad                            # all rows of this batch block
    out_dim = w_head_ref.shape[-1]
    out_pack = out_ref.shape[-1]

    # ---- fci input projection over the whole (Bt*n_pad, in_dim) row block ----
    x2d = x_ref[0].reshape(m, in_dim)
    h = jnp.dot(x2d.astype(cdt), w_fci_ref[...],
                preferred_element_type=f32) + b_fci_ref[...]
    # row b*n_pad of every sample is a zero placeholder -> replace with the CLS
    # token (avoids an in-kernel concatenate).
    row_ids = lax.broadcasted_iota(jnp.int32, (m, hidden), 0)
    h = jnp.where((row_ids % n_pad) == 0,
                  jnp.broadcast_to(cls_ref[...], (m, hidden)), h)

    # keys at padded rows (>= n_tok) never receive attention weight (hoisted)
    key_ok = lax.broadcasted_iota(jnp.int32, (1, 1, n_pad), 2) < n_tok

    # depth == 2 here, so a static unroll is fine; switch to lax.fori_loop or a
    # depth grid axis at larger depth to bound code size / vreg pressure.
    for l in range(depth):
        # --- Residual(PreNorm(Attention)) ---
        xn = _layer_norm(h, ln1_g_ref[l], ln1_b_ref[l])
        # ONE lane-dense (m, hidden) @ (hidden, 3*inner) matmul produces Q, K, V
        # for every head (attention scale already folded into the Q columns).
        qkv = jnp.dot(xn.astype(cdt), w_qkv_ref[l], preferred_element_type=f32)

        def heads_of(base):
            # static lane slices -> (heads*bt, n_pad, dh); the sublane reshape
            # is tile-aligned because n_pad % 8 == 0 (small XLU-side relayout).
            parts = [qkv[:, base + hh * dh: base + (hh + 1) * dh]
                     for hh in range(heads)]
            return jnp.stack(parts).reshape(heads * bt, n_pad, dh).astype(cdt)

        q = heads_of(0)
        k = heads_of(inner)
        v = heads_of(2 * inner)

        s = jnp.einsum('gnd,gmd->gnm', q, k, preferred_element_type=f32)
        s = jnp.where(key_ok, s, _NEG_INF)                 # mask padded keys
        s_max = jnp.max(s, axis=-1, keepdims=True)
        e = jnp.exp(s - s_max)
        p = e * _recip(jnp.sum(e, axis=-1, keepdims=True))
        o = jnp.einsum('gnm,gmd->gnd', p.astype(cdt), v,
                       preferred_element_type=f32)         # (heads*bt, n_pad, dh)

        # back to (m, inner) and ONE full-K output-projection matmul
        o3 = o.reshape(heads, m, dh)
        o2d = jnp.concatenate([o3[hh] for hh in range(heads)], axis=-1)
        att = jnp.dot(o2d.astype(cdt), w_ao_ref[l], preferred_element_type=f32)
        h = h + att + b_ao_ref[l]
        # TODO(synk): nn.Dropout is identity in eval mode; no mask applied.

        # --- Residual(PreNorm(FeedForward)) ---
        yn = _layer_norm(h, ln2_g_ref[l], ln2_b_ref[l])
        ff = jnp.dot(yn.astype(cdt), w_ff1_ref[l],
                     preferred_element_type=f32) + b_ff1_ref[l]
        ff = _gelu_erf(ff)
        ff = jnp.dot(ff.astype(cdt), w_ff2_ref[l],
                     preferred_element_type=f32) + b_ff2_ref[l]
        h = h + ff

    # ---- classification head on the CLS rows; pack (pred | tok) lane-dense ----
    tok = h.reshape(bt, n_pad, hidden)[:, 0, :]                     # (Bt, hidden)
    pred = jnp.dot(tok.astype(cdt), w_head_ref[...],
                   preferred_element_type=f32) + b_head_ref[...]    # (Bt, out)
    pieces = [pred, tok]
    pad_cols = out_pack - out_dim - hidden
    if pad_cols > 0:
        pieces.append(jnp.zeros((bt, pad_cols), f32))
    out_ref[0] = jnp.concatenate(pieces, axis=-1).astype(out_ref.dtype)


def transformer_forward(x, x_len, params, *, heads, dim_head, depth,
                        batch_block=None, use_bf16_matmuls=False):
    """Pallas forward of the Transformer module.

    x: (b, n, input_dim) float32.  Returns (predicted (b, out), tokenclass (b, hidden)).
    """
    del x_len  # unused by the torch module's forward as well
    b, n, in_dim = x.shape
    hidden = params['w_fci'].shape[1]
    inner = heads * dim_head
    out_dim = params['w_head'].shape[-1]
    n_tok = n + 1                       # CLS + sequence
    n_pad = ((n_tok + 7) // 8) * 8      # pad rows to a sublane multiple
    scale = float(hidden) ** (-0.5)     # module uses dim**-0.5 with dim == hidden

    if batch_block is None:
        # whole batch per step for tiny b; otherwise keep >=2 grid steps so both
        # v7x TensorCores get work under dimension_semantics=("parallel",)
        batch_block = b if b <= 2 else max(
            d for d in range(1, b // 2 + 1) if b % d == 0)
    if b % batch_block != 0:
        raise ValueError("batch must be divisible by batch_block")
    num_blocks = b // batch_block

    out_pack = out_dim + hidden
    out_pack += (-out_pack) % 128       # lane-dense packed output row

    # Row 0 (CLS placeholder) and rows n_tok..n_pad-1 are zero; the kernel
    # overwrites the CLS row and masks the padded rows as attention keys.
    x_pad = jnp.pad(x, ((0, 0), (1, n_pad - n_tok), (0, 0)))
    x_blk = x_pad.reshape(num_blocks, batch_block, n_pad, in_dim)

    # bf16 matmul operands are a knob for real sizes (accumulation, LayerNorm,
    # softmax and residuals always stay f32); f32 here for exact torch parity.
    cdt = jnp.bfloat16 if use_bf16_matmuls else jnp.float32

    # Attention scale folded into the Q columns of the fused QKV weight.
    w_qkv = params['w_qkv'].at[:, :, :inner].multiply(scale).astype(cdt)

    def row(p):  # (..., C) -> (..., 1, C): >=2-D biases / LN params for the kernel
        return p.reshape(p.shape[:-1] + (1, p.shape[-1]))

    args = (
        x_blk,
        params['w_fci'].astype(cdt), row(params['b_fci']),
        params['cls'].reshape(1, hidden),
        row(params['ln1_g']), row(params['ln1_b']),
        w_qkv, params['w_att_out'].astype(cdt), row(params['b_att_out']),
        row(params['ln2_g']), row(params['ln2_b']),
        params['w_ff1'].astype(cdt), row(params['b_ff1']),
        params['w_ff2'].astype(cdt), row(params['b_ff2']),
        params['w_head'].astype(cdt), params['b_head'].reshape(1, out_dim),
    )

    def full(a):  # full-extent block, VMEM-resident across all grid steps
        nd = a.ndim
        return pl.BlockSpec(a.shape, lambda i, _nd=nd: (0,) * _nd)

    in_specs = ([pl.BlockSpec((1, batch_block, n_pad, in_dim),
                              lambda i: (i, 0, 0, 0))]
                + [full(a) for a in args[1:]])
    out_specs = pl.BlockSpec((1, batch_block, out_pack), lambda i: (i, 0, 0))
    out_shape = jax.ShapeDtypeStruct((num_blocks, batch_block, out_pack),
                                     jnp.float32)

    kernel = functools.partial(transformer_kernel, heads=heads, n_tok=n_tok)
    packed = pl.pallas_call(
        kernel,
        out_shape=out_shape,
        grid=(num_blocks,),
        in_specs=in_specs,
        out_specs=out_specs,
        compiler_params=pltpu.CompilerParams(
            dimension_semantics=("parallel",),
            vmem_limit_bytes=32 * 1024 * 1024),
    )(*args)

    packed = packed.reshape(b, out_pack)
    pred = packed[:, :out_dim]
    tok = packed[:, out_dim:out_dim + hidden]
    return pred, tok


def transformer_reference(x, x_len, params, *, heads, dim_head, depth):
    """Pure-JAX reference matching the PyTorch Transformer forward (eval mode)."""
    del x_len
    b, n, _ = x.shape
    hidden = params['w_fci'].shape[1]
    inner = heads * dim_head
    scale = float(hidden) ** (-0.5)

    h = x @ params['w_fci'] + params['b_fci']
    cls = jnp.broadcast_to(params['cls'].reshape(1, 1, hidden), (b, 1, hidden))
    h = jnp.concatenate([cls, h], axis=1)
    n_tok = n + 1

    for l in range(depth):
        xn = _layer_norm(h, params['ln1_g'][l], params['ln1_b'][l])
        qkv = xn @ params['w_qkv'][l]
        q, k, v = jnp.split(qkv, 3, axis=-1)

        def to_heads(t):  # 'b n (h d) -> b h n d'
            return t.reshape(b, n_tok, heads, dim_head).transpose(0, 2, 1, 3)

        q, k, v = map(to_heads, (q, k, v))
        dots = jnp.einsum('bhid,bhjd->bhij', q, k) * scale
        attn = jax.nn.softmax(dots, axis=-1)
        o = jnp.einsum('bhij,bhjd->bhid', attn, v)
        o = o.transpose(0, 2, 1, 3).reshape(b, n_tok, inner)
        h = h + o @ params['w_att_out'][l] + params['b_att_out'][l]

        yn = _layer_norm(h, params['ln2_g'][l], params['ln2_b'][l])
        ff = jax.nn.gelu(yn @ params['w_ff1'][l] + params['b_ff1'][l],
                         approximate=False)   # torch nn.GELU() exact erf form
        h = h + ff @ params['w_ff2'][l] + params['b_ff2'][l]

    tok = h[:, 0]
    pred = tok @ params['w_head'] + params['b_head']
    return pred, tok


if __name__ == "__main__":
    # Small shapes consistent with the module's constructor arguments.
    batch, seq = 2, 8
    input_dim, hidden_dim, output_dim = 16, 32, 8
    heads, dim_head, depth, mlp_factor = 4, 32, 2, 2
    inner = heads * dim_head
    mlp_dim = hidden_dim * mlp_factor

    key = jax.random.PRNGKey(0)
    ks = jax.random.split(key, 20)
    f32 = jnp.float32

    def rnd(k, shape, s):
        return jax.random.normal(k, shape, dtype=f32) * s

    params = dict(
        w_fci=rnd(ks[0], (input_dim, hidden_dim), input_dim ** -0.5),
        b_fci=rnd(ks[1], (hidden_dim,), 0.02),
        cls=rnd(ks[2], (1, 1, hidden_dim), 1.0),
        ln1_g=1.0 + rnd(ks[3], (depth, hidden_dim), 0.1),
        ln1_b=rnd(ks[4], (depth, hidden_dim), 0.1),
        w_qkv=rnd(ks[5], (depth, hidden_dim, 3 * inner), hidden_dim ** -0.5),
        w_att_out=rnd(ks[6], (depth, inner, hidden_dim), inner ** -0.5),
        b_att_out=rnd(ks[7], (depth, hidden_dim), 0.02),
        ln2_g=1.0 + rnd(ks[8], (depth, hidden_dim), 0.1),
        ln2_b=rnd(ks[9], (depth, hidden_dim), 0.1),
        w_ff1=rnd(ks[10], (depth, hidden_dim, mlp_dim), hidden_dim ** -0.5),
        b_ff1=rnd(ks[11], (depth, mlp_dim), 0.02),
        w_ff2=rnd(ks[12], (depth, mlp_dim, hidden_dim), mlp_dim ** -0.5),
        b_ff2=rnd(ks[13], (depth, hidden_dim), 0.02),
        w_head=rnd(ks[14], (hidden_dim, output_dim), hidden_dim ** -0.5),
        b_head=rnd(ks[15], (output_dim,), 0.02),
    )
    x = rnd(ks[16], (batch, seq, input_dim), 1.0)
    x_len = jnp.full((batch,), seq, dtype=jnp.int32)  # unused by forward, as in torch

    pred, tok = transformer_forward(
        x, x_len, params, heads=heads, dim_head=dim_head, depth=depth)
    pred, tok = jax.block_until_ready((pred, tok))

    # Pure-JAX reference at full f32 matmul precision (the kernel accumulates in f32).
    with jax.default_matmul_precision("float32"):
        ref_pred, ref_tok = transformer_reference(
            x, x_len, params, heads=heads, dim_head=dim_head, depth=depth)
        ref_pred, ref_tok = jax.block_until_ready((ref_pred, ref_tok))

    assert pred.shape == (batch, output_dim)
    assert tok.shape == (batch, hidden_dim)
    assert jnp.allclose(tok, ref_tok, atol=2e-4, rtol=2e-4), "tokenclass mismatch vs reference"
    assert jnp.allclose(pred, ref_pred, atol=2e-4, rtol=2e-4), "predicted mismatch vs reference"

    print("KERNEL_OK")
</pallas_src>

<mosaic_0001>
module attributes {stable_mosaic.version = 11 : i64} {
  func.func @transformer_kernel(%arg0: i32, %arg1: memref<1x2x16x16xf32, #tpu.memory_space<vmem>>, %arg2: memref<16x32xf32, #tpu.memory_space<vmem>>, %arg3: memref<1x32xf32, #tpu.memory_space<vmem>>, %arg4: memref<1x32xf32, #tpu.memory_space<vmem>>, %arg5: memref<2x1x32xf32, #tpu.memory_space<vmem>>, %arg6: memref<2x1x32xf32, #tpu.memory_space<vmem>>, %arg7: memref<2x32x384xf32, #tpu.memory_space<vmem>>, %arg8: memref<2x128x32xf32, #tpu.memory_space<vmem>>, %arg9: memref<2x1x32xf32, #tpu.memory_space<vmem>>, %arg10: memref<2x1x32xf32, #tpu.memory_space<vmem>>, %arg11: memref<2x1x32xf32, #tpu.memory_space<vmem>>, %arg12: memref<2x32x64xf32, #tpu.memory_space<vmem>>, %arg13: memref<2x1x64xf32, #tpu.memory_space<vmem>>, %arg14: memref<2x64x32xf32, #tpu.memory_space<vmem>>, %arg15: memref<2x1x32xf32, #tpu.memory_space<vmem>>, %arg16: memref<32x8xf32, #tpu.memory_space<vmem>>, %arg17: memref<1x8xf32, #tpu.memory_space<vmem>>, %arg18: memref<1x2x128xf32, #tpu.memory_space<vmem>>) attributes {dimension_semantics = [#tpu.dimension_semantics<parallel>], iteration_bounds = array<i64: 1>, scalar_prefetch = 0 : i64, scratch_operands = 0 : i64, tpu.core_type = #tpu.core_type<tc>, window_params = [{transform_indices = @transform_0, window_bounds = array<i64: 1, 2, 16, 16>}, {pipeline_mode = #tpu.pipeline_mode<synchronous>, transform_indices = @transform_1, window_bounds = array<i64: 16, 32>}, {pipeline_mode = #tpu.pipeline_mode<synchronous>, transform_indices = @transform_2, window_bounds = array<i64: 1, 32>}, {pipeline_mode = #tpu.pipeline_mode<synchronous>, transform_indices = @transform_3, window_bounds = array<i64: 1, 32>}, {pipeline_mode = #tpu.pipeline_mode<synchronous>, transform_indices = @transform_4, window_bounds = array<i64: 2, 1, 32>}, {pipeline_mode = #tpu.pipeline_mode<synchronous>, transform_indices = @transform_5, window_bounds = array<i64: 2, 1, 32>}, {pipeline_mode = #tpu.pipeline_mode<synchronous>, transform_indices = @transform_6, window_bounds = array<i64: 2, 32, 384>}, {pipeline_mode = #tpu.pipeline_mode<synchronous>, transform_indices = @transform_7, window_bounds = array<i64: 2, 128, 32>}, {pipeline_mode = #tpu.pipeline_mode<synchronous>, transform_indices = @transform_8, window_bounds = array<i64: 2, 1, 32>}, {pipeline_mode = #tpu.pipeline_mode<synchronous>, transform_indices = @transform_9, window_bounds = array<i64: 2, 1, 32>}, {pipeline_mode = #tpu.pipeline_mode<synchronous>, transform_indices = @transform_10, window_bounds = array<i64: 2, 1, 32>}, {pipeline_mode = #tpu.pipeline_mode<synchronous>, transform_indices = @transform_11, window_bounds = array<i64: 2, 32, 64>}, {pipeline_mode = #tpu.pipeline_mode<synchronous>, transform_indices = @transform_12, window_bounds = array<i64: 2, 1, 64>}, {pipeline_mode = #tpu.pipeline_mode<synchronous>, transform_indices = @transform_13, window_bounds = array<i64: 2, 64, 32>}, {pipeline_mode = #tpu.pipeline_mode<synchronous>, transform_indices = @transform_14, window_bounds = array<i64: 2, 1, 32>}, {pipeline_mode = #tpu.pipeline_mode<synchronous>, transform_indices = @transform_15, window_bounds = array<i64: 32, 8>}, {pipeline_mode = #tpu.pipeline_mode<synchronous>, transform_indices = @transform_16, window_bounds = array<i64: 1, 8>}, {transform_indices = @transform_17, window_bounds = array<i64: 1, 2, 128>}]} {
    %c0 = arith.constant 0 : index
    %c0_0 = arith.constant 0 : index
    %c0_1 = arith.constant 0 : index
    %c0_2 = arith.constant 0 : index
    %0 = vector.load %arg1[%c0, %c0_0, %c0_1, %c0_2] : memref<1x2x16x16xf32, #tpu.memory_space<vmem>>, vector<1x2x16x16xf32>
    %1 = vector.shape_cast %0 : vector<1x2x16x16xf32> to vector<2x16x16xf32>
    %2 = vector.shape_cast %1 : vector<2x16x16xf32> to vector<32x16xf32>
    %c0_3 = arith.constant 0 : index
    %c0_4 = arith.constant 0 : index
    %3 = vector.load %arg2[%c0_3, %c0_4] : memref<16x32xf32, #tpu.memory_space<vmem>>, vector<16x32xf32>
    %cst = arith.constant dense<0.000000e+00> : vector<32x32xf32>
    %4 = tpu.matmul %2, %3, %cst {dimension_numbers = #tpu.dot_dimension_numbers<[1], [0], [0], [1], [0, 0, 1, 1], [], []>} : vector<32x16xf32>, vector<16x32xf32>, vector<32x32xf32> -> vector<32x32xf32>
    %c0_5 = arith.constant 0 : index
    %c0_6 = arith.constant 0 : index
    %5 = vector.load %arg3[%c0_5, %c0_6] : memref<1x32xf32, #tpu.memory_space<vmem>>, vector<1x32xf32>
    %6 = vector.broadcast %5 : vector<1x32xf32> to vector<32x32xf32>
    %7 = arith.addf %4, %6 : vector<32x32xf32>
    %8 = tpu.iota {dimensions = array<i32: 0>} : vector<32x32xi32>
    %c16_i32 = arith.constant 16 : i32
    %c0_i32 = arith.constant 0 : i32
    %9 = arith.cmpi eq, %c16_i32, %c0_i32 : i32
    %c1_i32 = arith.constant 1 : i32
    %10 = arith.select %9, %c1_i32, %c16_i32 : i32
    %11 = vector.broadcast %10 : i32 to vector<32x32xi32>
    %12 = arith.remsi %8, %11 : vector<32x32xi32>
    %c0_i32_7 = arith.constant 0 : i32
    %13 = vector.broadcast %c0_i32_7 : i32 to vector<32x32xi32>
    %14 = arith.cmpi ne, %12, %13 : vector<32x32xi32>
    %c0_i32_8 = arith.constant 0 : i32
    %15 = vector.broadcast %c0_i32_8 : i32 to vector<32x32xi32>
    %16 = arith.cmpi slt, %12, %15 : vector<32x32xi32>
    %c0_i32_9 = arith.constant 0 : i32
    %17 = arith.cmpi slt, %10, %c0_i32_9 : i32
    %18 = vector.broadcast %17 : i1 to vector<32x32xi1>
    %19 = vector.broadcast %18 : vector<32x32xi1> to vector<32x32xi1>
    %20 = arith.xori %16, %19 : vector<32x32xi1>
    %21 = arith.andi %20, %14 : vector<32x32xi1>
    %22 = vector.broadcast %10 : i32 to vector<32x32xi32>
    %23 = arith.addi %12, %22 : vector<32x32xi32>
    %24 = arith.select %21, %23, %12 : vector<32x32xi1>, vector<32x32xi32>
    %c0_i32_10 = arith.constant 0 : i32
    %25 = vector.broadcast %c0_i32_10 : i32 to vector<32x32xi32>
    %26 = arith.cmpi eq, %24, %25 : vector<32x32xi32>
    %c0_11 = arith.constant 0 : index
    %c0_12 = arith.constant 0 : index
    %27 = vector.load %arg4[%c0_11, %c0_12] : memref<1x32xf32, #tpu.memory_space<vmem>>, vector<1x32xf32>
    %28 = vector.shape_cast %27 : vector<1x32xf32> to vector<1x32xf32>
    %29 = vector.broadcast %28 : vector<1x32xf32> to vector<32x32xf32>
    %30 = arith.select %26, %29, %7 : vector<32x32xi1>, vector<32x32xf32>
    %31 = tpu.iota {dimensions = array<i32: 2>} : vector<1x1x16xi32>
    %c9_i32 = arith.constant 9 : i32
    %32 = vector.broadcast %c9_i32 : i32 to vector<1x1x16xi32>
    %33 = arith.cmpi slt, %31, %32 : vector<1x1x16xi32>
    %c0_13 = arith.constant 0 : index
    %c0_14 = arith.constant 0 : index
    %c0_15 = arith.constant 0 : index
    %34 = vector.load %arg5[%c0_13, %c0_14, %c0_15] : memref<2x1x32xf32, #tpu.memory_space<vmem>>, vector<1x1x32xf32>
    %35 = vector.shape_cast %34 : vector<1x1x32xf32> to vector<1x32xf32>
    %c0_16 = arith.constant 0 : index
    %c0_17 = arith.constant 0 : index
    %c0_18 = arith.constant 0 : index
    %36 = vector.load %arg6[%c0_16, %c0_17, %c0_18] : memref<2x1x32xf32, #tpu.memory_space<vmem>>, vector<1x1x32xf32>
    %37 = vector.shape_cast %36 : vector<1x1x32xf32> to vector<1x32xf32>
    %cst_19 = arith.constant dense<0.000000e+00> : vector<32xf32>
    %38 = vector.multi_reduction <add>, %30, %cst_19 [1] : vector<32x32xf32> to vector<32xf32>
    %39 = vector.shape_cast %38 : vector<32xf32> to vector<32x1xf32>
    %cst_20 = arith.constant 3.200000e+01 : f32
    %40 = vector.broadcast %cst_20 : f32 to vector<32x1xf32>
    %41 = arith.divf %39, %40 : vector<32x1xf32>
    %42 = vector.broadcast %41 : vector<32x1xf32> to vector<32x32xf32>
    %43 = arith.subf %30, %42 : vector<32x32xf32>
    %44 = arith.mulf %43, %43 : vector<32x32xf32>
    %cst_21 = arith.constant dense<0.000000e+00> : vector<32xf32>
    %45 = vector.multi_reduction <add>, %44, %cst_21 [1] : vector<32x32xf32> to vector<32xf32>
    %46 = vector.shape_cast %45 : vector<32xf32> to vector<32x1xf32>
    %cst_22 = arith.constant 3.200000e+01 : f32
    %47 = vector.broadcast %cst_22 : f32 to vector<32x1xf32>
    %48 = arith.divf %46, %47 : vector<32x1xf32>
    %cst_23 = arith.constant 9.99999974E-6 : f32
    %49 = vector.broadcast %cst_23 : f32 to vector<32x1xf32>
    %50 = arith.addf %48, %49 : vector<32x1xf32>
    %51 = math.rsqrt %50 : vector<32x1xf32>
    %52 = vector.broadcast %51 : vector<32x1xf32> to vector<32x32xf32>
    %53 = arith.mulf %43, %52 : vector<32x32xf32>
    %54 = vector.broadcast %35 : vector<1x32xf32> to vector<32x32xf32>
    %55 = arith.mulf %53, %54 : vector<32x32xf32>
    %56 = vector.broadcast %37 : vector<1x32xf32> to vector<32x32xf32>
    %57 = arith.addf %55, %56 : vector<32x32xf32>
    %c0_24 = arith.constant 0 : index
    %c0_25 = arith.constant 0 : index
    %c0_26 = arith.constant 0 : index
    %58 = vector.load %arg7[%c0_24, %c0_25, %c0_26] : memref<2x32x384xf32, #tpu.memory_space<vmem>>, vector<1x32x384xf32>
    %59 = vector.shape_cast %58 : vector<1x32x384xf32> to vector<32x384xf32>
    %cst_27 = arith.constant dense<0.000000e+00> : vector<32x384xf32>
    %60 = tpu.matmul %57, %59, %cst_27 {dimension_numbers = #tpu.dot_dimension_numbers<[1], [0], [0], [1], [0, 0, 1, 1], [], []>} : vector<32x32xf32>, vector<32x384xf32>, vector<32x384xf32> -> vector<32x384xf32>
    %61 = vector.extract_strided_slice %60 {offsets = [0, 0], sizes = [32, 32], strides = [1, 1]} : vector<32x384xf32> to vector<32x32xf32>
    %62 = vector.extract_strided_slice %60 {offsets = [0, 32], sizes = [32, 32], strides = [1, 1]} : vector<32x384xf32> to vector<32x32xf32>
    %63 = vector.extract_strided_slice %60 {offsets = [0, 64], sizes = [32, 32], strides = [1, 1]} : vector<32x384xf32> to vector<32x32xf32>
    %64 = vector.extract_strided_slice %60 {offsets = [0, 96], sizes = [32, 32], strides = [1, 1]} : vector<32x384xf32> to vector<32x32xf32>
    %65 = vector.shape_cast %61 : vector<32x32xf32> to vector<1x32x32xf32>
    %66 = vector.shape_cast %62 : vector<32x32xf32> to vector<1x32x32xf32>
    %67 = vector.shape_cast %63 : vector<32x32xf32> to vector<1x32x32xf32>
    %68 = vector.shape_cast %64 : vector<32x32xf32> to vector<1x32x32xf32>
    %69 = tpu.concatenate %65, %66, %67, %68 in 0 : vector<1x32x32xf32>, vector<1x32x32xf32>, vector<1x32x32xf32>, vector<1x32x32xf32> -> vector<4x32x32xf32>
    %70 = vector.shape_cast %69 : vector<4x32x32xf32> to vector<8x16x32xf32>
    %71 = vector.extract_strided_slice %60 {offsets = [0, 128], sizes = [32, 32], strides = [1, 1]} : vector<32x384xf32> to vector<32x32xf32>
    %72 = vector.extract_strided_slice %60 {offsets = [0, 160], sizes = [32, 32], strides = [1, 1]} : vector<32x384xf32> to vector<32x32xf32>
    %73 = vector.extract_strided_slice %60 {offsets = [0, 192], sizes = [32, 32], strides = [1, 1]} : vector<32x384xf32> to vector<32x32xf32>
    %74 = vector.extract_strided_slice %60 {offsets = [0, 224], sizes = [32, 32], strides = [1, 1]} : vector<32x384xf32> to vector<32x32xf32>
    %75 = vector.shape_cast %71 : vector<32x32xf32> to vector<1x32x32xf32>
    %76 = vector.shape_cast %72 : vector<32x32xf32> to vector<1x32x32xf32>
    %77 = vector.shape_cast %73 : vector<32x32xf32> to vector<1x32x32xf32>
    %78 = vector.shape_cast %74 : vector<32x32xf32> to vector<1x32x32xf32>
    %79 = tpu.concatenate %75, %76, %77, %78 in 0 : vector<1x32x32xf32>, vector<1x32x32xf32>, vector<1x32x32xf32>, vector<1x32x32xf32> -> vector<4x32x32xf32>
    %80 = vector.shape_cast %79 : vector<4x32x32xf32> to vector<8x16x32xf32>
    %81 = vector.extract_strided_slice %60 {offsets = [0, 256], sizes = [32, 32], strides = [1, 1]} : vector<32x384xf32> to vector<32x32xf32>
    %82 = vector.extract_strided_slice %60 {offsets = [0, 288], sizes = [32, 32], strides = [1, 1]} : vector<32x384xf32> to vector<32x32xf32>
    %83 = vector.extract_strided_slice %60 {offsets = [0, 320], sizes = [32, 32], strides = [1, 1]} : vector<32x384xf32> to vector<32x32xf32>
    %84 = vector.extract_strided_slice %60 {offsets = [0, 352], sizes = [32, 32], strides = [1, 1]} : vector<32x384xf32> to vector<32x32xf32>
    %85 = vector.shape_cast %81 : vector<32x32xf32> to vector<1x32x32xf32>
    %86 = vector.shape_cast %82 : vector<32x32xf32> to vector<1x32x32xf32>
    %87 = vector.shape_cast %83 : vector<32x32xf32> to vector<1x32x32xf32>
    %88 = vector.shape_cast %84 : vector<32x32xf32> to vector<1x32x32xf32>
    %89 = tpu.concatenate %85, %86, %87, %88 in 0 : vector<1x32x32xf32>, vector<1x32x32xf32>, vector<1x32x32xf32>, vector<1x32x32xf32> -> vector<4x32x32xf32>
    %90 = vector.shape_cast %89 : vector<4x32x32xf32> to vector<8x16x32xf32>
    "tpu.trace_start"() <{level = 10 : i32, message = "gnd,gmd->gnm"}> : () -> ()
    %cst_28 = arith.constant dense<0.000000e+00> : vector<8x16x16xf32>
    %91 = tpu.matmul %70, %80, %cst_28 {dimension_numbers = #tpu.dot_dimension_numbers<[2], [2], [1], [1], [0, 0, 0, 1, 1, 1], [0], [0]>} : vector<8x16x32xf32>, vector<8x16x32xf32>, vector<8x16x16xf32> -> vector<8x16x16xf32>
    %cst_29 = arith.constant -1.000000e+30 : f32
    "tpu.trace_stop"() : () -> ()
    %92 = vector.shape_cast %33 : vector<1x1x16xi1> to vector<1x1x16xi1>
    %93 = vector.broadcast %92 : vector<1x1x16xi1> to vector<8x16x16xi1>
    %94 = vector.broadcast %cst_29 : f32 to vector<8x16x16xf32>
    %95 = arith.select %93, %91, %94 : vector<8x16x16xi1>, vector<8x16x16xf32>
    %cst_30 = arith.constant dense<0xFF800000> : vector<8x16xf32>
    %96 = vector.multi_reduction <maximumf>, %95, %cst_30 [2] : vector<8x16x16xf32> to vector<8x16xf32>
    %97 = vector.shape_cast %96 : vector<8x16xf32> to vector<8x16x1xf32>
    %98 = vector.broadcast %97 : vector<8x16x1xf32> to vector<8x16x16xf32>
    %99 = arith.subf %95, %98 : vector<8x16x16xf32>
    %100 = math.exp %99 : vector<8x16x16xf32>
    %cst_31 = arith.constant dense<0.000000e+00> : vector<8x16xf32>
    %101 = vector.multi_reduction <add>, %100, %cst_31 [2] : vector<8x16x16xf32> to vector<8x16xf32>
    %102 = vector.shape_cast %101 : vector<8x16xf32> to vector<8x16x1xf32>
    %103 = tpu.reciprocal %102 {approx = true} : vector<8x16x1xf32> -> vector<8x16x1xf32>
    %104 = arith.mulf %102, %103 : vector<8x16x1xf32>
    %cst_32 = arith.constant 2.000000e+00 : f32
    %105 = vector.broadcast %cst_32 : f32 to vector<8x16x1xf32>
    %106 = arith.subf %105, %104 : vector<8x16x1xf32>
    %107 = arith.mulf %103, %106 : vector<8x16x1xf32>
    %108 = vector.broadcast %107 : vector<8x16x1xf32> to vector<8x16x16xf32>
    %109 = arith.mulf %100, %108 : vector<8x16x16xf32>
    "tpu.trace_start"() <{level = 10 : i32, message = "gnm,gmd->gnd"}> : () -> ()
    %cst_33 = arith.constant dense<0.000000e+00> : vector<8x16x32xf32>
    %110 = tpu.matmul %109, %90, %cst_33 {dimension_numbers = #tpu.dot_dimension_numbers<[2], [1], [1], [2], [0, 0, 0, 1, 1, 2], [0], [0]>} : vector<8x16x16xf32>, vector<8x16x32xf32>, vector<8x16x32xf32> -> vector<8x16x32xf32>
    "tpu.trace_stop"() : () -> ()
    %111 = vector.shape_cast %110 : vector<8x16x32xf32> to vector<4x32x32xf32>
    %112 = vector.extract_strided_slice %111 {offsets = [0, 0, 0], sizes = [1, 32, 32], strides = [1, 1, 1]} : vector<4x32x32xf32> to vector<1x32x32xf32>
    %113 = vector.shape_cast %112 : vector<1x32x32xf32> to vector<32x32xf32>
    %114 = vector.extract_strided_slice %111 {offsets = [1, 0, 0], sizes = [1, 32, 32], strides = [1, 1, 1]} : vector<4x32x32xf32> to vector<1x32x32xf32>
    %115 = vector.shape_cast %114 : vector<1x32x32xf32> to vector<32x32xf32>
    %116 = vector.extract_strided_slice %111 {offsets = [2, 0, 0], sizes = [1, 32, 32], strides = [1, 1, 1]} : vector<4x32x32xf32> to vector<1x32x32xf32>
    %117 = vector.shape_cast %116 : vector<1x32x32xf32> to vector<32x32xf32>
    %118 = vector.extract_strided_slice %111 {offsets = [3, 0, 0], sizes = [1, 32, 32], strides = [1, 1, 1]} : vector<4x32x32xf32> to vector<1x32x32xf32>
    %119 = vector.shape_cast %118 : vector<1x32x32xf32> to vector<32x32xf32>
    %120 = tpu.concatenate %113, %115, %117, %119 in 1 : vector<32x32xf32>, vector<32x32xf32>, vector<32x32xf32>, vector<32x32xf32> -> vector<32x128xf32>
    %c0_34 = arith.constant 0 : index
    %c0_35 = arith.constant 0 : index
    %c0_36 = arith.constant 0 : index
    %121 = vector.load %arg8[%c0_34, %c0_35, %c0_36] : memref<2x128x32xf32, #tpu.memory_space<vmem>>, vector<1x128x32xf32>
    %122 = vector.shape_cast %121 : vector<1x128x32xf32> to vector<128x32xf32>
    %cst_37 = arith.constant dense<0.000000e+00> : vector<32x32xf32>
    %123 = tpu.matmul %120, %122, %cst_37 {dimension_numbers = #tpu.dot_dimension_numbers<[1], [0], [0], [1], [0, 0, 1, 1], [], []>} : vector<32x128xf32>, vector<128x32xf32>, vector<32x32xf32> -> vector<32x32xf32>
    %124 = arith.addf %30, %123 : vector<32x32xf32>
    %c0_38 = arith.constant 0 : index
    %c0_39 = arith.constant 0 : index
    %c0_40 = arith.constant 0 : index
    %125 = vector.load %arg9[%c0_38, %c0_39, %c0_40] : memref<2x1x32xf32, #tpu.memory_space<vmem>>, vector<1x1x32xf32>
    %126 = vector.shape_cast %125 : vector<1x1x32xf32> to vector<1x32xf32>
    %127 = vector.broadcast %126 : vector<1x32xf32> to vector<32x32xf32>
    %128 = arith.addf %124, %127 : vector<32x32xf32>
    %c0_41 = arith.constant 0 : index
    %c0_42 = arith.constant 0 : index
    %c0_43 = arith.constant 0 : index
    %129 = vector.load %arg10[%c0_41, %c0_42, %c0_43] : memref<2x1x32xf32, #tpu.memory_space<vmem>>, vector<1x1x32xf32>
    %130 = vector.shape_cast %129 : vector<1x1x32xf32> to vector<1x32xf32>
    %c0_44 = arith.constant 0 : index
    %c0_45 = arith.constant 0 : index
    %c0_46 = arith.constant 0 : index
    %131 = vector.load %arg11[%c0_44, %c0_45, %c0_46] : memref<2x1x32xf32, #tpu.memory_space<vmem>>, vector<1x1x32xf32>
    %132 = vector.shape_cast %131 : vector<1x1x32xf32> to vector<1x32xf32>
    %cst_47 = arith.constant dense<0.000000e+00> : vector<32xf32>
    %133 = vector.multi_reduction <add>, %128, %cst_47 [1] : vector<32x32xf32> to vector<32xf32>
    %134 = vector.shape_cast %133 : vector<32xf32> to vector<32x1xf32>
    %cst_48 = arith.constant 3.200000e+01 : f32
    %135 = vector.broadcast %cst_48 : f32 to vector<32x1xf32>
    %136 = arith.divf %134, %135 : vector<32x1xf32>
    %137 = vector.broadcast %136 : vector<32x1xf32> to vector<32x32xf32>
    %138 = arith.subf %128, %137 : vector<32x32xf32>
    %139 = arith.mulf %138, %138 : vector<32x32xf32>
    %cst_49 = arith.constant dense<0.000000e+00> : vector<32xf32>
    %140 = vector.multi_reduction <add>, %139, %cst_49 [1] : vector<32x32xf32> to vector<32xf32>
    %141 = vector.shape_cast %140 : vector<32xf32> to vector<32x1xf32>
    %cst_50 = arith.constant 3.200000e+01 : f32
    %142 = vector.broadcast %cst_50 : f32 to vector<32x1xf32>
    %143 = arith.divf %141, %142 : vector<32x1xf32>
    %cst_51 = arith.constant 9.99999974E-6 : f32
    %144 = vector.broadcast %cst_51 : f32 to vector<32x1xf32>
    %145 = arith.addf %143, %144 : vector<32x1xf32>
    %146 = math.rsqrt %145 : vector<32x1xf32>
    %147 = vector.broadcast %146 : vector<32x1xf32> to vector<32x32xf32>
    %148 = arith.mulf %138, %147 : vector<32x32xf32>
    %149 = vector.broadcast %130 : vector<1x32xf32> to vector<32x32xf32>
    %150 = arith.mulf %148, %149 : vector<32x32xf32>
    %151 = vector.broadcast %132 : vector<1x32xf32> to vector<32x32xf32>
    %152 = arith.addf %150, %151 : vector<32x32xf32>
    %c0_52 = arith.constant 0 : index
    %c0_53 = arith.constant 0 : index
    %c0_54 = arith.constant 0 : index
    %153 = vector.load %arg12[%c0_52, %c0_53, %c0_54] : memref<2x32x64xf32, #tpu.memory_space<vmem>>, vector<1x32x64xf32>
    %154 = vector.shape_cast %153 : vector<1x32x64xf32> to vector<32x64xf32>
    %cst_55 = arith.constant dense<0.000000e+00> : vector<32x64xf32>
    %155 = tpu.matmul %152, %154, %cst_55 {dimension_numbers = #tpu.dot_dimension_numbers<[1], [0], [0], [1], [0, 0, 1, 1], [], []>} : vector<32x32xf32>, vector<32x64xf32>, vector<32x64xf32> -> vector<32x64xf32>
    %c0_56 = arith.constant 0 : index
    %c0_57 = arith.constant 0 : index
    %c0_58 = arith.constant 0 : index
    %156 = vector.load %arg13[%c0_56, %c0_57, %c0_58] : memref<2x1x64xf32, #tpu.memory_space<vmem>>, vector<1x1x64xf32>
    %157 = vector.shape_cast %156 : vector<1x1x64xf32> to vector<1x64xf32>
    %158 = vector.broadcast %157 : vector<1x64xf32> to vector<32x64xf32>
    %159 = arith.addf %155, %158 : vector<32x64xf32>
    %cst_59 = arith.constant 0.707106769 : f32
    %160 = vector.broadcast %cst_59 : f32 to vector<32x64xf32>
    %161 = arith.mulf %159, %160 : vector<32x64xf32>
    %162 = math.absf %161 : vector<32x64xf32>
    %cst_60 = arith.constant 0.327591091 : f32
    %163 = vector.broadcast %cst_60 : f32 to vector<32x64xf32>
    %164 = arith.mulf %163, %162 : vector<32x64xf32>
    %cst_61 = arith.constant 1.000000e+00 : f32
    %165 = vector.broadcast %cst_61 : f32 to vector<32x64xf32>
    %166 = arith.addf %165, %164 : vector<32x64xf32>
    %167 = tpu.reciprocal %166 {approx = true} : vector<32x64xf32> -> vector<32x64xf32>
    %168 = arith.mulf %166, %167 : vector<32x64xf32>
    %cst_62 = arith.constant 2.000000e+00 : f32
    %169 = vector.broadcast %cst_62 : f32 to vector<32x64xf32>
    %170 = arith.subf %169, %168 : vector<32x64xf32>
    %171 = arith.mulf %167, %170 : vector<32x64xf32>
    %cst_63 = arith.constant 1.06140542 : f32
    %172 = vector.broadcast %cst_63 : f32 to vector<32x64xf32>
    %173 = arith.mulf %172, %171 : vector<32x64xf32>
    %cst_64 = arith.constant 1.45315206 : f32
    %174 = vector.broadcast %cst_64 : f32 to vector<32x64xf32>
    %175 = arith.subf %173, %174 : vector<32x64xf32>
    %176 = arith.mulf %175, %171 : vector<32x64xf32>
    %cst_65 = arith.constant 1.42141378 : f32
    %177 = vector.broadcast %cst_65 : f32 to vector<32x64xf32>
    %178 = arith.addf %176, %177 : vector<32x64xf32>
    %179 = arith.mulf %178, %171 : vector<32x64xf32>
    %cst_66 = arith.constant 0.284496725 : f32
    %180 = vector.broadcast %cst_66 : f32 to vector<32x64xf32>
    %181 = arith.subf %179, %180 : vector<32x64xf32>
    %182 = arith.mulf %181, %171 : vector<32x64xf32>
    %cst_67 = arith.constant 0.254829586 : f32
    %183 = vector.broadcast %cst_67 : f32 to vector<32x64xf32>
    %184 = arith.addf %182, %183 : vector<32x64xf32>
    %185 = arith.mulf %184, %171 : vector<32x64xf32>
    %cst_68 = arith.constant 0.000000e+00 : f32
    %186 = vector.broadcast %cst_68 : f32 to vector<32x64xf32>
    %187 = arith.subf %186, %162 : vector<32x64xf32>
    %188 = arith.mulf %187, %162 : vector<32x64xf32>
    %189 = math.exp %188 : vector<32x64xf32>
    %190 = arith.mulf %185, %189 : vector<32x64xf32>
    %cst_69 = arith.constant 1.000000e+00 : f32
    %191 = vector.broadcast %cst_69 : f32 to vector<32x64xf32>
    %192 = arith.subf %191, %190 : vector<32x64xf32>
    %cst_70 = arith.constant 0.000000e+00 : f32
    %193 = vector.broadcast %cst_70 : f32 to vector<32x64xf32>
    %194 = arith.cmpf olt, %161, %193 : vector<32x64xf32>
    %cst_71 = arith.constant 0.000000e+00 : f32
    %195 = vector.broadcast %cst_71 : f32 to vector<32x64xf32>
    %196 = arith.subf %195, %192 : vector<32x64xf32>
    %197 = arith.select %194, %196, %192 : vector<32x64xi1>, vector<32x64xf32>
    %cst_72 = arith.constant 5.000000e-01 : f32
    %198 = vector.broadcast %cst_72 : f32 to vector<32x64xf32>
    %199 = arith.mulf %198, %159 : vector<32x64xf32>
    %cst_73 = arith.constant 1.000000e+00 : f32
    %200 = vector.broadcast %cst_73 : f32 to vector<32x64xf32>
    %201 = arith.addf %200, %197 : vector<32x64xf32>
    %202 = arith.mulf %199, %201 : vector<32x64xf32>
    %c0_74 = arith.constant 0 : index
    %c0_75 = arith.constant 0 : index
    %c0_76 = arith.constant 0 : index
    %203 = vector.load %arg14[%c0_74, %c0_75, %c0_76] : memref<2x64x32xf32, #tpu.memory_space<vmem>>, vector<1x64x32xf32>
    %204 = vector.shape_cast %203 : vector<1x64x32xf32> to vector<64x32xf32>
    %cst_77 = arith.constant dense<0.000000e+00> : vector<32x32xf32>
    %205 = tpu.matmul %202, %204, %cst_77 {dimension_numbers = #tpu.dot_dimension_numbers<[1], [0], [0], [1], [0, 0, 1, 1], [], []>} : vector<32x64xf32>, vector<64x32xf32>, vector<32x32xf32> -> vector<32x32xf32>
    %c0_78 = arith.constant 0 : index
    %c0_79 = arith.constant 0 : index
    %c0_80 = arith.constant 0 : index
    %206 = vector.load %arg15[%c0_78, %c0_79, %c0_80] : memref<2x1x32xf32, #tpu.memory_space<vmem>>, vector<1x1x32xf32>
    %207 = vector.shape_cast %206 : vector<1x1x32xf32> to vector<1x32xf32>
    %208 = vector.broadcast %207 : vector<1x32xf32> to vector<32x32xf32>
    %209 = arith.addf %205, %208 : vector<32x32xf32>
    %210 = arith.addf %128, %209 : vector<32x32xf32>
    %c1 = arith.constant 1 : index
    %c0_81 = arith.constant 0 : index
    %c0_82 = arith.constant 0 : index
    %211 = vector.load %arg5[%c1, %c0_81, %c0_82] : memref<2x1x32xf32, #tpu.memory_space<vmem>>, vector<1x1x32xf32>
    %212 = vector.shape_cast %211 : vector<1x1x32xf32> to vector<1x32xf32>
    %c1_83 = arith.constant 1 : index
    %c0_84 = arith.constant 0 : index
    %c0_85 = arith.constant 0 : index
    %213 = vector.load %arg6[%c1_83, %c0_84, %c0_85] : memref<2x1x32xf32, #tpu.memory_space<vmem>>, vector<1x1x32xf32>
    %214 = vector.shape_cast %213 : vector<1x1x32xf32> to vector<1x32xf32>
    %cst_86 = arith.constant dense<0.000000e+00> : vector<32xf32>
    %215 = vector.multi_reduction <add>, %210, %cst_86 [1] : vector<32x32xf32> to vector<32xf32>
    %216 = vector.shape_cast %215 : vector<32xf32> to vector<32x1xf32>
    %cst_87 = arith.constant 3.200000e+01 : f32
    %217 = vector.broadcast %cst_87 : f32 to vector<32x1xf32>
    %218 = arith.divf %216, %217 : vector<32x1xf32>
    %219 = vector.broadcast %218 : vector<32x1xf32> to vector<32x32xf32>
    %220 = arith.subf %210, %219 : vector<32x32xf32>
    %221 = arith.mulf %220, %220 : vector<32x32xf32>
    %cst_88 = arith.constant dense<0.000000e+00> : vector<32xf32>
    %222 = vector.multi_reduction <add>, %221, %cst_88 [1] : vector<32x32xf32> to vector<32xf32>
    %223 = vector.shape_cast %222 : vector<32xf32> to vector<32x1xf32>
    %cst_89 = arith.constant 3.200000e+01 : f32
    %224 = vector.broadcast %cst_89 : f32 to vector<32x1xf32>
    %225 = arith.divf %223, %224 : vector<32x1xf32>
    %cst_90 = arith.constant 9.99999974E-6 : f32
    %226 = vector.broadcast %cst_90 : f32 to vector<32x1xf32>
    %227 = arith.addf %225, %226 : vector<32x1xf32>
    %228 = math.rsqrt %227 : vector<32x1xf32>
    %229 = vector.broadcast %228 : vector<32x1xf32> to vector<32x32xf32>
    %230 = arith.mulf %220, %229 : vector<32x32xf32>
    %231 = vector.broadcast %212 : vector<1x32xf32> to vector<32x32xf32>
    %232 = arith.mulf %230, %231 : vector<32x32xf32>
    %233 = vector.broadcast %214 : vector<1x32xf32> to vector<32x32xf32>
    %234 = arith.addf %232, %233 : vector<32x32xf32>
    %c1_91 = arith.constant 1 : index
    %c0_92 = arith.constant 0 : index
    %c0_93 = arith.constant 0 : index
    %235 = vector.load %arg7[%c1_91, %c0_92, %c0_93] : memref<2x32x384xf32, #tpu.memory_space<vmem>>, vector<1x32x384xf32>
    %236 = vector.shape_cast %235 : vector<1x32x384xf32> to vector<32x384xf32>
    %cst_94 = arith.constant dense<0.000000e+00> : vector<32x384xf32>
    %237 = tpu.matmul %234, %236, %cst_94 {dimension_numbers = #tpu.dot_dimension_numbers<[1], [0], [0], [1], [0, 0, 1, 1], [], []>} : vector<32x32xf32>, vector<32x384xf32>, vector<32x384xf32> -> vector<32x384xf32>
    %238 = vector.extract_strided_slice %237 {offsets = [0, 0], sizes = [32, 32], strides = [1, 1]} : vector<32x384xf32> to vector<32x32xf32>
    %239 = vector.extract_strided_slice %237 {offsets = [0, 32], sizes = [32, 32], strides = [1, 1]} : vector<32x384xf32> to vector<32x32xf32>
    %240 = vector.extract_strided_slice %237 {offsets = [0, 64], sizes = [32, 32], strides = [1, 1]} : vector<32x384xf32> to vector<32x32xf32>
    %241 = vector.extract_strided_slice %237 {offsets = [0, 96], sizes = [32, 32], strides = [1, 1]} : vector<32x384xf32> to vector<32x32xf32>
    %242 = vector.shape_cast %238 : vector<32x32xf32> to vector<1x32x32xf32>
    %243 = vector.shape_cast %239 : vector<32x32xf32> to vector<1x32x32xf32>
    %244 = vector.shape_cast %240 : vector<32x32xf32> to vector<1x32x32xf32>
    %245 = vector.shape_cast %241 : vector<32x32xf32> to vector<1x32x32xf32>
    %246 = tpu.concatenate %242, %243, %244, %245 in 0 : vector<1x32x32xf32>, vector<1x32x32xf32>, vector<1x32x32xf32>, vector<1x32x32xf32> -> vector<4x32x32xf32>
    %247 = vector.shape_cast %246 : vector<4x32x32xf32> to vector<8x16x32xf32>
    %248 = vector.extract_strided_slice %237 {offsets = [0, 128], sizes = [32, 32], strides = [1, 1]} : vector<32x384xf32> to vector<32x32xf32>
    %249 = vector.extract_strided_slice %237 {offsets = [0, 160], sizes = [32, 32], strides = [1, 1]} : vector<32x384xf32> to vector<32x32xf32>
    %250 = vector.extract_strided_slice %237 {offsets = [0, 192], sizes = [32, 32], strides = [1, 1]} : vector<32x384xf32> to vector<32x32xf32>
    %251 = vector.extract_strided_slice %237 {offsets = [0, 224], sizes = [32, 32], strides = [1, 1]} : vector<32x384xf32> to vector<32x32xf32>
    %252 = vector.shape_cast %248 : vector<32x32xf32> to vector<1x32x32xf32>
    %253 = vector.shape_cast %249 : vector<32x32xf32> to vector<1x32x32xf32>
    %254 = vector.shape_cast %250 : vector<32x32xf32> to vector<1x32x32xf32>
    %255 = vector.shape_cast %251 : vector<32x32xf32> to vector<1x32x32xf32>
    %256 = tpu.concatenate %252, %253, %254, %255 in 0 : vector<1x32x32xf32>, vector<1x32x32xf32>, vector<1x32x32xf32>, vector<1x32x32xf32> -> vector<4x32x32xf32>
    %257 = vector.shape_cast %256 : vector<4x32x32xf32> to vector<8x16x32xf32>
    %258 = vector.extract_strided_slice %237 {offsets = [0, 256], sizes = [32, 32], strides = [1, 1]} : vector<32x384xf32> to vector<32x32xf32>
    %259 = vector.extract_strided_slice %237 {offsets = [0, 288], sizes = [32, 32], strides = [1, 1]} : vector<32x384xf32> to vector<32x32xf32>
    %260 = vector.extract_strided_slice %237 {offsets = [0, 320], sizes = [32, 32], strides = [1, 1]} : vector<32x384xf32> to vector<32x32xf32>
    %261 = vector.extract_strided_slice %237 {offsets = [0, 352], sizes = [32, 32], strides = [1, 1]} : vector<32x384xf32> to vector<32x32xf32>
    %262 = vector.shape_cast %258 : vector<32x32xf32> to vector<1x32x32xf32>
    %263 = vector.shape_cast %259 : vector<32x32xf32> to vector<1x32x32xf32>
    %264 = vector.shape_cast %260 : vector<32x32xf32> to vector<1x32x32xf32>
    %265 = vector.shape_cast %261 : vector<32x32xf32> to vector<1x32x32xf32>
    %266 = tpu.concatenate %262, %263, %264, %265 in 0 : vector<1x32x32xf32>, vector<1x32x32xf32>, vector<1x32x32xf32>, vector<1x32x32xf32> -> vector<4x32x32xf32>
    %267 = vector.shape_cast %266 : vector<4x32x32xf32> to vector<8x16x32xf32>
    "tpu.trace_start"() <{level = 10 : i32, message = "gnd,gmd->gnm"}> : () -> ()
    %cst_95 = arith.constant dense<0.000000e+00> : vector<8x16x16xf32>
    %268 = tpu.matmul %247, %257, %cst_95 {dimension_numbers = #tpu.dot_dimension_numbers<[2], [2], [1], [1], [0, 0, 0, 1, 1, 1], [0], [0]>} : vector<8x16x32xf32>, vector<8x16x32xf32>, vector<8x16x16xf32> -> vector<8x16x16xf32>
    %cst_96 = arith.constant -1.000000e+30 : f32
    "tpu.trace_stop"() : () -> ()
    %269 = vector.shape_cast %33 : vector<1x1x16xi1> to vector<1x1x16xi1>
    %270 = vector.broadcast %269 : vector<1x1x16xi1> to vector<8x16x16xi1>
    %271 = vector.broadcast %cst_96 : f32 to vector<8x16x16xf32>
    %272 = arith.select %270, %268, %271 : vector<8x16x16xi1>, vector<8x16x16xf32>
    %cst_97 = arith.constant dense<0xFF800000> : vector<8x16xf32>
    %273 = vector.multi_reduction <maximumf>, %272, %cst_97 [2] : vector<8x16x16xf32> to vector<8x16xf32>
    %274 = vector.shape_cast %273 : vector<8x16xf32> to vector<8x16x1xf32>
    %275 = vector.broadcast %274 : vector<8x16x1xf32> to vector<8x16x16xf32>
    %276 = arith.subf %272, %275 : vector<8x16x16xf32>
    %277 = math.exp %276 : vector<8x16x16xf32>
    %cst_98 = arith.constant dense<0.000000e+00> : vector<8x16xf32>
    %278 = vector.multi_reduction <add>, %277, %cst_98 [2] : vector<8x16x16xf32> to vector<8x16xf32>
    %279 = vector.shape_cast %278 : vector<8x16xf32> to vector<8x16x1xf32>
    %280 = tpu.reciprocal %279 {approx = true} : vector<8x16x1xf32> -> vector<8x16x1xf32>
    %281 = arith.mulf %279, %280 : vector<8x16x1xf32>
    %cst_99 = arith.constant 2.000000e+00 : f32
    %282 = vector.broadcast %cst_99 : f32 to vector<8x16x1xf32>
    %283 = arith.subf %282, %281 : vector<8x16x1xf32>
    %284 = arith.mulf %280, %283 : vector<8x16x1xf32>
    %285 = vector.broadcast %284 : vector<8x16x1xf32> to vector<8x16x16xf32>
    %286 = arith.mulf %277, %285 : vector<8x16x16xf32>
    "tpu.trace_start"() <{level = 10 : i32, message = "gnm,gmd->gnd"}> : () -> ()
    %cst_100 = arith.constant dense<0.000000e+00> : vector<8x16x32xf32>
    %287 = tpu.matmul %286, %267, %cst_100 {dimension_numbers = #tpu.dot_dimension_numbers<[2], [1], [1], [2], [0, 0, 0, 1, 1, 2], [0], [0]>} : vector<8x16x16xf32>, vector<8x16x32xf32>, vector<8x16x32xf32> -> vector<8x16x32xf32>
    "tpu.trace_stop"() : () -> ()
    %288 = vector.shape_cast %287 : vector<8x16x32xf32> to vector<4x32x32xf32>
    %289 = vector.extract_strided_slice %288 {offsets = [0, 0, 0], sizes = [1, 32, 32], strides = [1, 1, 1]} : vector<4x32x32xf32> to vector<1x32x32xf32>
    %290 = vector.shape_cast %289 : vector<1x32x32xf32> to vector<32x32xf32>
    %291 = vector.extract_strided_slice %288 {offsets = [1, 0, 0], sizes = [1, 32, 32], strides = [1, 1, 1]} : vector<4x32x32xf32> to vector<1x32x32xf32>
    %292 = vector.shape_cast %291 : vector<1x32x32xf32> to vector<32x32xf32>
    %293 = vector.extract_strided_slice %288 {offsets = [2, 0, 0], sizes = [1, 32, 32], strides = [1, 1, 1]} : vector<4x32x32xf32> to vector<1x32x32xf32>
    %294 = vector.shape_cast %293 : vector<1x32x32xf32> to vector<32x32xf32>
    %295 = vector.extract_strided_slice %288 {offsets = [3, 0, 0], sizes = [1, 32, 32], strides = [1, 1, 1]} : vector<4x32x32xf32> to vector<1x32x32xf32>
    %296 = vector.shape_cast %295 : vector<1x32x32xf32> to vector<32x32xf32>
    %297 = tpu.concatenate %290, %292, %294, %296 in 1 : vector<32x32xf32>, vector<32x32xf32>, vector<32x32xf32>, vector<32x32xf32> -> vector<32x128xf32>
    %c1_101 = arith.constant 1 : index
    %c0_102 = arith.constant 0 : index
    %c0_103 = arith.constant 0 : index
    %298 = vector.load %arg8[%c1_101, %c0_102, %c0_103] : memref<2x128x32xf32, #tpu.memory_space<vmem>>, vector<1x128x32xf32>
    %299 = vector.shape_cast %298 : vector<1x128x32xf32> to vector<128x32xf32>
    %cst_104 = arith.constant dense<0.000000e+00> : vector<32x32xf32>
    %300 = tpu.matmul %297, %299, %cst_104 {dimension_numbers = #tpu.dot_dimension_numbers<[1], [0], [0], [1], [0, 0, 1, 1], [], []>} : vector<32x128xf32>, vector<128x32xf32>, vector<32x32xf32> -> vector<32x32xf32>
    %301 = arith.addf %210, %300 : vector<32x32xf32>
    %c1_105 = arith.constant 1 : index
    %c0_106 = arith.constant 0 : index
    %c0_107 = arith.constant 0 : index
    %302 = vector.load %arg9[%c1_105, %c0_106, %c0_107] : memref<2x1x32xf32, #tpu.memory_space<vmem>>, vector<1x1x32xf32>
    %303 = vector.shape_cast %302 : vector<1x1x32xf32> to vector<1x32xf32>
    %304 = vector.broadcast %303 : vector<1x32xf32> to vector<32x32xf32>
    %305 = arith.addf %301, %304 : vector<32x32xf32>
    %c1_108 = arith.constant 1 : index
    %c0_109 = arith.constant 0 : index
    %c0_110 = arith.constant 0 : index
    %306 = vector.load %arg10[%c1_108, %c0_109, %c0_110] : memref<2x1x32xf32, #tpu.memory_space<vmem>>, vector<1x1x32xf32>
    %307 = vector.shape_cast %306 : vector<1x1x32xf32> to vector<1x32xf32>
    %c1_111 = arith.constant 1 : index
    %c0_112 = arith.constant 0 : index
    %c0_113 = arith.constant 0 : index
    %308 = vector.load %arg11[%c1_111, %c0_112, %c0_113] : memref<2x1x32xf32, #tpu.memory_space<vmem>>, vector<1x1x32xf32>
    %309 = vector.shape_cast %308 : vector<1x1x32xf32> to vector<1x32xf32>
    %cst_114 = arith.constant dense<0.000000e+00> : vector<32xf32>
    %310 = vector.multi_reduction <add>, %305, %cst_114 [1] : vector<32x32xf32> to vector<32xf32>
    %311 = vector.shape_cast %310 : vector<32xf32> to vector<32x1xf32>
    %cst_115 = arith.constant 3.200000e+01 : f32
    %312 = vector.broadcast %cst_115 : f32 to vector<32x1xf32>
    %313 = arith.divf %311, %312 : vector<32x1xf32>
    %314 = vector.broadcast %313 : vector<32x1xf32> to vector<32x32xf32>
    %315 = arith.subf %305, %314 : vector<32x32xf32>
    %316 = arith.mulf %315, %315 : vector<32x32xf32>
    %cst_116 = arith.constant dense<0.000000e+00> : vector<32xf32>
    %317 = vector.multi_reduction <add>, %316, %cst_116 [1] : vector<32x32xf32> to vector<32xf32>
    %318 = vector.shape_cast %317 : vector<32xf32> to vector<32x1xf32>
    %cst_117 = arith.constant 3.200000e+01 : f32
    %319 = vector.broadcast %cst_117 : f32 to vector<32x1xf32>
    %320 = arith.divf %318, %319 : vector<32x1xf32>
    %cst_118 = arith.constant 9.99999974E-6 : f32
    %321 = vector.broadcast %cst_118 : f32 to vector<32x1xf32>
    %322 = arith.addf %320, %321 : vector<32x1xf32>
    %323 = math.rsqrt %322 : vector<32x1xf32>
    %324 = vector.broadcast %323 : vector<32x1xf32> to vector<32x32xf32>
    %325 = arith.mulf %315, %324 : vector<32x32xf32>
    %326 = vector.broadcast %307 : vector<1x32xf32> to vector<32x32xf32>
    %327 = arith.mulf %325, %326 : vector<32x32xf32>
    %328 = vector.broadcast %309 : vector<1x32xf32> to vector<32x32xf32>
    %329 = arith.addf %327, %328 : vector<32x32xf32>
    %c1_119 = arith.constant 1 : index
    %c0_120 = arith.constant 0 : index
    %c0_121 = arith.constant 0 : index
    %330 = vector.load %arg12[%c1_119, %c0_120, %c0_121] : memref<2x32x64xf32, #tpu.memory_space<vmem>>, vector<1x32x64xf32>
    %331 = vector.shape_cast %330 : vector<1x32x64xf32> to vector<32x64xf32>
    %cst_122 = arith.constant dense<0.000000e+00> : vector<32x64xf32>
    %332 = tpu.matmul %329, %331, %cst_122 {dimension_numbers = #tpu.dot_dimension_numbers<[1], [0], [0], [1], [0, 0, 1, 1], [], []>} : vector<32x32xf32>, vector<32x64xf32>, vector<32x64xf32> -> vector<32x64xf32>
    %c1_123 = arith.constant 1 : index
    %c0_124 = arith.constant 0 : index
    %c0_125 = arith.constant 0 : index
    %333 = vector.load %arg13[%c1_123, %c0_124, %c0_125] : memref<2x1x64xf32, #tpu.memory_space<vmem>>, vector<1x1x64xf32>
    %334 = vector.shape_cast %333 : vector<1x1x64xf32> to vector<1x64xf32>
    %335 = vector.broadcast %334 : vector<1x64xf32> to vector<32x64xf32>
    %336 = arith.addf %332, %335 : vector<32x64xf32>
    %cst_126 = arith.constant 0.707106769 : f32
    %337 = vector.broadcast %cst_126 : f32 to vector<32x64xf32>
    %338 = arith.mulf %336, %337 : vector<32x64xf32>
    %339 = math.absf %338 : vector<32x64xf32>
    %cst_127 = arith.constant 0.327591091 : f32
    %340 = vector.broadcast %cst_127 : f32 to vector<32x64xf32>
    %341 = arith.mulf %340, %339 : vector<32x64xf32>
    %cst_128 = arith.constant 1.000000e+00 : f32
    %342 = vector.broadcast %cst_128 : f32 to vector<32x64xf32>
    %343 = arith.addf %342, %341 : vector<32x64xf32>
    %344 = tpu.reciprocal %343 {approx = true} : vector<32x64xf32> -> vector<32x64xf32>
    %345 = arith.mulf %343, %344 : vector<32x64xf32>
    %cst_129 = arith.constant 2.000000e+00 : f32
    %346 = vector.broadcast %cst_129 : f32 to vector<32x64xf32>
    %347 = arith.subf %346, %345 : vector<32x64xf32>
    %348 = arith.mulf %344, %347 : vector<32x64xf32>
    %cst_130 = arith.constant 1.06140542 : f32
    %349 = vector.broadcast %cst_130 : f32 to vector<32x64xf32>
    %350 = arith.mulf %349, %348 : vector<32x64xf32>
    %cst_131 = arith.constant 1.45315206 : f32
    %351 = vector.broadcast %cst_131 : f32 to vector<32x64xf32>
    %352 = arith.subf %350, %351 : vector<32x64xf32>
    %353 = arith.mulf %352, %348 : vector<32x64xf32>
    %cst_132 = arith.constant 1.42141378 : f32
    %354 = vector.broadcast %cst_132 : f32 to vector<32x64xf32>
    %355 = arith.addf %353, %354 : vector<32x64xf32>
    %356 = arith.mulf %355, %348 : vector<32x64xf32>
    %cst_133 = arith.constant 0.284496725 : f32
    %357 = vector.broadcast %cst_133 : f32 to vector<32x64xf32>
    %358 = arith.subf %356, %357 : vector<32x64xf32>
    %359 = arith.mulf %358, %348 : vector<32x64xf32>
    %cst_134 = arith.constant 0.254829586 : f32
    %360 = vector.broadcast %cst_134 : f32 to vector<32x64xf32>
    %361 = arith.addf %359, %360 : vector<32x64xf32>
    %362 = arith.mulf %361, %348 : vector<32x64xf32>
    %cst_135 = arith.constant 0.000000e+00 : f32
    %363 = vector.broadcast %cst_135 : f32 to vector<32x64xf32>
    %364 = arith.subf %363, %339 : vector<32x64xf32>
    %365 = arith.mulf %364, %339 : vector<32x64xf32>
    %366 = math.exp %365 : vector<32x64xf32>
    %367 = arith.mulf %362, %366 : vector<32x64xf32>
    %cst_136 = arith.constant 1.000000e+00 : f32
    %368 = vector.broadcast %cst_136 : f32 to vector<32x64xf32>
    %369 = arith.subf %368, %367 : vector<32x64xf32>
    %cst_137 = arith.constant 0.000000e+00 : f32
    %370 = vector.broadcast %cst_137 : f32 to vector<32x64xf32>
    %371 = arith.cmpf olt, %338, %370 : vector<32x64xf32>
    %cst_138 = arith.constant 0.000000e+00 : f32
    %372 = vector.broadcast %cst_138 : f32 to vector<32x64xf32>
    %373 = arith.subf %372, %369 : vector<32x64xf32>
    %374 = arith.select %371, %373, %369 : vector<32x64xi1>, vector<32x64xf32>
    %cst_139 = arith.constant 5.000000e-01 : f32
    %375 = vector.broadcast %cst_139 : f32 to vector<32x64xf32>
    %376 = arith.mulf %375, %336 : vector<32x64xf32>
    %cst_140 = arith.constant 1.000000e+00 : f32
    %377 = vector.broadcast %cst_140 : f32 to vector<32x64xf32>
    %378 = arith.addf %377, %374 : vector<32x64xf32>
    %379 = arith.mulf %376, %378 : vector<32x64xf32>
    %c1_141 = arith.constant 1 : index
    %c0_142 = arith.constant 0 : index
    %c0_143 = arith.constant 0 : index
    %380 = vector.load %arg14[%c1_141, %c0_142, %c0_143] : memref<2x64x32xf32, #tpu.memory_space<vmem>>, vector<1x64x32xf32>
    %381 = vector.shape_cast %380 : vector<1x64x32xf32> to vector<64x32xf32>
    %cst_144 = arith.constant dense<0.000000e+00> : vector<32x32xf32>
    %382 = tpu.matmul %379, %381, %cst_144 {dimension_numbers = #tpu.dot_dimension_numbers<[1], [0], [0], [1], [0, 0, 1, 1], [], []>} : vector<32x64xf32>, vector<64x32xf32>, vector<32x32xf32> -> vector<32x32xf32>
    %c1_145 = arith.constant 1 : index
    %c0_146 = arith.constant 0 : index
    %c0_147 = arith.constant 0 : index
    %383 = vector.load %arg15[%c1_145, %c0_146, %c0_147] : memref<2x1x32xf32, #tpu.memory_space<vmem>>, vector<1x1x32xf32>
    %384 = vector.shape_cast %383 : vector<1x1x32xf32> to vector<1x32xf32>
    %385 = vector.broadcast %384 : vector<1x32xf32> to vector<32x32xf32>
    %386 = arith.addf %382, %385 : vector<32x32xf32>
    %387 = arith.addf %305, %386 : vector<32x32xf32>
    %388 = vector.shape_cast %387 : vector<32x32xf32> to vector<2x16x32xf32>
    %389 = vector.extract_strided_slice %388 {offsets = [0, 0, 0], sizes = [2, 1, 32], strides = [1, 1, 1]} : vector<2x16x32xf32> to vector<2x1x32xf32>
    %390 = vector.shape_cast %389 : vector<2x1x32xf32> to vector<2x32xf32>
    %c0_148 = arith.constant 0 : index
    %c0_149 = arith.constant 0 : index
    %391 = vector.load %arg16[%c0_148, %c0_149] : memref<32x8xf32, #tpu.memory_space<vmem>>, vector<32x8xf32>
    %cst_150 = arith.constant dense<0.000000e+00> : vector<2x8xf32>
    %392 = tpu.matmul %390, %391, %cst_150 {dimension_numbers = #tpu.dot_dimension_numbers<[1], [0], [0], [1], [0, 0, 1, 1], [], []>} : vector<2x32xf32>, vector<32x8xf32>, vector<2x8xf32> -> vector<2x8xf32>
    %c0_151 = arith.constant 0 : index
    %c0_152 = arith.constant 0 : index
    %393 = vector.load %arg17[%c0_151, %c0_152] : memref<1x8xf32, #tpu.memory_space<vmem>>, vector<1x8xf32>
    %394 = vector.broadcast %393 : vector<1x8xf32> to vector<2x8xf32>
    %395 = arith.addf %392, %394 : vector<2x8xf32>
    %cst_153 = arith.constant 0.000000e+00 : f32
    %396 = vector.broadcast %cst_153 : f32 to vector<2x88xf32>
    %397 = tpu.concatenate %395, %390, %396 in 1 : vector<2x8xf32>, vector<2x32xf32>, vector<2x88xf32> -> vector<2x128xf32>
    %c0_154 = arith.constant 0 : index
    %c0_155 = arith.constant 0 : index
    %c0_156 = arith.constant 0 : index
    %398 = vector.load %arg18[%c0_154, %c0_155, %c0_156] : memref<1x2x128xf32, #tpu.memory_space<vmem>>, vector<1x2x128xf32>
    %399 = vector.shape_cast %398 : vector<1x2x128xf32> to vector<2x128xf32>
    %400 = vector.shape_cast %397 : vector<2x128xf32> to vector<1x2x128xf32>
    tpu.vector_store %arg18[%c0_154, %c0_155, %c0_156], %400 {strides = array<i32>} : memref<1x2x128xf32, #tpu.memory_space<vmem>>, vector<1x2x128xf32>,
    return
  }
  func.func @transform_0(%arg0: i32) -> (i32, i32, i32, i32) {
    %c0_i32 = arith.constant 0 : i32
    %c0_i32_0 = arith.constant 0 : i32
    %c0_i32_1 = arith.constant 0 : i32
    %c0_i32_2 = arith.constant 0 : i32
    return %arg0, %c0_i32, %c0_i32_0, %c0_i32_1 : i32, i32, i32, i32
  }
  func.func @transform_1(%arg0: i32) -> (i32, i32) {
    %c0_i32 = arith.constant 0 : i32
    %c0_i32_0 = arith.constant 0 : i32
    %c0_i32_1 = arith.constant 0 : i32
    return %c0_i32, %c0_i32_0 : i32, i32
  }
  func.func @transform_2(%arg0: i32) -> (i32, i32) {
    %c0_i32 = arith.constant 0 : i32
    %c0_i32_0 = arith.constant 0 : i32
    %c0_i32_1 = arith.constant 0 : i32
    return %c0_i32, %c0_i32_0 : i32, i32
  }
  func.func @transform_3(%arg0: i32) -> (i32, i32) {
    %c0_i32 = arith.constant 0 : i32
    %c0_i32_0 = arith.constant 0 : i32
    %c0_i32_1 = arith.constant 0 : i32
    return %c0_i32, %c0_i32_0 : i32, i32
  }
  func.func @transform_4(%arg0: i32) -> (i32, i32, i32) {
    %c0_i32 = arith.constant 0 : i32
    %c0_i32_0 = arith.constant 0 : i32
    %c0_i32_1 = arith.constant 0 : i32
    %c0_i32_2 = arith.constant 0 : i32
    return %c0_i32, %c0_i32_0, %c0_i32_1 : i32, i32, i32
  }
  func.func @transform_5(%arg0: i32) -> (i32, i32, i32) {
    %c0_i32 = arith.constant 0 : i32
    %c0_i32_0 = arith.constant 0 : i32
    %c0_i32_1 = arith.constant 0 : i32
    %c0_i32_2 = arith.constant 0 : i32
    return %c0_i32, %c0_i32_0, %c0_i32_1 : i32, i32, i32
  }
  func.func @transform_6(%arg0: i32) -> (i32, i32, i32) {
    %c0_i32 = arith.constant 0 : i32
    %c0_i32_0 = arith.constant 0 : i32
    %c0_i32_1 = arith.constant 0 : i32
    %c0_i32_2 = arith.constant 0 : i32
    return %c0_i32, %c0_i32_0, %c0_i32_1 : i32, i32, i32
  }
  func.func @transform_7(%arg0: i32) -> (i32, i32, i32) {
    %c0_i32 = arith.constant 0 : i32
    %c0_i32_0 = arith.constant 0 : i32
    %c0_i32_1 = arith.constant 0 : i32
    %c0_i32_2 = arith.constant 0 : i32
    return %c0_i32, %c0_i32_0, %c0_i32_1 : i32, i32, i32
  }
  func.func @transform_8(%arg0: i32) -> (i32, i32, i32) {
    %c0_i32 = arith.constant 0 : i32
    %c0_i32_0 = arith.constant 0 : i32
    %c0_i32_1 = arith.constant 0 : i32
    %c0_i32_2 = arith.constant 0 : i32
    return %c0_i32, %c0_i32_0, %c0_i32_1 : i32, i32, i32
  }
  func.func @transform_9(%arg0: i32) -> (i32, i32, i32) {
    %c0_i32 = arith.constant 0 : i32
    %c0_i32_0 = arith.constant 0 : i32
    %c0_i32_1 = arith.constant 0 : i32
    %c0_i32_2 = arith.constant 0 : i32
    return %c0_i32, %c0_i32_0, %c0_i32_1 : i32, i32, i32
  }
  func.func @transform_10(%arg0: i32) -> (i32, i32, i32) {
    %c0_i32 = arith.constant 0 : i32
    %c0_i32_0 = arith.constant 0 : i32
    %c0_i32_1 = arith.constant 0 : i32
    %c0_i32_2 = arith.constant 0 : i32
    return %c0_i32, %c0_i32_0, %c0_i32_1 : i32, i32, i32
  }
  func.func @transform_11(%arg0: i32) -> (i32, i32, i32) {
    %c0_i32 = arith.constant 0 : i32
    %c0_i32_0 = arith.constant 0 : i32
    %c0_i32_1 = arith.constant 0 : i32
    %c0_i32_2 = arith.constant 0 : i32
    return %c0_i32, %c0_i32_0, %c0_i32_1 : i32, i32, i32
  }
  func.func @transform_12(%arg0: i32) -> (i32, i32, i32) {
    %c0_i32 = arith.constant 0 : i32
    %c0_i32_0 = arith.constant 0 : i32
    %c0_i32_1 = arith.constant 0 : i32
    %c0_i32_2 = arith.constant 0 : i32
    return %c0_i32, %c0_i32_0, %c0_i32_1 : i32, i32, i32
  }
  func.func @transform_13(%arg0: i32) -> (i32, i32, i32) {
    %c0_i32 = arith.constant 0 : i32
    %c0_i32_0 = arith.constant 0 : i32
    %c0_i32_1 = arith.constant 0 : i32
    %c0_i32_2 = arith.constant 0 : i32
    return %c0_i32, %c0_i32_0, %c0_i32_1 : i32, i32, i32
  }
  func.func @transform_14(%arg0: i32) -> (i32, i32, i32) {
    %c0_i32 = arith.constant 0 : i32
    %c0_i32_0 = arith.constant 0 : i32
    %c0_i32_1 = arith.constant 0 : i32
    %c0_i32_2 = arith.constant 0 : i32
    return %c0_i32, %c0_i32_0, %c0_i32_1 : i32, i32, i32
  }
  func.func @transform_15(%arg0: i32) -> (i32, i32) {
    %c0_i32 = arith.constant 0 : i32
    %c0_i32_0 = arith.constant 0 : i32
    %c0_i32_1 = arith.constant 0 : i32
    return %c0_i32, %c0_i32_0 : i32, i32
  }
  func.func @transform_16(%arg0: i32) -> (i32, i32) {
    %c0_i32 = arith.constant 0 : i32
    %c0_i32_0 = arith.constant 0 : i32
    %c0_i32_1 = arith.constant 0 : i32
    return %c0_i32, %c0_i32_0 : i32, i32
  }
  func.func @transform_17(%arg0: i32) -> (i32, i32, i32) {
    %c0_i32 = arith.constant 0 : i32
    %c0_i32_0 = arith.constant 0 : i32
    %c0_i32_1 = arith.constant 0 : i32
    return %arg0, %c0_i32, %c0_i32_0 : i32, i32, i32
  }
}

</mosaic_0001>

<bundles_post_ra>
// kernel: tpu_custom_call.1
= control target key start
LH: loop header
LB: loop body
LE: loop exit
PB: predicated region body
PF: predicated region fallthrough
CT: control target
= control target key end

     0   :  { %s8331_s0 = inlined_call_operand.vmem [shape: f32[1,2,16,16], index: 0, kind: input, shape index: {}]   ;;  %s8332_s1 = inlined_call_operand.vmem [shape: f32[16,32], index: 1, kind: input, shape index: {}]   ;;  %s8333_s2 = inlined_call_operand.vmem [shape: f32[1,32], index: 2, kind: input, shape index: {}]   ;;  %s8334_s3 = inlined_call_operand.vmem [shape: f32[1,32], index: 3, kind: input, shape index: {}]   ;;  %s8335_s4 = inlined_call_operand.vmem [shape: f32[2,1,32], index: 4, kind: input, shape index: {}]   ;;  %s8336_s5 = inlined_call_operand.vmem [shape: f32[2,1,32], index: 5, kind: input, shape index: {}]   ;;  %s8337_s6 = inlined_call_operand.vmem [shape: f32[2,32,384], index: 6, kind: input, shape index: {}]   ;;  %s8338_s7 = inlined_call_operand.vmem [shape: f32[2,128,32], index: 7, kind: input, shape index: {}]   ;;  %s8339_s8 = inlined_call_operand.vmem [shape: f32[2,1,32], index: 8, kind: input, shape index: {}]   ;;  %s8340_s9 = inlined_call_operand.vmem [shape: f32[2,1,32], index: 9, kind: input, shape index: {}]   ;;  %s8341_s10 = inlined_call_operand.vmem [shape: f32[2,1,32], index: 10, kind: input, shape index: {}]   ;;  %s8342_s11 = inlined_call_operand.vmem [shape: f32[2,32,64], index: 11, kind: input, shape index: {}]   ;;  %s8343_s12 = inlined_call_operand.vmem [shape: f32[2,1,64], index: 12, kind: input, shape index: {}]   ;;  %s8344_s13 = inlined_call_operand.vmem [shape: f32[2,64,32], index: 13, kind: input, shape index: {}]   ;;  %s8345_s14 = inlined_call_operand.vmem [shape: f32[2,1,32], index: 14, kind: input, shape index: {}]   ;;  %s8346_s15 = inlined_call_operand.vmem [shape: f32[32,8], index: 15, kind: input, shape index: {}]   ;;  %s8347_s16 = inlined_call_operand.vmem [shape: f32[1,8], index: 16, kind: input, shape index: {}]   ;;  %s8348_s17 = inlined_call_operand.hbm [shape: f32[1,2,128], index: 17, kind: output, shape index: {}]  }
   0x1   :  { %8351 = sst [smem:[#allocation5_spill]] %s8331_s0 }
   0x2   :  { %8352 = sst [smem:[#allocation6_spill]] %s8332_s1 }
   0x3   :  { %s8353_s26 = sld [smem:[#allocation6_spill]]  ;;  %s8354_s30 = sld [smem:[#allocation5_spill]]  ;;  %vm70_vm0 = vcmask 130048  }
   0x9   :  { %v61_v0 = vld [vmem:[%s8353_s26] sm:$0xff]  ;;  %v62_v1 = vld [vmem:[%s8353_s26 + $0x8] sm:$0xff] }
   0xa   :  { %v57_v2 = vld [vmem:[%s8354_s30] sm:$0xff]  ;;  %v6251_v3 = vpack.c.bf16 %v62_v1, %v61_v0 }
   0xb   :  { %5834 = vmatprep.mubr.msk.f32.mxu0 %vm70_vm0, %v57_v2 }
   0xc   :  { %22 = vsyncpa [#allocation3], 0  ;;  %6252 = vmatprep.subr.bf16.mxu0 %v6251_v3  ;;  %v58_v4 = vld [vmem:[%s8354_s30 + $0x8] sm:$0xff]  ;;  %v59_v5 = vld [vmem:[%s8354_s30 + $0x10] sm:$0xff]  ;;  %v168_v7 = vlaneseq  ;;  %vm241_vm2 = vcmask 261120   ;;  %v6969_v58 = vmov 0.0  }
   0xd   :  { %6254 = vmatpush3.bf16.msra.mxu0 %v6251_v3  ;;  %v60_v6 = vld [vmem:[%s8354_s30 + $0x18] sm:$0xff]  ;;  %v5382_v11 = vld [vmem:[%s8333_s2] ss:$0 sm:$0xff]  ;;  %v316_v48 = vld [vmem:[%s8337_s6 + $0x8] sm:$0xff]  ;;  %403 = vmatprep.mubr.f32.mxu1 %v6969_v58  ;;  %s6970_s21 = smov 96   ;;  %s6971_s22 = smov 64  }
   0xe   :  { %v169_v8 = vshrl.u32 %v168_v7, 7  ;;  %v5387_v14 = vld [vmem:[%s8334_s3] ss:$0 sm:$0xff]  ;;  %v318_v52 = vld [vmem:[%s8337_s6 + $0x18] sm:$0xff]  ;;  %v325_v55 = vld [vmem:[%s8337_s6 + $0x50] sm:$0xff]  ;;  %s6972_s23 = smov 32  }
   0xf   :  { %v319_v49 = vld [vmem:[%s8337_s6 + $0x20] sm:$0xff]  ;;  %v322_v53 = vld [vmem:[%s8337_s6 + $0x38] sm:$0xff]  ;;  %v317_v56 = vld [vmem:[%s8337_s6 + $0x10] sm:$0xff]  ;;  %vm2215_vm6 = vcmask 523264   ;;  %vm2220_vm7 = vcmask 785408  }
  0x10   :  { %5835 = vmatmul.mubr.msk.f32.vlgmr.msra.gmra.mrb[0].mxu0 %vm70_vm0, %v58_v4  ;;  %v177_v9 = vand.u32 15, %v169_v8  ;;  %v171_v10 = vadd.s32 16, %v169_v8  ;;  %v6255_v50 = vpack.c.bf16 %v319_v49, %v316_v48  ;;  %v315_v51 = vld [vmem:[%s8337_s6] sm:$0xff]  ;;  %v320_v57 = vld [vmem:[%s8337_s6 + $0x28] sm:$0xff]  ;;  %v6259_v59 = vpack.c.bf16 %v325_v55, %v322_v53  ;;  %v321_v61 = vld [vmem:[%s8337_s6 + $0x30] sm:$0xff] }
  0x11   :  { %5837 = vmatprep.mubr.msk.f32.mxu0 %vm70_vm0, %v59_v5  ;;  %v6257_v54 = vpack.c.bf16 %v318_v52, %v315_v51  ;;  %v6263_v60 = vpack.c.bf16 %v320_v57, %v317_v56  ;;  %v324_v62 = vld [vmem:[%s8337_s6 + $0x48] sm:$0xff]  ;;  %v323_v0 = vld [vmem:[%s8337_s6 + $0x40] sm:$0xff]  ;;  %v326_v1 = vld [vmem:[%s8337_s6 + $0x58] sm:$0xff] }
  0x12   :  { %vm221_vm1 = vcmp.eq.s32.totalorder %v177_v9, 0  ;;  %v191_v15 = vand.u32 15, %v171_v10  ;;  %6256 = vmatprep.subr.bf16.mxu1 %v6255_v50  ;;  %v6261_v63 = vpack.c.bf16 %v324_v62, %v321_v61  ;;  %v6267_v2 = vpack.c.bf16 %v326_v1, %v323_v0  ;;  %vm7198_vm4 = vmpackc.low %vm241_vm2, %vm241_vm2 }
  0x13   :  { %6258 = vmatpush1.bf16.msra.mxu1 %v6257_v54  ;;  %6264 = vmatprep.subr.bf16.mxu0 %v6263_v60 }
  0x14   :  { %5838 = vmatmul.mubr.msk.f32.gmra.mrb[2].mxu0 %vm70_vm0, %v60_v6  ;;  %vm223_vm3 = vcmp.eq.s32.totalorder %v191_v15, 0  ;;  %6260 = vmatprep.subr.bf16.mxu1 %v6259_v59 }
  0x15   :  { %6266 = vmatpush3.bf16.msra.mxu0 %v6263_v60 }
  0x16   :  { %6268 = vmatprep.subr.bf16.mxu0 %v6267_v2 }
  0x17   :  { %6262 = vmatpush1.bf16.msra.mxu1 %v6261_v63 }
  0x19   :  { %6270 = vmatpush3.bf16.msra.mxu0 %v6267_v2 }
  0xe3   :  { %v5836_v12 = vpop.f32.mrb[0].mxu0 }
  0xe4   :  { %v149_v13 = vpop.f32.mrb[1].mxu0  ;;  %v7098_v19 = vadd.f32 %v5836_v12, %v5382_v11 }
  0xe5   :  { %v150_v16 = vadd.f32 %v5382_v11, %v149_v13 }
  0xe6   :  { %v245_v26 = vsel %vm241_vm2, %v7098_v19, 0.0 }
  0xe7   :  { %v5839_v17 = vpop.f32.mrb[2].mxu0  ;;  %v7096_v18 = vsel %vm221_vm1, %v5387_v14, %v150_v16  ;;  %vm5286_vm1 = vcmask 1041409  }
  0xe8   :  { %v159_v20 = vpop.f32.mrb[3].mxu0  ;;  %v242_v21 = vsel %vm241_vm2, %v7096_v18, 0.0  ;;  %v7102_v23 = vadd.f32 %v5839_v17, %v5382_v11  ;;  %v5388_v17 = vld [vmem:[%s8335_s4] ss:$0 sm:$0xff] }
  0xe9   :  { %v160_v22 = vadd.f32 %v5382_v11, %v159_v20  ;;  %243 = vadd.xlane.f32.xlu0 %v242_v21  ;;  %v5389_v21 = vld [vmem:[%s8336_s5] ss:$0 sm:$0xff] }
  0xea   :  { %v251_v27 = vsel %vm241_vm2, %v7102_v23, 0.0 }
  0xeb   :  { %v7104_v24 = vsel %vm223_vm3, %v5387_v14, %v160_v22  ;;  %vm5363_vm3 = vcmask 64512  }
  0xec   :  { %v248_v25 = vsel %vm241_vm2, %v7104_v24, 0.0 }
  0xed   :  { %249 = vadd.xlane.f32.xlu1 %v248_v25  ;;  %246 = vadd.xlane.f32.xlu0 %v245_v26 }
  0xf1   :  { %252 = vadd.xlane.f32.xlu1 %v251_v27 }
 0x176   :  { %v244_v28 = vpop.xlane.xlu0 %243 }
 0x177   :  { %v255_v29 = vmul.f32 0.03125, %v244_v28 }
 0x179   :  { %v7113_v30 = vsub.f32 %v7096_v18, %v255_v29 }
 0x17a   :  { %v250_v31 = vpop.xlane.xlu1 %249  ;;  %v247_v32 = vpop.xlane.xlu0 %246 }
 0x17b   :  { %v257_v33 = vmul.f32 0.03125, %v250_v31  ;;  %v256_v34 = vmul.f32 0.03125, %v247_v32  ;;  %v263_v35 = vmul.f32 %v7113_v30, %v7113_v30 }
 0x17d   :  { %v7118_v36 = vsub.f32 %v7104_v24, %v257_v33  ;;  %v7121_v37 = vsub.f32 %v7098_v19, %v256_v34  ;;  %v267_v38 = vsel %vm241_vm2, %v263_v35, 0.0 }
 0x17e   :  { %v253_v39 = vpop.xlane.xlu1 %252  ;;  %268 = vadd.xlane.f32.xlu0 %v267_v38 }
 0x17f   :  { %v258_v40 = vmul.f32 0.03125, %v253_v39  ;;  %v265_v41 = vmul.f32 %v7118_v36, %v7118_v36  ;;  %v264_v42 = vmul.f32 %v7121_v37, %v7121_v37 }
 0x181   :  { %v7129_v43 = vsub.f32 %v7102_v23, %v258_v40  ;;  %v273_v44 = vsel %vm241_vm2, %v265_v41, 0.0  ;;  %v270_v45 = vsel %vm241_vm2, %v264_v42, 0.0 }
 0x182   :  { %274 = vadd.xlane.f32.xlu0 %v273_v44  ;;  %271 = vadd.xlane.f32.xlu1 %v270_v45 }
 0x183   :  { %v266_v46 = vmul.f32 %v7129_v43, %v7129_v43 }
 0x185   :  { %v276_v47 = vsel %vm241_vm2, %v266_v46, 0.0 }
 0x186   :  { %277 = vadd.xlane.f32.xlu1 %v276_v47 }
 0x20b   :  { %v269_v3 = vpop.xlane.xlu0 %268 }
 0x20c   :  { %v279_v4 = vmul.f32 0.03125, %v269_v3 }
 0x20e   :  { %v283_v5 = vadd.f32 1e-05, %v279_v4 }
 0x20f   :  { %v272_v6 = vpop.xlane.xlu1 %271  ;;  %v275_v8 = vpop.xlane.xlu0 %274 }
 0x210   :  { %6753 = vrsqrt.f32 %v283_v5  ;;  %v280_v9 = vmul.f32 0.03125, %v272_v6  ;;  %v281_v10 = vmul.f32 0.03125, %v275_v8 }
 0x212   :  { %v284_v11 = vadd.f32 1e-05, %v280_v9  ;;  %v285_v12 = vadd.f32 1e-05, %v281_v10 }
 0x213   :  { %v278_v13 = vpop.xlane.xlu1 %277 }
 0x214   :  { %6755 = vrsqrt.f32 %v284_v11  ;;  %v282_v14 = vmul.f32 0.03125, %v278_v13 }
 0x215   :  { %6757 = vrsqrt.f32 %v285_v12 }
 0x216   :  { %v286_v15 = vadd.f32 1e-05, %v282_v14 }
 0x218   :  { %6759 = vrsqrt.f32 %v286_v15 }
 0x21a   :  { %v6754_v16 = vpop.eup %6753 }
 0x21b   :  { %v291_v20 = vmul.f32 %v6754_v16, %v7113_v30 }
 0x21d   :  { %v301_v22 = vmul.f32 %v5388_v17, %v291_v20 }
 0x21e   :  { %v6756_v25 = vpop.eup %6755 }
 0x21f   :  { %v6758_v26 = vpop.eup %6757  ;;  %v311_v27 = vadd.f32 %v5389_v21, %v301_v22  ;;  %v292_v28 = vmul.f32 %v6756_v25, %v7121_v37 }
 0x220   :  { %v293_v29 = vmul.f32 %v6758_v26, %v7118_v36 }
 0x221   :  { %5390 = vmatmul.mubr.msk.f32.vlgmr.msra.gmra.mrb[0].mxu1 %vm241_vm2, %v311_v27  ;;  %5848 = vmatprep.mubr.msk.f32.mxu0 %vm241_vm2, %v311_v27  ;;  %v302_v31 = vmul.f32 %v5388_v17, %v292_v28 }
 0x222   :  { %v6760_v32 = vpop.eup %6759  ;;  %409 = vmatprep.mubr.f32.mxu1 %v6969_v58  ;;  %v303_v30 = vmul.f32 %v5388_v17, %v293_v29 }
 0x223   :  { %v312_v33 = vadd.f32 %v5389_v21, %v302_v31  ;;  %v294_v34 = vmul.f32 %v6760_v32, %v7129_v43 }
 0x224   :  { %v313_v35 = vadd.f32 %v5389_v21, %v303_v30 }
 0x225   :  { %5391 = vmatmul.mubr.msk.f32.gmra.mrb[2].mxu1 %vm241_vm2, %v312_v33  ;;  %5849 = vmatmul.mubr.msk.f32.vlgmr.msra.gmra.mrb[4].mxu0 %vm241_vm2, %v312_v33  ;;  %v304_v37 = vmul.f32 %v5388_v17, %v294_v34 }
 0x226   :  { %5851 = vmatprep.mubr.msk.f32.mxu0 %vm241_vm2, %v313_v35  ;;  %415 = vmatprep.mubr.f32.mxu1 %v6969_v58 }
 0x227   :  { %v314_v36 = vadd.f32 %v5389_v21, %v304_v37 }
 0x229   :  { %5392 = vmatmul.mubr.msk.f32.gmra.mrb[4].mxu1 %vm241_vm2, %v313_v35  ;;  %5852 = vmatmul.mubr.msk.f32.gmra.mrb[6].mxu0 %vm241_vm2, %v314_v36 }
 0x22a   :  { %421 = vmatprep.mubr.f32.mxu1 %v6969_v58 }
 0x22d   :  { %5393 = vmatmul.mubr.msk.f32.gmra.mrb[6].mxu1 %vm241_vm2, %v314_v36  ;;  %v7278_v36 = vand.u32 127, %v168_v7 }
 0x22f   :  { %vm238_vm5 = vcmp.lt.s32.totalorder %v7278_v36, 9 }
 0x2f4   :  { %v405_v38 = vpop.f32.mrb[0].mxu1 }
 0x2f5   :  { %517 = vrot.lane.b32.xlu1 %v405_v38, %s6970_s21  ;;  %v407_v39 = vpop.f32.mrb[1].mxu1  ;;  %5858 = vmatprep.mubr.msk.f32.mxu0 %vm241_vm2, %v405_v38 }
 0x2f8   :  { %v411_v40 = vpop.f32.mrb[2].mxu1  ;;  %v5850_v41 = vpop.f32.mrb[4].mxu0 }
 0x2f9   :  { %v413_v42 = vpop.f32.mrb[3].mxu1  ;;  %v494_v43 = vpop.f32.mrb[5].mxu0 }
 0x2fa   :  { %v6271_v44 = vpack.c.bf16 %v413_v42, %v407_v39  ;;  %v6578_v45 = vpack.i.bf16 %v413_v42, %v407_v39  ;;  %v7202_v47 = vpack.c.bf16 %v5850_v41, %v494_v43  ;;  %v7204_v48 = vpack.i.bf16 %v5850_v41, %v494_v43 }
 0x2fc   :  { %6579 = vrot.lane.b32.xlu1 %v6578_v45, %s6971_s22  ;;  %6574 = vrot.lane.b32.xlu0 %v6578_v45, %s6970_s21  ;;  %v417_v49 = vpop.f32.mrb[4].mxu1  ;;  %v5853_v50 = vpop.f32.mrb[6].mxu0 }
 0x2fd   :  { %6273 = vmatprep.subr.msk.bf16.mxu0 %vm7198_vm4, %v6271_v44  ;;  %v419_v51 = vpop.f32.mrb[5].mxu1  ;;  %v504_v52 = vpop.f32.mrb[7].mxu0  ;;  %5865 = vmatprep.mubr.msk.f32.mxu1 %vm241_vm2, %v417_v49 }
 0x2fe   :  { %6276 = vmatpush3.bf16.xpose.msk.msra.mxu0 %vm7198_vm4, %v6271_v44  ;;  %v7213_v53 = vpack.c.bf16 %v5853_v50, %v504_v52  ;;  %v7215_v54 = vpack.i.bf16 %v5853_v50, %v504_v52 }
 0x300   :  { %519 = vrot.lane.b32.xlu0 %v411_v40, %s6970_s21  ;;  %521 = vrot.lane.b32.xlu1 %v417_v49, %s6970_s21  ;;  %v423_v55 = vpop.f32.mrb[6].mxu1 }
 0x301   :  { %v425_v56 = vpop.f32.mrb[7].mxu1 }
 0x302   :  { %v6277_v57 = vpack.c.bf16 %v425_v56, %v419_v51  ;;  %v6588_v59 = vpack.i.bf16 %v425_v56, %v419_v51 }
 0x304   :  { %525 = vrot.lane.b32.xlu0 %v405_v38, %s6971_s22  ;;  %6589 = vrot.lane.b32.xlu1 %v6588_v59, %s6970_s21 }
 0x305   :  { %5859 = vmatmul.mubr.msk.f32.vlgmr.msra.gmra.mrb[8].mxu0 %vm241_vm2, %v411_v40  ;;  %6279 = vmatprep.subr.msk.bf16.mxu1 %vm7198_vm4, %v6277_v57 }
 0x306   :  { %6282 = vmatpush3.bf16.xpose.msk.msra.mxu1 %vm7198_vm4, %v6277_v57 }
 0x308   :  { %6584 = vrot.lane.b32.xlu0 %v6578_v45, %s6972_s23  ;;  %523 = vrot.lane.b32.xlu1 %v423_v55, %s6970_s21 }
 0x30c   :  { %527 = vrot.lane.b32.xlu0 %v411_v40, %s6971_s22  ;;  %6594 = vrot.lane.b32.xlu1 %v6588_v59, %s6971_s22 }
 0x30d   :  { %5866 = vmatmul.mubr.msk.f32.vlgmr.msra.gmra.mrb[8].mxu1 %vm241_vm2, %v423_v55 }
 0x310   :  { %533 = vrot.lane.b32.xlu0 %v405_v38, %s6972_s23  ;;  %529 = vrot.lane.b32.xlu1 %v417_v49, %s6971_s22 }
 0x314   :  { %535 = vrot.lane.b32.xlu0 %v411_v40, %s6972_s23  ;;  %6599 = vrot.lane.b32.xlu1 %v6588_v59, %s6972_s23 }
 0x318   :  { %537 = vrot.lane.b32.xlu0 %v417_v49, %s6972_s23  ;;  %531 = vrot.lane.b32.xlu1 %v423_v55, %s6971_s22 }
 0x31c   :  { %539 = vrot.lane.b32.xlu1 %v423_v55, %s6972_s23 }
 0x367   :  { %v518_v60 = vpop.permute.xlu1 %517 }
 0x368   :  { %5872 = vmatprep.mubr.msk.f32.mxu0 %vm241_vm2, %v518_v60 }
 0x36e   :  { %v6580_v61 = vpop.permute.xlu1 %6579  ;;  %v6575_v62 = vpop.permute.xlu0 %6574 }
 0x36f   :  { %v6582_v63 = vunpack.i.h.bf16 %v6580_v61  ;;  %v6581_v0 = vunpack.i.l.bf16 %v6580_v61  ;;  %v6577_v1 = vunpack.i.h.bf16 %v6575_v62  ;;  %v6576_v2 = vunpack.i.l.bf16 %v6575_v62 }
 0x371   :  { %v6283_v3 = vpack.c.bf16 %v6577_v1, %v6576_v2  ;;  %v6295_v6 = vpack.c.bf16 %v6582_v63, %v6581_v0 }
 0x372   :  { %v522_v4 = vpop.permute.xlu1 %521  ;;  %v520_v5 = vpop.permute.xlu0 %519 }
 0x373   :  { %6285 = vmatprep.subr.msk.bf16.mxu0 %vm7198_vm4, %v6283_v3  ;;  %5879 = vmatprep.mubr.msk.f32.mxu1 %vm241_vm2, %v522_v4 }
 0x374   :  { %6288 = vmatpush3.bf16.xpose.msk.msra.mxu0 %vm7198_vm4, %v6283_v3 }
 0x375   :  { %6297 = vmatprep.subr.msk.bf16.mxu0 %vm7198_vm4, %v6295_v6 }
 0x376   :  { %v6590_v8 = vpop.permute.xlu1 %6589  ;;  %v526_v9 = vpop.permute.xlu0 %525 }
 0x377   :  { %v6592_v10 = vunpack.i.h.bf16 %v6590_v8  ;;  %v6591_v11 = vunpack.i.l.bf16 %v6590_v8 }
 0x379   :  { %v6289_v12 = vpack.c.bf16 %v6592_v10, %v6591_v11 }
 0x37a   :  { %v524_v13 = vpop.permute.xlu1 %523  ;;  %v6585_v14 = vpop.permute.xlu0 %6584 }
 0x37b   :  { %v6587_v15 = vunpack.i.h.bf16 %v6585_v14  ;;  %v6586_v16 = vunpack.i.l.bf16 %v6585_v14  ;;  %5873 = vmatmul.mubr.msk.f32.vlgmr.msra.gmra.mrb[10].mxu0 %vm241_vm2, %v520_v5  ;;  %6291 = vmatprep.subr.msk.bf16.mxu1 %vm7198_vm4, %v6289_v12 }
 0x37c   :  { %6294 = vmatpush3.bf16.xpose.msk.msra.mxu1 %vm7198_vm4, %v6289_v12  ;;  %6300 = vmatpush3.bf16.xpose.msk.msra.mxu0 %vm7198_vm4, %v6295_v6 }
 0x37d   :  { %v6307_v17 = vpack.c.bf16 %v6587_v15, %v6586_v16  ;;  %5886 = vmatprep.mubr.msk.f32.mxu0 %vm241_vm2, %v526_v9 }
 0x37e   :  { %v6595_v20 = vpop.permute.xlu1 %6594  ;;  %v528_v21 = vpop.permute.xlu0 %527 }
 0x37f   :  { %v6597_v22 = vunpack.i.h.bf16 %v6595_v20  ;;  %v6596_v25 = vunpack.i.l.bf16 %v6595_v20  ;;  %6309 = vmatprep.subr.msk.bf16.mxu0 %vm7198_vm4, %v6307_v17 }
 0x381   :  { %v6301_v26 = vpack.c.bf16 %v6597_v22, %v6596_v25 }
 0x382   :  { %v530_v27 = vpop.permute.xlu1 %529  ;;  %v534_v28 = vpop.permute.xlu0 %533 }
 0x383   :  { %5880 = vmatmul.mubr.msk.f32.vlgmr.msra.gmra.mrb[10].mxu1 %vm241_vm2, %v524_v13  ;;  %5887 = vmatmul.mubr.msk.f32.vlgmr.msra.gmra.mrb[12].mxu0 %vm241_vm2, %v528_v21 }
 0x384   :  { %6303 = vmatprep.subr.msk.bf16.mxu1 %vm7198_vm4, %v6301_v26  ;;  %5893 = vmatprep.mubr.msk.f32.mxu1 %vm241_vm2, %v530_v27 }
 0x385   :  { %6306 = vmatpush3.bf16.xpose.msk.msra.mxu1 %vm7198_vm4, %v6301_v26  ;;  %6312 = vmatpush3.bf16.xpose.msk.msra.mxu0 %vm7198_vm4, %v6307_v17 }
 0x386   :  { %5900 = vmatprep.mubr.msk.f32.mxu0 %vm241_vm2, %v534_v28  ;;  %6320 = vmatprep.subr.bf16.mxu0 %v7202_v47  ;;  %v6600_v29 = vpop.permute.xlu1 %6599  ;;  %v536_v31 = vpop.permute.xlu0 %535 }
 0x387   :  { %v6602_v32 = vunpack.i.h.bf16 %v6600_v29  ;;  %v6601_v30 = vunpack.i.l.bf16 %v6600_v29 }
 0x389   :  { %v6313_v33 = vpack.c.bf16 %v6602_v32, %v6601_v30 }
 0x38a   :  { %v532_v34 = vpop.permute.xlu1 %531  ;;  %v538_v35 = vpop.permute.xlu0 %537 }
 0x38b   :  { %6315 = vmatprep.subr.msk.bf16.mxu1 %vm7198_vm4, %v6313_v33 }
 0x38c   :  { %5894 = vmatmul.mubr.msk.f32.vlgmr.msra.gmra.mrb[12].mxu1 %vm241_vm2, %v532_v34  ;;  %5901 = vmatmul.mubr.msk.f32.vlgmr.msra.gmra.mrb[14].mxu0 %vm241_vm2, %v536_v31 }
 0x38d   :  { %6318 = vmatpush3.bf16.xpose.msk.msra.mxu1 %vm7198_vm4, %v6313_v33  ;;  %5907 = vmatprep.mubr.msk.f32.mxu1 %vm241_vm2, %v538_v35 }
 0x38e   :  { %6322 = vmatpush3.bf16.msra.mxu0 %v7202_v47  ;;  %v540_v37 = vpop.permute.xlu1 %539 }
 0x38f   :  { %6324 = vmatprep.subr.bf16.mxu0 %v7213_v53 }
 0x394   :  { %5908 = vmatmul.mubr.msk.f32.vlgmr.msra.gmra.mrb[14].mxu1 %vm241_vm2, %v540_v37 }
 0x3d8   :  { %v5860_v38 = vpop.f32.mrb[8].mxu0 }
 0x3d9   :  { %v7283_v39 = vsel %vm238_vm5, %v5860_v38, -1e+30  ;;  %v683_v40 = vpop.f32.mrb[9].mxu0 }
 0x3da   :  { %v1294_v41 = vsel %vm70_vm0, %v7283_v39, -inf  ;;  %v7289_v42 = vsel %vm238_vm5, %v683_v40, -1e+30 }
 0x3db   :  { %1295 = vmax.xlane.f32.xlu0 %v1294_v41  ;;  %v1291_v7 = vsel %vm70_vm0, %v7289_v42, -inf }
 0x3df   :  { %1292 = vmax.xlane.f32.xlu0 %v1291_v7 }
 0x3e0   :  { %v5867_v43 = vpop.f32.mrb[8].mxu1 }
 0x3e1   :  { %v7295_v44 = vsel %vm238_vm5, %v5867_v43, -1e+30  ;;  %v766_v45 = vpop.f32.mrb[9].mxu1 }
 0x3e2   :  { %v1300_v47 = vsel %vm70_vm0, %v7295_v44, -inf  ;;  %v7301_v49 = vsel %vm238_vm5, %v766_v45, -1e+30 }
 0x3e3   :  { %1301 = vmax.xlane.f32.xlu0 %v1300_v47  ;;  %v1297_v50 = vsel %vm70_vm0, %v7301_v49, -inf }
 0x3e7   :  { %1298 = vmax.xlane.f32.xlu0 %v1297_v50 }
 0x44e   :  { %v5874_v51 = vpop.f32.mrb[10].mxu0 }
 0x44f   :  { %v7307_v52 = vsel %vm238_vm5, %v5874_v51, -1e+30  ;;  %v849_v55 = vpop.f32.mrb[11].mxu0 }
 0x450   :  { %v7311_v56 = vsel %vm238_vm5, %v849_v55, -1e+30  ;;  %v1306_v57 = vsel %vm70_vm0, %v7307_v52, -inf }
 0x451   :  { %1307 = vmax.xlane.f32.xlu0 %v1306_v57  ;;  %v1303_v59 = vsel %vm70_vm0, %v7311_v56, -inf }
 0x452   :  { %1304 = vmax.xlane.f32.xlu1 %v1303_v59 }
 0x456   :  { %v5881_v60 = vpop.f32.mrb[10].mxu1  ;;  %v5888_v61 = vpop.f32.mrb[12].mxu0 }
 0x457   :  { %v7319_v62 = vsel %vm238_vm5, %v5881_v60, -1e+30  ;;  %v7323_v63 = vsel %vm238_vm5, %v5888_v61, -1e+30  ;;  %v932_v0 = vpop.f32.mrb[11].mxu1  ;;  %v1015_v1 = vpop.f32.mrb[13].mxu0 }
 0x458   :  { %v1312_v2 = vsel %vm70_vm0, %v7319_v62, -inf  ;;  %v1318_v3 = vsel %vm70_vm0, %v7323_v63, -inf  ;;  %v7331_v4 = vsel %vm238_vm5, %v932_v0, -1e+30  ;;  %v7335_v5 = vsel %vm238_vm5, %v1015_v1, -1e+30 }
 0x459   :  { %1313 = vmax.xlane.f32.xlu0 %v1312_v2  ;;  %1319 = vmax.xlane.f32.xlu1 %v1318_v3  ;;  %v1309_v6 = vsel %vm70_vm0, %v7331_v4, -inf  ;;  %v1315_v8 = vsel %vm70_vm0, %v7335_v5, -inf }
 0x45d   :  { %1310 = vmax.xlane.f32.xlu0 %v1309_v6  ;;  %1316 = vmax.xlane.f32.xlu1 %v1315_v8 }
 0x45f   :  { %v5895_v9 = vpop.f32.mrb[12].mxu1  ;;  %v5902_v10 = vpop.f32.mrb[14].mxu0 }
 0x460   :  { %v7343_v11 = vsel %vm238_vm5, %v5902_v10, -1e+30  ;;  %v1098_v12 = vpop.f32.mrb[13].mxu1  ;;  %v1181_v13 = vpop.f32.mrb[15].mxu0  ;;  %v7353_v16 = vsel %vm238_vm5, %v5895_v9, -1e+30 }
 0x461   :  { %v7347_v14 = vsel %vm238_vm5, %v1098_v12, -1e+30  ;;  %v1330_v15 = vsel %vm70_vm0, %v7343_v11, -inf  ;;  %v1324_v20 = vsel %vm70_vm0, %v7353_v16, -inf  ;;  %v7361_v21 = vsel %vm238_vm5, %v1181_v13, -1e+30 }
 0x462   :  { %1331 = vmax.xlane.f32.xlu1 %v1330_v15  ;;  %v1321_v17 = vsel %vm70_vm0, %v7347_v14, -inf  ;;  %v1327_v27 = vsel %vm70_vm0, %v7361_v21, -inf }
 0x463   :  { %1322 = vmax.xlane.f32.xlu0 %v1321_v17 }
 0x466   :  { %1325 = vmax.xlane.f32.xlu1 %v1324_v20 }
 0x467   :  { %v5909_v22 = vpop.f32.mrb[14].mxu1 }
 0x468   :  { %v1264_v25 = vpop.f32.mrb[15].mxu1  ;;  %v7371_v28 = vsel %vm238_vm5, %v5909_v22, -1e+30  ;;  %v1296_v32 = vpop.xlane.xlu0 %1295 }
 0x469   :  { %v7365_v26 = vsel %vm238_vm5, %v1264_v25, -1e+30  ;;  %v1336_v31 = vsel %vm70_vm0, %v7371_v28, -inf  ;;  %v1340_v33 = vsub.f32 %v7283_v39, %v1296_v32 }
 0x46a   :  { %1328 = vmax.xlane.f32.xlu1 %v1327_v27  ;;  %v1333_v29 = vsel %vm70_vm0, %v7365_v26, -inf }
 0x46b   :  { %1334 = vmax.xlane.f32.xlu0 %v1333_v29  ;;  %v1357_v35 = vmul.f32 1.442695, %v1340_v33 }
 0x46c   :  { %v1293_v30 = vpop.xlane.xlu0 %1292 }
 0x46d   :  { %v1339_v37 = vsub.f32 %v7289_v42, %v1293_v30  ;;  %6761 = vpow2.f32 %v1357_v35 }
 0x46e   :  { %1337 = vmax.xlane.f32.xlu1 %v1336_v31 }
 0x46f   :  { %v1355_v38 = vmul.f32 1.442695, %v1339_v37 }
 0x470   :  { %v1302_v34 = vpop.xlane.xlu0 %1301 }
 0x471   :  { %v1342_v40 = vsub.f32 %v7295_v44, %v1302_v34  ;;  %6763 = vpow2.f32 %v1355_v38 }
 0x473   :  { %v1361_v7 = vmul.f32 1.442695, %v1342_v40 }
 0x474   :  { %v1299_v41 = vpop.xlane.xlu0 %1298 }
 0x475   :  { %v1341_v43 = vsub.f32 %v7301_v49, %v1299_v41  ;;  %6765 = vpow2.f32 %v1361_v7 }
 0x477   :  { %v1359_v45 = vmul.f32 1.442695, %v1341_v43  ;;  %v7389_v47 = vpop.eup %6761 }
 0x479   :  { %6767 = vpow2.f32 %v1359_v45 }
 0x47b   :  { %v7393_v39 = vpop.eup %6763 }
 0x47c   :  { %v1387_v42 = vsel %vm70_vm0, %v7393_v39, 0.0 }
 0x47f   :  { %6609 = vrot.lane.b32.xlu1 %v7204_v48, %s6971_s22  ;;  %v7397_v44 = vpop.eup %6765 }
 0x480   :  { %v1396_v49 = vsel %vm70_vm0, %v7397_v44, 0.0 }
 0x481   :  { %6604 = vrot.lane.b32.xlu0 %v7204_v48, %s6970_s21 }
 0x483   :  { %6614 = vrot.lane.b32.xlu1 %v7215_v54, %s6970_s21  ;;  %v7401_v50 = vpop.eup %6767 }
 0x484   :  { %v1393_v51 = vsel %vm70_vm0, %v7401_v50, 0.0 }
 0x487   :  { %6619 = vrot.lane.b32.xlu1 %v7204_v48, %s6972_s23  ;;  %v1390_v48 = vsel %vm70_vm0, %v7389_v47, 0.0 }
 0x4a0   :  { %1391 = vadd.xlane.f32.xlu0 %v1390_v48 }
 0x4a4   :  { %1388 = vadd.xlane.f32.xlu0 %v1387_v42 }
 0x4a8   :  { %1397 = vadd.xlane.f32.xlu0 %v1396_v49 }
 0x4ac   :  { %1394 = vadd.xlane.f32.xlu0 %v1393_v51 }
 0x4de   :  { %v1308_v55 = vpop.xlane.xlu0 %1307 }
 0x4df   :  { %v1344_v57 = vsub.f32 %v7307_v52, %v1308_v55  ;;  %v1305_v59 = vpop.xlane.xlu1 %1304 }
 0x4e0   :  { %v1343_v60 = vsub.f32 %v7311_v56, %v1305_v59 }
 0x4e1   :  { %v1365_v61 = vmul.f32 1.442695, %v1344_v57 }
 0x4e2   :  { %v1363_v0 = vmul.f32 1.442695, %v1343_v60 }
 0x4e3   :  { %6769 = vpow2.f32 %v1365_v61 }
 0x4e4   :  { %6771 = vpow2.f32 %v1363_v0 }
 0x4e6   :  { %v1314_v1 = vpop.xlane.xlu0 %1313  ;;  %v1320_v2 = vpop.xlane.xlu1 %1319 }
 0x4e7   :  { %v1346_v3 = vsub.f32 %v7319_v62, %v1314_v1  ;;  %v1348_v6 = vsub.f32 %v7323_v63, %v1320_v2 }
 0x4e9   :  { %v1369_v8 = vmul.f32 1.442695, %v1346_v3  ;;  %v1373_v9 = vmul.f32 1.442695, %v1348_v6 }
 0x4ea   :  { %v1311_v10 = vpop.xlane.xlu0 %1310  ;;  %v1317_v12 = vpop.xlane.xlu1 %1316 }
 0x4eb   :  { %6773 = vpow2.f32 %v1369_v8  ;;  %v1345_v52 = vsub.f32 %v7331_v4, %v1311_v10  ;;  %v1347_v13 = vsub.f32 %v7335_v5, %v1317_v12 }
 0x4ec   :  { %6775 = vpow2.f32 %v1373_v9 }
 0x4ed   :  { %v7411_v56 = vpop.eup %6769  ;;  %v1367_v15 = vmul.f32 1.442695, %v1345_v52  ;;  %v1371_v17 = vmul.f32 1.442695, %v1347_v13 }
 0x4ee   :  { %v1402_v20 = vsel %vm70_vm0, %v7411_v56, 0.0  ;;  %v7415_v62 = vpop.eup %6771 }
 0x4ef   :  { %6777 = vpow2.f32 %v1367_v15  ;;  %v1332_v63 = vpop.xlane.xlu1 %1331  ;;  %1403 = vadd.xlane.f32.xlu1 %v1402_v20  ;;  %v1399_v27 = vsel %vm70_vm0, %v7415_v62, 0.0 }
 0x4f0   :  { %6779 = vpow2.f32 %v1371_v17  ;;  %v1352_v22 = vsub.f32 %v7343_v11, %v1332_v63  ;;  %v1323_v25 = vpop.xlane.xlu0 %1322 }
 0x4f1   :  { %v1349_v4 = vsub.f32 %v7347_v14, %v1323_v25 }
 0x4f2   :  { %v1381_v5 = vmul.f32 1.442695, %v1352_v22 }
 0x4f3   :  { %v1375_v29 = vmul.f32 1.442695, %v1349_v4  ;;  %v1326_v31 = vpop.xlane.xlu1 %1325  ;;  %1400 = vadd.xlane.f32.xlu1 %v1399_v27 }
 0x4f4   :  { %6781 = vpow2.f32 %v1381_v5  ;;  %v1350_v32 = vsub.f32 %v7353_v16, %v1326_v31 }
 0x4f5   :  { %v7422_v30 = vpop.eup %6773  ;;  %6783 = vpow2.f32 %v1375_v29 }
 0x4f6   :  { %v7424_v33 = vpop.eup %6775  ;;  %v1377_v34 = vmul.f32 1.442695, %v1350_v32  ;;  %v1408_v11 = vsel %vm70_vm0, %v7422_v30, 0.0 }
 0x4f7   :  { %v1329_v14 = vpop.xlane.xlu1 %1328  ;;  %1409 = vadd.xlane.f32.xlu0 %v1408_v11  ;;  %v1414_v35 = vsel %vm70_vm0, %v7424_v33, 0.0 }
 0x4f8   :  { %6785 = vpow2.f32 %v1377_v34  ;;  %v1351_v37 = vsub.f32 %v7361_v21, %v1329_v14  ;;  %v1335_v38 = vpop.xlane.xlu0 %1334  ;;  %1415 = vadd.xlane.f32.xlu1 %v1414_v35 }
 0x4f9   :  { %v7431_v16 = vpop.eup %6777  ;;  %v1353_v40 = vsub.f32 %v7365_v26, %v1335_v38 }
 0x4fa   :  { %v7434_v41 = vpop.eup %6779  ;;  %v1379_v7 = vmul.f32 1.442695, %v1351_v37  ;;  %v1405_v43 = vsel %vm70_vm0, %v7431_v16, 0.0 }
 0x4fb   :  { %v1383_v45 = vmul.f32 1.442695, %v1353_v40  ;;  %v1338_v48 = vpop.xlane.xlu1 %1337  ;;  %1406 = vadd.xlane.f32.xlu0 %v1405_v43  ;;  %v1411_v42 = vsel %vm70_vm0, %v7434_v41, 0.0 }
 0x4fc   :  { %6787 = vpow2.f32 %v1379_v7  ;;  %v1354_v21 = vsub.f32 %v7371_v28, %v1338_v48  ;;  %v6605_v49 = vpop.permute.xlu0 %6604  ;;  %1412 = vadd.xlane.f32.xlu1 %v1411_v42 }
 0x4fd   :  { %6789 = vpow2.f32 %v1383_v45  ;;  %v6607_v51 = vunpack.i.h.bf16 %v6605_v49  ;;  %v6606_v26 = vunpack.i.l.bf16 %v6605_v49 }
 0x4fe   :  { %v7441_v55 = vpop.eup %6781  ;;  %v1385_v57 = vmul.f32 1.442695, %v1354_v21 }
 0x4ff   :  { %v7443_v59 = vpop.eup %6783  ;;  %v6610_v60 = vpop.permute.xlu1 %6609  ;;  %v1426_v61 = vsel %vm70_vm0, %v7441_v55, 0.0  ;;  %v6327_v0 = vpack.c.bf16 %v6607_v51, %v6606_v26 }
 0x500   :  { %6791 = vpow2.f32 %v1385_v57  ;;  %v6612_v1 = vunpack.i.h.bf16 %v6610_v60  ;;  %v6611_v2 = vunpack.i.l.bf16 %v6610_v60  ;;  %1427 = vadd.xlane.f32.xlu1 %v1426_v61  ;;  %v1417_v28 = vsel %vm70_vm0, %v7443_v59, 0.0 }
 0x501   :  { %1418 = vadd.xlane.f32.xlu0 %v1417_v28  ;;  %6328 = vmatprep.subr.bf16.mxu1 %v6327_v0 }
 0x502   :  { %v7449_v3 = vpop.eup %6785  ;;  %6330 = vmatpush3.bf16.msra.mxu1 %v6327_v0  ;;  %v7451_v6 = vpack.c.bf16 %v6612_v1, %v6611_v2 }
 0x503   :  { %v1420_v8 = vsel %vm70_vm0, %v7449_v3, 0.0  ;;  %v6615_v31 = vpop.permute.xlu1 %6614 }
 0x504   :  { %1421 = vadd.xlane.f32.xlu1 %v1420_v8  ;;  %6336 = vmatprep.subr.bf16.mxu1 %v7451_v6  ;;  %v6616_v37 = vunpack.i.l.bf16 %v6615_v31 }
 0x506   :  { %v7456_v9 = vpop.eup %6787 }
 0x507   :  { %v7458_v10 = vpop.eup %6789  ;;  %v1423_v12 = vsel %vm70_vm0, %v7456_v9, 0.0 }
 0x508   :  { %1424 = vadd.xlane.f32.xlu1 %v1423_v12  ;;  %v1429_v52 = vsel %vm70_vm0, %v7458_v10, 0.0 }
 0x509   :  { %1430 = vadd.xlane.f32.xlu0 %v1429_v52 }
 0x50a   :  { %v7464_v13 = vpop.eup %6791 }
 0x50b   :  { %v1432_v15 = vsel %vm70_vm0, %v7464_v13, 0.0 }
 0x50c   :  { %1433 = vadd.xlane.f32.xlu1 %v1432_v15 }
 0x51d   :  { %6629 = vrot.lane.b32.xlu1 %v7215_v54, %s6972_s23 }
 0x51f   :  { %6624 = vrot.lane.b32.xlu0 %v7215_v54, %s6971_s22  ;;  %v6617_v54 = vunpack.i.h.bf16 %v6615_v31 }
 0x521   :  { %v6331_v48 = vpack.c.bf16 %v6617_v54, %v6616_v37 }
 0x52d   :  { %v1392_v17 = vpop.xlane.xlu0 %1391 }
 0x52e   :  { %6793 = vrcp.f32 %v1392_v17 }
 0x531   :  { %v1389_v20 = vpop.xlane.xlu0 %1388 }
 0x532   :  { %6795 = vrcp.f32 %v1389_v20 }
 0x535   :  { %v1398_v63 = vpop.xlane.xlu0 %1397 }
 0x536   :  { %6797 = vrcp.f32 %v1398_v63 }
 0x538   :  { %v6794_v22 = vpop.eup %6793 }
 0x539   :  { %v1452_v25 = vmul.f32 %v6794_v22, %v1392_v17  ;;  %v1395_v4 = vpop.xlane.xlu0 %1394 }
 0x53a   :  { %6799 = vrcp.f32 %v1395_v4 }
 0x53b   :  { %v1468_v27 = vsub.f32 2.0, %v1452_v25 }
 0x53c   :  { %v6796_v5 = vpop.eup %6795 }
 0x53d   :  { %v1451_v29 = vmul.f32 %v6796_v5, %v1389_v20  ;;  %v1484_v11 = vmul.f32 %v6794_v22, %v1468_v27 }
 0x53f   :  { %v1467_v32 = vsub.f32 2.0, %v1451_v29  ;;  %v1500_v7 = vmul.f32 %v7389_v47, %v1484_v11  ;;  %v6620_v47 = vpop.permute.xlu1 %6619 }
 0x540   :  { %v6798_v34 = vpop.eup %6797  ;;  %v6622_v25 = vunpack.i.h.bf16 %v6620_v47 }
 0x541   :  { %v1483_v14 = vmul.f32 %v6796_v5, %v1467_v32  ;;  %v1454_v35 = vmul.f32 %v6798_v34, %v1398_v63 }
 0x543   :  { %v1499_v38 = vmul.f32 %v7393_v39, %v1483_v14  ;;  %v1470_v43 = vsub.f32 2.0, %v1454_v35 }
 0x544   :  { %v6800_v40 = vpop.eup %6799 }
 0x545   :  { %v1453_v45 = vmul.f32 %v6800_v40, %v1395_v4  ;;  %5914 = vmatprep.mubr.msk.f32.mxu0 %vm70_vm0, %v1499_v38  ;;  %v1486_v21 = vmul.f32 %v6798_v34, %v1470_v43  ;;  %v6621_v4 = vunpack.i.l.bf16 %v6620_v47 }
 0x546   :  { %5915 = vmatmul.mubr.msk.f32.vlgmr.msra.gmra.mrb[16].mxu0 %vm70_vm0, %v1500_v7 }
 0x547   :  { %v1469_v42 = vsub.f32 2.0, %v1453_v45  ;;  %6326 = vmatpush3.bf16.msra.mxu0 %v7213_v53  ;;  %v1502_v39 = vmul.f32 %v7397_v44, %v1486_v21  ;;  %v6343_v38 = vpack.c.bf16 %v6622_v25, %v6621_v4 }
 0x548   :  { %6332 = vmatprep.subr.bf16.mxu0 %v6331_v48 }
 0x549   :  { %v1485_v49 = vmul.f32 %v6800_v40, %v1469_v42 }
 0x54b   :  { %v1501_v51 = vmul.f32 %v7401_v50, %v1485_v49 }
 0x54d   :  { %5921 = vmatprep.mubr.msk.f32.mxu0 %vm70_vm0, %v1501_v51 }
 0x54e   :  { %5922 = vmatmul.mubr.msk.f32.vlgmr.msra.gmra.mrb[18].mxu0 %vm70_vm0, %v1502_v39 }
 0x54f   :  { %6334 = vmatpush3.bf16.msra.mxu0 %v6331_v48 }
 0x57c   :  { %v1404_v26 = vpop.xlane.xlu1 %1403 }
 0x57d   :  { %6801 = vrcp.f32 %v1404_v26 }
 0x580   :  { %v1401_v57 = vpop.xlane.xlu1 %1400 }
 0x581   :  { %6803 = vrcp.f32 %v1401_v57 }
 0x584   :  { %v1410_v60 = vpop.xlane.xlu0 %1409 }
 0x585   :  { %6805 = vrcp.f32 %v1410_v60  ;;  %v1416_v53 = vpop.xlane.xlu1 %1415 }
 0x586   :  { %6807 = vrcp.f32 %v1416_v53 }
 0x587   :  { %v6802_v61 = vpop.eup %6801 }
 0x588   :  { %v1456_v0 = vmul.f32 %v6802_v61, %v1404_v26  ;;  %v1407_v1 = vpop.xlane.xlu0 %1406 }
 0x589   :  { %6809 = vrcp.f32 %v1407_v1  ;;  %v1413_v50 = vpop.xlane.xlu1 %1412 }
 0x58a   :  { %6811 = vrcp.f32 %v1413_v50  ;;  %v1472_v2 = vsub.f32 2.0, %v1456_v0 }
 0x58b   :  { %v6804_v44 = vpop.eup %6803 }
 0x58c   :  { %v1455_v28 = vmul.f32 %v6804_v44, %v1401_v57  ;;  %v1488_v17 = vmul.f32 %v6802_v61, %v1472_v2 }
 0x58d   :  { %v1428_v8 = vpop.xlane.xlu1 %1427 }
 0x58e   :  { %v1471_v12 = vsub.f32 2.0, %v1455_v28  ;;  %6813 = vrcp.f32 %v1428_v8  ;;  %v1419_v52 = vpop.xlane.xlu0 %1418  ;;  %v1504_v32 = vmul.f32 %v7411_v56, %v1488_v17 }
 0x58f   :  { %v6806_v15 = vpop.eup %6805  ;;  %6815 = vrcp.f32 %v1419_v52 }
 0x590   :  { %v6808_v20 = vpop.eup %6807  ;;  %v1487_v63 = vmul.f32 %v6804_v44, %v1471_v12  ;;  %v1458_v22 = vmul.f32 %v6806_v15, %v1410_v60 }
 0x591   :  { %v1460_v5 = vmul.f32 %v6808_v20, %v1416_v53  ;;  %v1422_v27 = vpop.xlane.xlu1 %1421 }
 0x592   :  { %6817 = vrcp.f32 %v1422_v27  ;;  %v1503_v29 = vmul.f32 %v7415_v62, %v1487_v63  ;;  %v1474_v34 = vsub.f32 2.0, %v1458_v22 }
 0x593   :  { %v6810_v31 = vpop.eup %6809  ;;  %v1476_v14 = vsub.f32 2.0, %v1460_v5 }
 0x594   :  { %v6812_v11 = vpop.eup %6811  ;;  %v1457_v35 = vmul.f32 %v6810_v31, %v1407_v1  ;;  %5928 = vmatprep.mubr.msk.f32.mxu1 %vm70_vm0, %v1503_v29  ;;  %v1490_v62 = vmul.f32 %v6806_v15, %v1474_v34 }
 0x595   :  { %v1459_v54 = vmul.f32 %v6812_v11, %v1413_v50  ;;  %v1425_v37 = vpop.xlane.xlu1 %1424  ;;  %5929 = vmatmul.mubr.msk.f32.vlgmr.msra.gmra.mrb[16].mxu1 %vm70_vm0, %v1504_v32  ;;  %v1492_v45 = vmul.f32 %v6808_v20, %v1476_v14 }
 0x596   :  { %v1473_v40 = vsub.f32 2.0, %v1457_v35  ;;  %6819 = vrcp.f32 %v1425_v37  ;;  %v1431_v7 = vpop.xlane.xlu0 %1430  ;;  %6338 = vmatpush3.bf16.msra.mxu1 %v7451_v6  ;;  %v1506_v26 = vmul.f32 %v7422_v30, %v1490_v62 }
 0x597   :  { %v1475_v43 = vsub.f32 2.0, %v1459_v54  ;;  %6821 = vrcp.f32 %v1431_v7  ;;  %6344 = vmatprep.subr.bf16.mxu1 %v6343_v38  ;;  %v1508_v61 = vmul.f32 %v7424_v33, %v1492_v45 }
 0x598   :  { %v6814_v56 = vpop.eup %6813  ;;  %v1489_v48 = vmul.f32 %v6810_v31, %v1473_v40 }
 0x599   :  { %v6816_v42 = vpop.eup %6815  ;;  %v1491_v21 = vmul.f32 %v6812_v11, %v1475_v43  ;;  %v1434_v49 = vpop.xlane.xlu1 %1433  ;;  %v1464_v0 = vmul.f32 %v6814_v56, %v1428_v8  ;;  %v2229_v43 = vld [vmem:[%s8338_s7 + $0x20] sm:$0xff] }
 0x59a   :  { %v1461_v51 = vmul.f32 %v6816_v42, %v1419_v52  ;;  %6823 = vrcp.f32 %v1434_v49  ;;  %v6625_v39 = vpop.permute.xlu0 %6624  ;;  %v1505_v47 = vmul.f32 %v7431_v16, %v1489_v48  ;;  %v2231_v48 = vld [vmem:[%s8338_s7 + $0x30] sm:$0xff] }
 0x59b   :  { %v6627_v57 = vunpack.i.h.bf16 %v6625_v39  ;;  %v6626_v60 = vunpack.i.l.bf16 %v6625_v39  ;;  %v1507_v6 = vmul.f32 %v7434_v41, %v1491_v21  ;;  %v1480_v8 = vsub.f32 2.0, %v1464_v0  ;;  %v2238_v0 = vld [vmem:[%s8338_s7 + $0x68] sm:$0xff] }
 0x59c   :  { %v6818_v53 = vpop.eup %6817  ;;  %v1477_v1 = vsub.f32 2.0, %v1461_v51  ;;  %5935 = vmatprep.mubr.msk.f32.mxu0 %vm70_vm0, %v1505_v47  ;;  %v2234_v51 = vld [vmem:[%s8338_s7 + $0x48] sm:$0xff] }
 0x59d   :  { %v1462_v50 = vmul.f32 %v6818_v53, %v1422_v27  ;;  %v6339_v44 = vpack.c.bf16 %v6627_v57, %v6626_v60  ;;  %5942 = vmatprep.mubr.msk.f32.mxu1 %vm70_vm0, %v1507_v6  ;;  %v6630_v2 = vpop.permute.xlu1 %6629  ;;  %5936 = vmatmul.mubr.msk.f32.vlgmr.msra.gmra.mrb[20].mxu0 %vm70_vm0, %v1506_v26  ;;  %v1496_v5 = vmul.f32 %v6814_v56, %v1480_v8  ;;  %v2230_v56 = vld [vmem:[%s8338_s7 + $0x28] sm:$0xff]  ;;  %v2235_v60 = vld [vmem:[%s8338_s7 + $0x50] sm:$0xff]  ;;  %v2236_v6 = vld [vmem:[%s8338_s7 + $0x58] sm:$0xff] }
 0x59e   :  { %v1493_v16 = vmul.f32 %v6816_v42, %v1477_v1  ;;  %v6632_v30 = vunpack.i.h.bf16 %v6630_v2  ;;  %v6631_v28 = vunpack.i.l.bf16 %v6630_v2  ;;  %5943 = vmatmul.mubr.msk.f32.vlgmr.msra.gmra.mrb[18].mxu1 %vm70_vm0, %v1508_v61  ;;  %v6359_v45 = vpack.c.bf16 %v2230_v56, %v2229_v43  ;;  %v2232_v42 = vld [vmem:[%s8338_s7 + $0x38] sm:$0xff]  ;;  %v2237_v61 = vld [vmem:[%s8338_s7 + $0x60] sm:$0xff] }
 0x59f   :  { %v1478_v41 = vsub.f32 2.0, %v1462_v50  ;;  %6346 = vmatpush3.bf16.msra.mxu1 %v6343_v38  ;;  %6340 = vmatprep.subr.bf16.mxu0 %v6339_v44  ;;  %v1512_v11 = vmul.f32 %v7441_v55, %v1496_v5  ;;  %v2226_v55 = vld [vmem:[%s8338_s7 + $0x8] sm:$0xff]  ;;  %v6363_v21 = vpack.c.bf16 %v2232_v42, %v2231_v48  ;;  %v6375_v1 = vpack.c.bf16 %v2238_v0, %v2237_v61 }
 0x5a0   :  { %v6820_v33 = vpop.eup %6819  ;;  %v6347_v12 = vpack.c.bf16 %v6632_v30, %v6631_v28  ;;  %6342 = vmatpush3.bf16.msra.mxu0 %v6339_v44  ;;  %v1509_v52 = vmul.f32 %v7443_v59, %v1493_v16  ;;  %v2239_v28 = vld [vmem:[%s8338_s7 + $0x70] sm:$0xff] }
 0x5a1   :  { %v6822_v15 = vpop.eup %6821  ;;  %v1494_v17 = vmul.f32 %v6818_v53, %v1478_v41  ;;  %v1463_v20 = vmul.f32 %v6820_v33, %v1425_v37  ;;  %v2228_v37 = vld [vmem:[%s8338_s7 + $0x18] sm:$0xff]  ;;  %v6371_v53 = vpack.c.bf16 %v2236_v6, %v2235_v60  ;;  %v5446_v60 = vld [vmem:[%s8339_s8] ss:$0 sm:$0xff] }
 0x5a2   :  { %v1465_v63 = vmul.f32 %v6822_v15, %v1431_v7  ;;  %5949 = vmatprep.mubr.msk.f32.mxu0 %vm70_vm0, %v1509_v52  ;;  %6348 = vmatprep.subr.bf16.mxu0 %v6347_v12  ;;  %v2240_v41 = vld [vmem:[%s8338_s7 + $0x78] sm:$0xff] }
 0x5a3   :  { %v1510_v22 = vmul.f32 %v7449_v3, %v1494_v17  ;;  %v1479_v25 = vsub.f32 2.0, %v1463_v20  ;;  %v6379_v8 = vpack.c.bf16 %v2240_v41, %v2239_v28 }
 0x5a4   :  { %v6824_v4 = vpop.eup %6823  ;;  %v1481_v27 = vsub.f32 2.0, %v1465_v63 }
 0x5a5   :  { %v1495_v29 = vmul.f32 %v6820_v33, %v1479_v25  ;;  %v1466_v31 = vmul.f32 %v6824_v4, %v1434_v49  ;;  %5950 = vmatmul.mubr.msk.f32.vlgmr.msra.gmra.mrb[22].mxu0 %vm70_vm0, %v1510_v22  ;;  %v2233_v49 = vld [vmem:[%s8338_s7 + $0x40] sm:$0xff] }
 0x5a6   :  { %v1497_v32 = vmul.f32 %v6822_v15, %v1481_v27  ;;  %6350 = vmatpush3.bf16.msra.mxu0 %v6347_v12  ;;  %v6367_v39 = vpack.c.bf16 %v2234_v51, %v2233_v49 }
 0x5a7   :  { %v1511_v59 = vmul.f32 %v7456_v9, %v1495_v29  ;;  %v1482_v34 = vsub.f32 2.0, %v1466_v31  ;;  %v2225_v9 = vld [vmem:[%s8338_s7] sm:$0xff] }
 0x5a8   :  { %v1513_v14 = vmul.f32 %v7458_v10, %v1497_v32  ;;  %v2227_v10 = vld [vmem:[%s8338_s7 + $0x10] sm:$0xff]  ;;  %v6351_v54 = vpack.c.bf16 %v2226_v55, %v2225_v9 }
 0x5a9   :  { %v1498_v35 = vmul.f32 %v6824_v4, %v1482_v34  ;;  %5956 = vmatprep.mubr.msk.f32.mxu1 %vm70_vm0, %v1511_v59 }
 0x5aa   :  { %5957 = vmatmul.mubr.msk.f32.vlgmr.msra.gmra.mrb[20].mxu1 %vm70_vm0, %v1512_v11  ;;  %5963 = vmatprep.mubr.msk.f32.mxu0 %vm70_vm0, %v1513_v14 }
 0x5ab   :  { %v1514_v3 = vmul.f32 %v7464_v13, %v1498_v35  ;;  %v6355_v13 = vpack.c.bf16 %v2228_v37, %v2227_v10  ;;  %6352 = vmatprep.subr.bf16.mxu1 %v6351_v54 }
 0x5ac   :  { %6354 = vmatpush3.bf16.msra.mxu1 %v6351_v54 }
 0x5ad   :  { %5964 = vmatmul.mubr.msk.f32.vlgmr.msra.gmra.mrb[24].mxu0 %vm70_vm0, %v1514_v3  ;;  %6356 = vmatprep.subr.bf16.mxu1 %v6355_v13 }
 0x5b0   :  { %6358 = vmatpush3.bf16.msra.mxu1 %v6355_v13 }
 0x5b1   :  { %6360 = vmatprep.subr.bf16.mxu1 %v6359_v45 }
 0x5b4   :  { %6362 = vmatpush3.bf16.msra.mxu1 %v6359_v45 }
 0x5b5   :  { %6364 = vmatprep.subr.bf16.mxu1 %v6363_v21 }
 0x5b8   :  { %6366 = vmatpush3.bf16.msra.mxu1 %v6363_v21 }
 0x5b9   :  { %6368 = vmatprep.subr.bf16.mxu1 %v6367_v39 }
 0x5bc   :  { %6370 = vmatpush3.bf16.msra.mxu1 %v6367_v39 }
 0x5bd   :  { %6372 = vmatprep.subr.bf16.mxu1 %v6371_v53 }
 0x5c0   :  { %6374 = vmatpush3.bf16.msra.mxu1 %v6371_v53 }
 0x5c1   :  { %6376 = vmatprep.subr.bf16.mxu1 %v6375_v1 }
 0x5c4   :  { %6378 = vmatpush3.bf16.msra.mxu1 %v6375_v1 }
 0x5c5   :  { %6380 = vmatprep.subr.bf16.mxu1 %v6379_v8 }
 0x5c8   :  { %6382 = vmatpush3.bf16.msra.mxu1 %v6379_v8 }
 0x619   :  { %v7518_v38 = vpop.f32.mrb[16].mxu0 }
 0x61a   :  { %v7520_v40 = vpop.f32.mrb[17].mxu0 }
 0x621   :  { %v7522_v7 = vpop.f32.mrb[18].mxu0 }
 0x622   :  { %v7524_v62 = vpop.f32.mrb[19].mxu0 }
 0x668   :  { %v5930_v47 = vpop.f32.mrb[16].mxu1 }
 0x669   :  { %v1749_v26 = vpop.f32.mrb[17].mxu1 }
 0x66a   :  { %v6633_v57 = vpack.i.bf16 %v5930_v47, %v1749_v26 }
 0x66c   :  { %6634 = vrot.lane.b32.xlu0 %v6633_v57, %s6972_s23 }
 0x670   :  { %v5937_v50 = vpop.f32.mrb[20].mxu0 }
 0x671   :  { %v5944_v44 = vpop.f32.mrb[18].mxu1  ;;  %v1830_v2 = vpop.f32.mrb[21].mxu0 }
 0x672   :  { %v6648_v16 = vpack.i.bf16 %v5937_v50, %v1830_v2  ;;  %v1911_v30 = vpop.f32.mrb[19].mxu1 }
 0x673   :  { %v6638_v33 = vpack.i.bf16 %v5944_v44, %v1911_v30 }
 0x675   :  { %6639 = vrot.lane.b32.xlu1 %v6638_v33, %s6971_s22 }
 0x678   :  { %v5951_v12 = vpop.f32.mrb[22].mxu0 }
 0x679   :  { %v1992_v52 = vpop.f32.mrb[23].mxu0  ;;  %6649 = vrot.lane.b32.xlu1 %v6648_v16, %s6972_s23 }
 0x67a   :  { %v6653_v15 = vpack.i.bf16 %v5951_v12, %v1992_v52 }
 0x67d   :  { %v5958_v17 = vpop.f32.mrb[20].mxu1 }
 0x67e   :  { %v2073_v20 = vpop.f32.mrb[21].mxu1 }
 0x67f   :  { %v6643_v63 = vpack.i.bf16 %v5958_v17, %v2073_v20 }
 0x680   :  { %v5965_v22 = vpop.f32.mrb[24].mxu0 }
 0x681   :  { %v2154_v25 = vpop.f32.mrb[25].mxu0  ;;  %6644 = vrot.lane.b32.xlu0 %v6643_v63, %s6970_s21 }
 0x682   :  { %v6658_v4 = vpack.i.bf16 %v5965_v22, %v2154_v25 }
 0x684   :  { %6659 = vrot.lane.b32.xlu1 %v6658_v4, %s6970_s21 }
 0x685   :  { %6654 = vrot.lane.b32.xlu0 %v6653_v15, %s6971_s22 }
 0x6de   :  { %v6635_v27 = vpop.permute.xlu0 %6634 }
 0x6df   :  { %v6637_v29 = vunpack.i.h.bf16 %v6635_v27  ;;  %v6636_v31 = vunpack.i.l.bf16 %v6635_v27 }
 0x6e1   :  { %v2212_v14 = vsel %vm241_vm2, %v7518_v38, %v6637_v29  ;;  %v2211_v9 = vsel %vm241_vm2, %v7520_v40, %v6636_v31 }
 0x6e7   :  { %v6640_v5 = vpop.permute.xlu1 %6639 }
 0x6e8   :  { %v6642_v32 = vunpack.i.h.bf16 %v6640_v5  ;;  %v6641_v59 = vunpack.i.l.bf16 %v6640_v5 }
 0x6ea   :  { %v2216_v54 = vsel %vm2215_vm6, %v2211_v9, %v6641_v59  ;;  %v2217_v37 = vsel %vm2215_vm6, %v2212_v14, %v6642_v32 }
 0x6eb   :  { %v6650_v34 = vpop.permute.xlu1 %6649 }
 0x6ec   :  { %v6652_v55 = vunpack.i.h.bf16 %v6650_v34  ;;  %v6651_v10 = vunpack.i.l.bf16 %v6650_v34  ;;  %v2415_v34 = vld [vmem:[%s8342_s11] sm:$0xff] }
 0x6ee   :  { %v2213_v40 = vsel %vm241_vm2, %v7524_v62, %v6651_v10  ;;  %v2214_v49 = vsel %vm241_vm2, %v7522_v7, %v6652_v55 }
 0x6f3   :  { %v6645_v11 = vpop.permute.xlu0 %6644 }
 0x6f4   :  { %v6647_v35 = vunpack.i.h.bf16 %v6645_v11  ;;  %v6646_v3 = vunpack.i.l.bf16 %v6645_v11  ;;  %v2416_v11 = vld [vmem:[%s8342_s11 + $0x8] sm:$0xff] }
 0x6f5   :  { %v6383_v14 = vpack.c.bf16 %v2416_v11, %v2415_v34 }
 0x6f6   :  { %v6660_v13 = vpop.permute.xlu1 %6659  ;;  %v2221_v43 = vsel %vm2220_vm7, %v2216_v54, %v6646_v3  ;;  %v2222_v56 = vsel %vm2220_vm7, %v2217_v37, %v6647_v35  ;;  %v2417_v35 = vld [vmem:[%s8342_s11 + $0x10] sm:$0xff]  ;;  %v2418_v3 = vld [vmem:[%s8342_s11 + $0x18] sm:$0xff] }
 0x6f7   :  { %v6655_v45 = vpop.permute.xlu0 %6654  ;;  %5998 = vmatprep.mubr.f32.mxu1 %v2221_v43  ;;  %v6662_v42 = vunpack.i.h.bf16 %v6660_v13  ;;  %v6661_v21 = vunpack.i.l.bf16 %v6660_v13  ;;  %6384 = vmatprep.subr.bf16.mxu0 %v6383_v14  ;;  %v6387_v9 = vpack.c.bf16 %v2418_v3, %v2417_v35 }
 0x6f8   :  { %v6657_v48 = vunpack.i.h.bf16 %v6655_v45  ;;  %v6656_v38 = vunpack.i.l.bf16 %v6655_v45  ;;  %5999 = vmatmul.mubr.f32.vlgmr.msra.gmra.mrb[22].mxu1 %v2222_v56  ;;  %6386 = vmatpush3.bf16.msra.mxu0 %v6383_v14 }
 0x6f9   :  { %6388 = vmatprep.subr.bf16.mxu0 %v6387_v9 }
 0x6fa   :  { %v2218_v51 = vsel %vm2215_vm6, %v2213_v40, %v6656_v38  ;;  %v2219_v39 = vsel %vm2215_vm6, %v2214_v49, %v6657_v48  ;;  %v5447_v49 = vld [vmem:[%s8340_s9] ss:$0 sm:$0xff] }
 0x6fb   :  { %v2223_v47 = vsel %vm2220_vm7, %v2218_v51, %v6661_v21  ;;  %v2224_v26 = vsel %vm2220_vm7, %v2219_v39, %v6662_v42 }
 0x6fc   :  { %6001 = vmatprep.mubr.f32.mxu1 %v2223_v47  ;;  %6390 = vmatpush3.bf16.msra.mxu0 %v6387_v9 }
 0x6fd   :  { %6002 = vmatmul.mubr.f32.gmra.mrb[24].mxu1 %v2224_v26  ;;  %v5448_v26 = vld [vmem:[%s8341_s10] ss:$0 sm:$0xff] }
 0x7cb   :  { %v6000_v57 = vpop.f32.mrb[22].mxu1 }
 0x7cc   :  { %v2327_v62 = vadd.f32 %v6000_v57, %v7098_v19  ;;  %v2307_v6 = vpop.f32.mrb[23].mxu1 }
 0x7cd   :  { %v2326_v7 = vadd.f32 %v2307_v6, %v7096_v18 }
 0x7ce   :  { %v7589_v53 = vadd.f32 %v5446_v60, %v2327_v62 }
 0x7cf   :  { %v7591_v61 = vadd.f32 %v5446_v60, %v2326_v7 }
 0x7d0   :  { %v6003_v0 = vpop.f32.mrb[24].mxu1  ;;  %v2346_v1 = vsel %vm241_vm2, %v7589_v53, 0.0 }
 0x7d1   :  { %2347 = vadd.xlane.f32.xlu1 %v2346_v1  ;;  %v2317_v50 = vpop.f32.mrb[25].mxu1  ;;  %v2343_v44 = vsel %vm241_vm2, %v7591_v61, 0.0  ;;  %v2329_v2 = vadd.f32 %v6003_v0, %v7102_v23 }
 0x7d2   :  { %v2328_v19 = vadd.f32 %v2317_v50, %v7104_v24  ;;  %2344 = vadd.xlane.f32.xlu0 %v2343_v44 }
 0x7d3   :  { %v7601_v18 = vadd.f32 %v5446_v60, %v2329_v2 }
 0x7d4   :  { %v7599_v16 = vadd.f32 %v5446_v60, %v2328_v19 }
 0x7d5   :  { %v2352_v28 = vsel %vm241_vm2, %v7601_v18, 0.0 }
 0x7d6   :  { %v2349_v30 = vsel %vm241_vm2, %v7599_v16, 0.0 }
 0x7d7   :  { %2350 = vadd.xlane.f32.xlu0 %v2349_v30 }
 0x7db   :  { %2353 = vadd.xlane.f32.xlu0 %v2352_v28  ;;  %v2639_v28 = vld [vmem:[%s8344_s13] sm:$0xff] }
 0x85e   :  { %v2348_v41 = vpop.xlane.xlu1 %2347 }
 0x85f   :  { %v2356_v33 = vmul.f32 0.03125, %v2348_v41  ;;  %v2345_v8 = vpop.xlane.xlu0 %2344  ;;  %v2640_v41 = vld [vmem:[%s8344_s13 + $0x8] sm:$0xff] }
 0x860   :  { %v2355_v12 = vmul.f32 0.03125, %v2345_v8  ;;  %v2641_v8 = vld [vmem:[%s8344_s13 + $0x10] sm:$0xff] }
 0x861   :  { %v2360_v23 = vsub.f32 %v7589_v53, %v2356_v33  ;;  %v6391_v33 = vpack.c.bf16 %v2640_v41, %v2639_v28 }
 0x862   :  { %v2359_v24 = vsub.f32 %v7591_v61, %v2355_v12  ;;  %v2642_v12 = vld [vmem:[%s8344_s13 + $0x18] sm:$0xff] }
 0x863   :  { %v2364_v52 = vmul.f32 %v2360_v23, %v2360_v23  ;;  %6392 = vmatprep.subr.bf16.mxu0 %v6391_v33 }
 0x864   :  { %v2351_v15 = vpop.xlane.xlu0 %2350  ;;  %v2363_v17 = vmul.f32 %v2359_v24, %v2359_v24 }
 0x865   :  { %v2357_v20 = vmul.f32 0.03125, %v2351_v15  ;;  %v2370_v63 = vsel %vm241_vm2, %v2364_v52, 0.0  ;;  %v2644_v52 = vld [vmem:[%s8344_s13 + $0x28] sm:$0xff] }
 0x866   :  { %2371 = vadd.xlane.f32.xlu1 %v2370_v63  ;;  %v2367_v22 = vsel %vm241_vm2, %v2363_v17, 0.0  ;;  %v2645_v17 = vld [vmem:[%s8344_s13 + $0x30] sm:$0xff] }
 0x867   :  { %v2361_v25 = vsub.f32 %v7599_v16, %v2357_v20  ;;  %2368 = vadd.xlane.f32.xlu0 %v2367_v22  ;;  %v2646_v20 = vld [vmem:[%s8344_s13 + $0x38] sm:$0xff]  ;;  %v5449_v22 = vld [vmem:[%s8343_s12] ss:$0 sm:$0xff] }
 0x868   :  { %v2354_v4 = vpop.xlane.xlu0 %2353  ;;  %v6403_v63 = vpack.c.bf16 %v2646_v20, %v2645_v17 }
 0x869   :  { %v2358_v5 = vmul.f32 0.03125, %v2354_v4  ;;  %v2365_v27 = vmul.f32 %v2361_v25, %v2361_v25 }
 0x86b   :  { %v2362_v29 = vsub.f32 %v7601_v18, %v2358_v5  ;;  %v2373_v31 = vsel %vm241_vm2, %v2365_v27, 0.0 }
 0x86c   :  { %2374 = vadd.xlane.f32.xlu0 %v2373_v31 }
 0x86d   :  { %v2366_v32 = vmul.f32 %v2362_v29, %v2362_v29 }
 0x86f   :  { %v2376_v59 = vsel %vm241_vm2, %v2366_v32, 0.0 }
 0x870   :  { %2377 = vadd.xlane.f32.xlu1 %v2376_v59 }
 0x8f3   :  { %v2372_v55 = vpop.xlane.xlu1 %2371 }
 0x8f4   :  { %v2380_v10 = vmul.f32 0.03125, %v2372_v55  ;;  %v2369_v54 = vpop.xlane.xlu0 %2368 }
 0x8f5   :  { %v2379_v37 = vmul.f32 0.03125, %v2369_v54 }
 0x8f6   :  { %v2384_v13 = vadd.f32 1e-05, %v2380_v10 }
 0x8f7   :  { %v2383_v43 = vadd.f32 1e-05, %v2379_v37 }
 0x8f8   :  { %6825 = vrsqrt.f32 %v2384_v13 }
 0x8f9   :  { %6827 = vrsqrt.f32 %v2383_v43  ;;  %v2375_v56 = vpop.xlane.xlu0 %2374 }
 0x8fa   :  { %v2381_v45 = vmul.f32 0.03125, %v2375_v56 }
 0x8fc   :  { %v2385_v48 = vadd.f32 1e-05, %v2381_v45 }
 0x8fd   :  { %v2378_v38 = vpop.xlane.xlu1 %2377 }
 0x8fe   :  { %6829 = vrsqrt.f32 %v2385_v48  ;;  %v2382_v42 = vmul.f32 0.03125, %v2378_v38 }
 0x900   :  { %v2386_v21 = vadd.f32 1e-05, %v2382_v42 }
 0x902   :  { %v6826_v40 = vpop.eup %6825  ;;  %6831 = vrsqrt.f32 %v2386_v21 }
 0x903   :  { %v6828_v51 = vpop.eup %6827  ;;  %v2392_v39 = vmul.f32 %v6826_v40, %v2360_v23  ;;  %v6395_v23 = vpack.c.bf16 %v2642_v12, %v2641_v8 }
 0x904   :  { %v2391_v47 = vmul.f32 %v6828_v51, %v2359_v24  ;;  %v2643_v24 = vld [vmem:[%s8344_s13 + $0x20] sm:$0xff] }
 0x905   :  { %v2402_v57 = vmul.f32 %v5447_v49, %v2392_v39  ;;  %v6399_v15 = vpack.c.bf16 %v2644_v52, %v2643_v24 }
 0x906   :  { %v2401_v60 = vmul.f32 %v5447_v49, %v2391_v47 }
 0x907   :  { %v2412_v7 = vadd.f32 %v5448_v26, %v2402_v57 }
 0x908   :  { %v6830_v62 = vpop.eup %6829  ;;  %v2411_v6 = vadd.f32 %v5448_v26, %v2401_v60 }
 0x909   :  { %v2393_v0 = vmul.f32 %v6830_v62, %v2361_v25 }
 0x90a   :  { %6012 = vmatprep.mubr.msk.f32.mxu0 %vm241_vm2, %v2411_v6 }
 0x90b   :  { %6013 = vmatmul.mubr.msk.f32.vlgmr.msra.gmra.mrb[26].mxu0 %vm241_vm2, %v2412_v7  ;;  %v2403_v1 = vmul.f32 %v5447_v49, %v2393_v0 }
 0x90c   :  { %v6832_v50 = vpop.eup %6831  ;;  %6394 = vmatpush3.bf16.msra.mxu0 %v6391_v33 }
 0x90d   :  { %v2413_v44 = vadd.f32 %v5448_v26, %v2403_v1  ;;  %v2394_v2 = vmul.f32 %v6832_v50, %v2362_v29  ;;  %6396 = vmatprep.subr.bf16.mxu0 %v6395_v23 }
 0x90f   :  { %6015 = vmatprep.mubr.msk.f32.mxu0 %vm241_vm2, %v2413_v44  ;;  %v2404_v19 = vmul.f32 %v5447_v49, %v2394_v2 }
 0x910   :  { %6398 = vmatpush3.bf16.msra.mxu0 %v6395_v23 }
 0x911   :  { %v2414_v30 = vadd.f32 %v5448_v26, %v2404_v19  ;;  %6400 = vmatprep.subr.bf16.mxu0 %v6399_v15 }
 0x913   :  { %6016 = vmatmul.mubr.msk.f32.gmra.mrb[28].mxu0 %vm241_vm2, %v2414_v30 }
 0x914   :  { %6402 = vmatpush3.bf16.msra.mxu0 %v6399_v15 }
 0x915   :  { %6404 = vmatprep.subr.bf16.mxu0 %v6403_v63 }
 0x918   :  { %6406 = vmatpush3.bf16.msra.mxu0 %v6403_v63 }
 0x9de   :  { %v6014_v25 = vpop.f32.mrb[26].mxu0 }
 0x9df   :  { %v7664_v4 = vadd.f32 %v6014_v25, %v5449_v22  ;;  %v2504_v5 = vpop.f32.mrb[27].mxu0 }
 0x9e0   :  { %v7666_v27 = vadd.f32 %v5449_v22, %v2504_v5 }
 0x9e1   :  { %v7669_v29 = vmul.f32 0.70710677, %v7664_v4 }
 0x9e2   :  { %v7672_v31 = vmul.f32 0.70710677, %v7666_v27 }
 0x9e3   :  { %v2528_v32 = vand.u32 2147483647, %v7669_v29  ;;  %vm2616_vm8 = vcmp.lt.f32.partialorder %v7669_v29, 0.0 }
 0x9e4   :  { %v2527_v59 = vand.u32 2147483647, %v7672_v31  ;;  %vm2615_vm9 = vcmp.lt.f32.partialorder %v7672_v31, 0.0 }
 0x9e5   :  { %v2532_v34 = vmul.f32 0.3275911, %v2528_v32  ;;  %v2592_v49 = vsub.f32 0.0, %v2528_v32 }
 0x9e6   :  { %v2531_v11 = vmul.f32 0.3275911, %v2527_v59  ;;  %v6017_v14 = vpop.f32.mrb[28].mxu0  ;;  %v2591_v47 = vsub.f32 0.0, %v2527_v59 }
 0x9e7   :  { %v2536_v35 = vadd.f32 1.0, %v2532_v34  ;;  %v7676_v3 = vadd.f32 %v6017_v14, %v5449_v22  ;;  %v2514_v9 = vpop.f32.mrb[29].mxu0  ;;  %v2596_v60 = vmul.f32 %v2592_v49, %v2528_v32 }
 0x9e8   :  { %v2535_v55 = vadd.f32 1.0, %v2531_v11  ;;  %v7678_v10 = vadd.f32 %v5449_v22, %v2514_v9  ;;  %v2595_v7 = vmul.f32 %v2591_v47, %v2527_v59 }
 0x9e9   :  { %6833 = vrcp.f32 %v2536_v35  ;;  %v7681_v54 = vmul.f32 0.70710677, %v7676_v3  ;;  %v2601_v19 = vmul.f32 1.442695, %v2596_v60 }
 0x9ea   :  { %6835 = vrcp.f32 %v2535_v55  ;;  %v7684_v37 = vmul.f32 0.70710677, %v7678_v10  ;;  %v2599_v8 = vmul.f32 1.442695, %v2595_v7 }
 0x9eb   :  { %v2530_v13 = vand.u32 2147483647, %v7681_v54  ;;  %vm2618_vm10 = vcmp.lt.f32.partialorder %v7681_v54, 0.0  ;;  %v5462_v54 = vld [vmem:[%s8345_s14] ss:$0 sm:$0xff] }
 0x9ec   :  { %v2529_v43 = vand.u32 2147483647, %v7684_v37  ;;  %vm2617_vm11 = vcmp.lt.f32.partialorder %v7684_v37, 0.0 }
 0x9ed   :  { %v2534_v56 = vmul.f32 0.3275911, %v2530_v13  ;;  %v2594_v28 = vsub.f32 0.0, %v2530_v13 }
 0x9ee   :  { %v2533_v45 = vmul.f32 0.3275911, %v2529_v43  ;;  %v2593_v23 = vsub.f32 0.0, %v2529_v43 }
 0x9ef   :  { %v2538_v48 = vadd.f32 1.0, %v2534_v56  ;;  %v2598_v63 = vmul.f32 %v2594_v28, %v2530_v13 }
 0x9f0   :  { %v2537_v38 = vadd.f32 1.0, %v2533_v45  ;;  %v2597_v32 = vmul.f32 %v2593_v23, %v2529_v43 }
 0x9f1   :  { %6837 = vrcp.f32 %v2538_v48  ;;  %v2605_v9 = vmul.f32 1.442695, %v2598_v63 }
 0x9f2   :  { %6839 = vrcp.f32 %v2537_v38 }
 0x9f3   :  { %v6834_v42 = vpop.eup %6833  ;;  %6841 = vpow2.f32 %v2601_v19 }
 0x9f4   :  { %v6836_v21 = vpop.eup %6835  ;;  %v2544_v40 = vmul.f32 %v6834_v42, %v2536_v35  ;;  %6843 = vpow2.f32 %v2599_v8 }
 0x9f5   :  { %v2543_v51 = vmul.f32 %v6836_v21, %v2535_v55  ;;  %6845 = vpow2.f32 %v2605_v9 }
 0x9f6   :  { %v2548_v39 = vsub.f32 2.0, %v2544_v40 }
 0x9f7   :  { %v2547_v26 = vsub.f32 2.0, %v2543_v51 }
 0x9f8   :  { %v2552_v57 = vmul.f32 %v6834_v42, %v2548_v39 }
 0x9f9   :  { %v2551_v62 = vmul.f32 %v6836_v21, %v2547_v26 }
 0x9fa   :  { %v2556_v6 = vmul.f32 1.0614054, %v2552_v57 }
 0x9fb   :  { %v6838_v0 = vpop.eup %6837  ;;  %v2555_v1 = vmul.f32 1.0614054, %v2551_v62 }
 0x9fc   :  { %v6840_v50 = vpop.eup %6839  ;;  %v5455_v44 = vadd.f32 -1.4531521, %v2556_v6  ;;  %v2546_v2 = vmul.f32 %v6838_v0, %v2538_v48  ;;  %v2603_v48 = vmul.f32 1.442695, %v2597_v32 }
 0x9fd   :  { %v5454_v30 = vadd.f32 -1.4531521, %v2555_v1  ;;  %v2545_v41 = vmul.f32 %v6840_v50, %v2537_v38  ;;  %v6842_v43 = vpop.eup %6841 }
 0x9fe   :  { %v2564_v33 = vmul.f32 %v5455_v44, %v2552_v57  ;;  %v2550_v12 = vsub.f32 2.0, %v2546_v2  ;;  %6847 = vpow2.f32 %v2603_v48  ;;  %v6844_v60 = vpop.eup %6843 }
 0x9ff   :  { %v2563_v24 = vmul.f32 %v5454_v30, %v2551_v62  ;;  %v2549_v52 = vsub.f32 2.0, %v2545_v41  ;;  %v6846_v8 = vpop.eup %6845 }
 0xa00   :  { %v2568_v15 = vadd.f32 1.4214138, %v2564_v33  ;;  %v2554_v17 = vmul.f32 %v6838_v0, %v2550_v12 }
 0xa01   :  { %v2567_v20 = vadd.f32 1.4214138, %v2563_v24  ;;  %v2553_v22 = vmul.f32 %v6840_v50, %v2549_v52 }
 0xa02   :  { %v2572_v25 = vmul.f32 %v2568_v15, %v2552_v57  ;;  %v2558_v5 = vmul.f32 1.0614054, %v2554_v17  ;;  %v2627_v15 = vmul.f32 0.5, %v7666_v27 }
 0xa03   :  { %v2571_v59 = vmul.f32 %v2567_v20, %v2551_v62  ;;  %v2557_v34 = vmul.f32 1.0614054, %v2553_v22 }
 0xa04   :  { %v5459_v11 = vadd.f32 -0.28449672, %v2572_v25  ;;  %v5457_v14 = vadd.f32 -1.4531521, %v2558_v5  ;;  %v2628_v25 = vmul.f32 0.5, %v7664_v4  ;;  %v2629_v4 = vmul.f32 0.5, %v7678_v10 }
 0xa05   :  { %v5458_v35 = vadd.f32 -0.28449672, %v2571_v59  ;;  %v5456_v55 = vadd.f32 -1.4531521, %v2557_v34 }
 0xa06   :  { %v2580_v56 = vmul.f32 %v5459_v11, %v2552_v57  ;;  %v2566_v45 = vmul.f32 %v5457_v14, %v2554_v17 }
 0xa07   :  { %v2579_v38 = vmul.f32 %v5458_v35, %v2551_v62  ;;  %v2565_v42 = vmul.f32 %v5456_v55, %v2553_v22  ;;  %v2630_v35 = vmul.f32 0.5, %v7676_v3 }
 0xa08   :  { %v2584_v21 = vadd.f32 0.2548296, %v2580_v56  ;;  %v2570_v40 = vadd.f32 1.4214138, %v2566_v45  ;;  %v6848_v52 = vpop.eup %6847 }
 0xa09   :  { %v2583_v13 = vadd.f32 0.2548296, %v2579_v38  ;;  %v2569_v49 = vadd.f32 1.4214138, %v2565_v42 }
 0xa0a   :  { %v2588_v51 = vmul.f32 %v2584_v21, %v2552_v57  ;;  %v2574_v39 = vmul.f32 %v2570_v40, %v2554_v17 }
 0xa0b   :  { %v2587_v47 = vmul.f32 %v2583_v13, %v2551_v62  ;;  %v2573_v26 = vmul.f32 %v2569_v49, %v2553_v22 }
 0xa0c   :  { %v2608_v6 = vmul.f32 %v6842_v43, %v2588_v51  ;;  %v5461_v7 = vadd.f32 -0.28449672, %v2574_v39 }
 0xa0d   :  { %v2607_v0 = vmul.f32 %v6844_v60, %v2587_v47  ;;  %v5460_v1 = vadd.f32 -0.28449672, %v2573_v26 }
 0xa0e   :  { %v2612_v50 = vsub.f32 1.0, %v2608_v6  ;;  %v2582_v44 = vmul.f32 %v5461_v7, %v2554_v17 }
 0xa0f   :  { %v2611_v2 = vsub.f32 1.0, %v2607_v0  ;;  %v2581_v19 = vmul.f32 %v5460_v1, %v2553_v22 }
 0xa10   :  { %v2620_v30 = vsub.f32 0.0, %v2612_v50  ;;  %v2586_v28 = vadd.f32 0.2548296, %v2582_v44 }
 0xa11   :  { %v2619_v41 = vsub.f32 0.0, %v2611_v2  ;;  %v2585_v57 = vadd.f32 0.2548296, %v2581_v19 }
 0xa12   :  { %v2624_v33 = vsel %vm2616_vm8, %v2620_v30, %v2612_v50  ;;  %v2590_v62 = vmul.f32 %v2586_v28, %v2554_v17 }
 0xa13   :  { %v2632_v12 = vadd.f32 1.0, %v2624_v33  ;;  %v2623_v23 = vsel %vm2615_vm9, %v2619_v41, %v2611_v2  ;;  %v2589_v24 = vmul.f32 %v2585_v57, %v2553_v22 }
 0xa14   :  { %v2631_v20 = vadd.f32 1.0, %v2623_v23  ;;  %v2610_v63 = vmul.f32 %v6846_v8, %v2590_v62  ;;  %v5472_v8 = vld [vmem:[%s8337_s6 + $0x68] sm:$0xff] }
 0xa15   :  { %v2609_v5 = vmul.f32 %v6848_v52, %v2589_v24  ;;  %v2636_v59 = vmul.f32 %v2632_v12, %v2628_v25  ;;  %v5475_v12 = vld [vmem:[%s8337_s6 + $0x80] sm:$0xff]  ;;  %v5474_v52 = vld [vmem:[%s8337_s6 + $0x78] sm:$0xff] }
 0xa16   :  { %v2635_v32 = vmul.f32 %v2631_v20, %v2627_v15  ;;  %v2614_v29 = vsub.f32 1.0, %v2610_v63  ;;  %v6407_v23 = vpack.c.bf16 %v5475_v12, %v5472_v8  ;;  %v5471_v24 = vld [vmem:[%s8337_s6 + $0x60] sm:$0xff]  ;;  %v5473_v15 = vld [vmem:[%s8337_s6 + $0x70] sm:$0xff]  ;;  %v5476_v63 = vld [vmem:[%s8337_s6 + $0x88] sm:$0xff] }
 0xa17   :  { %v2613_v34 = vsub.f32 1.0, %v2609_v5  ;;  %v6409_v20 = vpack.c.bf16 %v5474_v52, %v5471_v24  ;;  %v6415_v25 = vpack.c.bf16 %v5476_v63, %v5473_v15  ;;  %v5478_v5 = vld [vmem:[%s8337_s6 + $0x98] sm:$0xff] }
 0xa18   :  { %v2622_v11 = vsub.f32 0.0, %v2614_v29  ;;  %6034 = vmatprep.mubr.msk.f32.mxu0 %vm2215_vm6, %v2635_v32  ;;  %6408 = vmatprep.subr.bf16.mxu0 %v6407_v23  ;;  %v5481_v32 = vld [vmem:[%s8337_s6 + $0xb0] sm:$0xff] }
 0xa19   :  { %v2621_v31 = vsub.f32 0.0, %v2613_v34  ;;  %6035 = vmatmul.mubr.msk.f32.vlgmr.msra.gmra.mrb[30].mxu0 %vm2215_vm6, %v2636_v59  ;;  %6416 = vmatprep.subr.bf16.mxu1 %v6415_v25  ;;  %v5477_v59 = vld [vmem:[%s8337_s6 + $0x90] sm:$0xff] }
 0xa1a   :  { %v2626_v17 = vsel %vm2618_vm10, %v2622_v11, %v2614_v29  ;;  %6410 = vmatpush1.bf16.msra.mxu0 %v6409_v20  ;;  %v6411_v29 = vpack.c.bf16 %v5481_v32, %v5478_v5  ;;  %v5479_v11 = vld [vmem:[%s8337_s6 + $0xa0] sm:$0xff]  ;;  %6418 = vmatpush3.bf16.msra.mxu1 %v6415_v25 }
 0xa1b   :  { %v2634_v27 = vadd.f32 1.0, %v2626_v17  ;;  %v2625_v22 = vsel %vm2617_vm11, %v2621_v31, %v2613_v34  ;;  %v5480_v34 = vld [vmem:[%s8337_s6 + $0xa8] sm:$0xff]  ;;  %v5482_v17 = vld [vmem:[%s8337_s6 + $0xb8] sm:$0xff] }
 0xa1c   :  { %v2633_v14 = vadd.f32 1.0, %v2625_v22  ;;  %v6413_v31 = vpack.c.bf16 %v5480_v34, %v5477_v59  ;;  %6412 = vmatprep.subr.bf16.mxu0 %v6411_v29 }
 0xa1d   :  { %v2638_v55 = vmul.f32 %v2634_v27, %v2630_v35  ;;  %v6419_v27 = vpack.c.bf16 %v5482_v17, %v5479_v11 }
 0xa1e   :  { %v2637_v9 = vmul.f32 %v2633_v14, %v2629_v4  ;;  %6414 = vmatpush1.bf16.msra.mxu0 %v6413_v31 }
 0xa1f   :  { %6420 = vmatprep.subr.bf16.mxu1 %v6419_v27 }
 0xa20   :  { %6037 = vmatprep.mubr.msk.f32.mxu0 %vm2215_vm6, %v2637_v9  ;;  %6422 = vmatpush3.bf16.msra.mxu1 %v6419_v27 }
 0xa21   :  { %6038 = vmatmul.mubr.msk.f32.gmra.mrb[32].mxu0 %vm2215_vm6, %v2638_v55 }
 0xa22   :  { %2920 = vmatprep.mubr.f32.mxu0 %v6969_v58 }
 0xaec   :  { %v6036_v37 = vpop.f32.mrb[30].mxu0 }
 0xaed   :  { %v2738_v56 = vadd.f32 %v6036_v37, %v5462_v54  ;;  %v2732_v45 = vpop.f32.mrb[31].mxu0 }
 0xaee   :  { %v2733_v48 = vadd.f32 %v5462_v54, %v2732_v45 }
 0xaef   :  { %v7705_v10 = vadd.f32 %v2738_v56, %v7589_v53 }
 0xaf0   :  { %v7708_v3 = vadd.f32 %v2733_v48, %v7591_v61 }
 0xaf1   :  { %v2762_v38 = vsel %vm241_vm2, %v7705_v10, 0.0 }
 0xaf2   :  { %2763 = vadd.xlane.f32.xlu1 %v2762_v38  ;;  %v2759_v42 = vsel %vm241_vm2, %v7708_v3, 0.0 }
 0xaf3   :  { %2760 = vadd.xlane.f32.xlu0 %v2759_v42 }
 0xaf4   :  { %v6039_v21 = vpop.f32.mrb[32].mxu0 }
 0xaf5   :  { %v2748_v40 = vadd.f32 %v6039_v21, %v5462_v54  ;;  %v2742_v13 = vpop.f32.mrb[33].mxu0  ;;  %v5469_v21 = vld [vmem:[%s8335_s4 + $0x1] ss:$0 sm:$0xff] }
 0xaf6   :  { %v2743_v49 = vadd.f32 %v5462_v54, %v2742_v13 }
 0xaf7   :  { %v7715_v51 = vadd.f32 %v2748_v40, %v7601_v18 }
 0xaf8   :  { %v7718_v53 = vadd.f32 %v2743_v49, %v7599_v16 }
 0xaf9   :  { %v2768_v61 = vsel %vm241_vm2, %v7715_v51, 0.0 }
 0xafa   :  { %2769 = vadd.xlane.f32.xlu1 %v2768_v61  ;;  %v2765_v39 = vsel %vm241_vm2, %v7718_v53, 0.0  ;;  %v5470_v61 = vld [vmem:[%s8336_s5 + $0x1] ss:$0 sm:$0xff] }
 0xafb   :  { %2766 = vadd.xlane.f32.xlu0 %v2765_v39 }
 0xb7f   :  { %v2764_v43 = vpop.xlane.xlu1 %2763 }
 0xb80   :  { %v2772_v47 = vmul.f32 0.03125, %v2764_v43  ;;  %v2761_v26 = vpop.xlane.xlu0 %2760 }
 0xb81   :  { %v2771_v60 = vmul.f32 0.03125, %v2761_v26 }
 0xb82   :  { %v7725_v6 = vsub.f32 %v7705_v10, %v2772_v47 }
 0xb83   :  { %v7728_v18 = vsub.f32 %v7708_v3, %v2771_v60 }
 0xb84   :  { %v2780_v16 = vmul.f32 %v7725_v6, %v7725_v6 }
 0xb85   :  { %v2779_v7 = vmul.f32 %v7728_v18, %v7728_v18 }
 0xb86   :  { %v2786_v0 = vsel %vm241_vm2, %v2780_v16, 0.0 }
 0xb87   :  { %2787 = vadd.xlane.f32.xlu1 %v2786_v0  ;;  %v2770_v1 = vpop.xlane.xlu1 %2769  ;;  %v2783_v50 = vsel %vm241_vm2, %v2779_v7, 0.0 }
 0xb88   :  { %v2774_v44 = vmul.f32 0.03125, %v2770_v1  ;;  %2784 = vadd.xlane.f32.xlu0 %v2783_v50  ;;  %v2767_v2 = vpop.xlane.xlu0 %2766 }
 0xb89   :  { %v2773_v19 = vmul.f32 0.03125, %v2767_v2 }
 0xb8a   :  { %v7737_v30 = vsub.f32 %v7715_v51, %v2774_v44 }
 0xb8b   :  { %v7740_v28 = vsub.f32 %v7718_v53, %v2773_v19 }
 0xb8c   :  { %v2782_v41 = vmul.f32 %v7737_v30, %v7737_v30 }
 0xb8d   :  { %v2781_v57 = vmul.f32 %v7740_v28, %v7740_v28 }
 0xb8e   :  { %v2792_v33 = vsel %vm241_vm2, %v2782_v41, 0.0 }
 0xb8f   :  { %2793 = vadd.xlane.f32.xlu1 %v2792_v33  ;;  %v2789_v62 = vsel %vm241_vm2, %v2781_v57, 0.0 }
 0xb90   :  { %2790 = vadd.xlane.f32.xlu0 %v2789_v62 }
 0xc14   :  { %v2788_v22 = vpop.xlane.xlu1 %2787 }
 0xc15   :  { %v2796_v4 = vmul.f32 0.03125, %v2788_v22  ;;  %v2785_v14 = vpop.xlane.xlu0 %2784 }
 0xc16   :  { %v2795_v35 = vmul.f32 0.03125, %v2785_v14 }
 0xc17   :  { %v2800_v9 = vadd.f32 1e-05, %v2796_v4 }
 0xc18   :  { %v2799_v55 = vadd.f32 1e-05, %v2795_v35 }
 0xc19   :  { %6849 = vrsqrt.f32 %v2800_v9 }
 0xc1a   :  { %6851 = vrsqrt.f32 %v2799_v55 }
 0xc1c   :  { %v2794_v54 = vpop.xlane.xlu1 %2793 }
 0xc1d   :  { %v2798_v37 = vmul.f32 0.03125, %v2794_v54  ;;  %v2791_v56 = vpop.xlane.xlu0 %2790 }
 0xc1e   :  { %v2797_v45 = vmul.f32 0.03125, %v2791_v56 }
 0xc1f   :  { %v2802_v48 = vadd.f32 1e-05, %v2798_v37 }
 0xc20   :  { %v2801_v38 = vadd.f32 1e-05, %v2797_v45 }
 0xc21   :  { %6853 = vrsqrt.f32 %v2802_v48 }
 0xc22   :  { %6855 = vrsqrt.f32 %v2801_v38 }
 0xc23   :  { %v6850_v42 = vpop.eup %6849 }
 0xc24   :  { %v6852_v40 = vpop.eup %6851  ;;  %v2808_v13 = vmul.f32 %v6850_v42, %v7725_v6 }
 0xc25   :  { %v2807_v49 = vmul.f32 %v6852_v40, %v7728_v18 }
 0xc26   :  { %v2818_v39 = vmul.f32 %v5469_v21, %v2808_v13 }
 0xc27   :  { %v2817_v43 = vmul.f32 %v5469_v21, %v2807_v49 }
 0xc28   :  { %v2828_v26 = vadd.f32 %v5470_v61, %v2818_v39 }
 0xc29   :  { %v2827_v47 = vadd.f32 %v5470_v61, %v2817_v43 }
 0xc2b   :  { %v6854_v60 = vpop.eup %6853  ;;  %5483 = vmatmul.mubr.msk.f32.vlgmr.msra.gmra.mrb[34].mxu0 %vm241_vm2, %v2827_v47  ;;  %6048 = vmatprep.mubr.msk.f32.mxu1 %vm241_vm2, %v2827_v47 }
 0xc2c   :  { %v6856_v16 = vpop.eup %6855  ;;  %6049 = vmatmul.mubr.msk.f32.vlgmr.msra.gmra.mrb[26].mxu1 %vm241_vm2, %v2828_v26  ;;  %2926 = vmatprep.mubr.f32.mxu0 %v6969_v58  ;;  %v2810_v6 = vmul.f32 %v6854_v60, %v7737_v30 }
 0xc2d   :  { %v2809_v18 = vmul.f32 %v6856_v16, %v7740_v28 }
 0xc2e   :  { %v2820_v7 = vmul.f32 %v5469_v21, %v2810_v6 }
 0xc2f   :  { %5484 = vmatmul.mubr.msk.f32.gmra.mrb[36].mxu0 %vm241_vm2, %v2828_v26  ;;  %v2819_v0 = vmul.f32 %v5469_v21, %v2809_v18 }
 0xc30   :  { %2932 = vmatprep.mubr.f32.mxu0 %v6969_v58  ;;  %v2830_v50 = vadd.f32 %v5470_v61, %v2820_v7 }
 0xc31   :  { %v2829_v1 = vadd.f32 %v5470_v61, %v2819_v0 }
 0xc33   :  { %5485 = vmatmul.mubr.msk.f32.gmra.mrb[38].mxu0 %vm241_vm2, %v2829_v1  ;;  %6051 = vmatprep.mubr.msk.f32.mxu1 %vm241_vm2, %v2829_v1 }
 0xc34   :  { %6052 = vmatmul.mubr.msk.f32.gmra.mrb[28].mxu1 %vm241_vm2, %v2830_v50  ;;  %2938 = vmatprep.mubr.f32.mxu0 %v6969_v58 }
 0xc37   :  { %5486 = vmatmul.mubr.msk.f32.gmra.mrb[40].mxu0 %vm241_vm2, %v2830_v50 }
 0xcfe   :  { %v2922_v44 = vpop.f32.mrb[34].mxu0 }
 0xcff   :  { %v6050_v2 = vpop.f32.mrb[26].mxu1  ;;  %3034 = vrot.lane.b32.xlu1 %v2922_v44, %s6970_s21  ;;  %v2924_v19 = vpop.f32.mrb[35].mxu0  ;;  %6058 = vmatprep.mubr.msk.f32.mxu1 %vm241_vm2, %v2922_v44 }
 0xd00   :  { %v3011_v30 = vpop.f32.mrb[27].mxu1 }
 0xd01   :  { %v7807_v28 = vpack.i.bf16 %v6050_v2, %v3011_v30  ;;  %v7809_v41 = vpack.c.bf16 %v6050_v2, %v3011_v30 }
 0xd02   :  { %v2928_v57 = vpop.f32.mrb[36].mxu0 }
 0xd03   :  { %v2930_v33 = vpop.f32.mrb[37].mxu0 }
 0xd04   :  { %v6423_v62 = vpack.c.bf16 %v2930_v33, %v2924_v19  ;;  %v6668_v8 = vpack.i.bf16 %v2930_v33, %v2924_v19 }
 0xd06   :  { %6669 = vrot.lane.b32.xlu1 %v6668_v8, %s6971_s22  ;;  %6664 = vrot.lane.b32.xlu0 %v6668_v8, %s6970_s21  ;;  %v2934_v12 = vpop.f32.mrb[38].mxu0 }
 0xd07   :  { %6425 = vmatprep.subr.msk.bf16.mxu1 %vm7198_vm4, %v6423_v62  ;;  %v2936_v23 = vpop.f32.mrb[39].mxu0  ;;  %v6053_v24 = vpop.f32.mrb[28].mxu1  ;;  %6065 = vmatprep.mubr.msk.f32.mxu0 %vm241_vm2, %v2934_v12 }
 0xd08   :  { %6428 = vmatpush3.bf16.xpose.msk.msra.mxu1 %vm7198_vm4, %v6423_v62  ;;  %v3021_v52 = vpop.f32.mrb[29].mxu1 }
 0xd09   :  { %v7818_v15 = vpack.i.bf16 %v6053_v24, %v3021_v52  ;;  %v7820_v20 = vpack.c.bf16 %v6053_v24, %v3021_v52 }
 0xd0a   :  { %3036 = vrot.lane.b32.xlu0 %v2928_v57, %s6970_s21  ;;  %v2940_v63 = vpop.f32.mrb[40].mxu0 }
 0xd0b   :  { %v2942_v25 = vpop.f32.mrb[41].mxu0 }
 0xd0c   :  { %v6688_v5 = vpack.i.bf16 %v2942_v25, %v2936_v23  ;;  %v6429_v32 = vpack.c.bf16 %v2942_v25, %v2936_v23 }
 0xd0e   :  { %3038 = vrot.lane.b32.xlu0 %v2934_v12, %s6970_s21  ;;  %6674 = vrot.lane.b32.xlu1 %v6688_v5, %s6970_s21 }
 0xd0f   :  { %6059 = vmatmul.mubr.msk.f32.vlgmr.msra.gmra.mrb[30].mxu1 %vm241_vm2, %v2928_v57  ;;  %6431 = vmatprep.subr.msk.bf16.mxu0 %vm7198_vm4, %v6429_v32 }
 0xd10   :  { %6434 = vmatpush3.bf16.xpose.msk.msra.mxu0 %vm7198_vm4, %v6429_v32 }
 0xd12   :  { %6679 = vrot.lane.b32.xlu0 %v6668_v8, %s6972_s23  ;;  %3040 = vrot.lane.b32.xlu1 %v2940_v63, %s6970_s21 }
 0xd16   :  { %3044 = vrot.lane.b32.xlu0 %v2928_v57, %s6971_s22  ;;  %6684 = vrot.lane.b32.xlu1 %v6688_v5, %s6971_s22 }
 0xd17   :  { %6066 = vmatmul.mubr.msk.f32.vlgmr.msra.gmra.mrb[42].mxu0 %vm241_vm2, %v2940_v63 }
 0xd1a   :  { %3046 = vrot.lane.b32.xlu0 %v2934_v12, %s6971_s22  ;;  %3042 = vrot.lane.b32.xlu1 %v2922_v44, %s6971_s22 }
 0xd1e   :  { %3050 = vrot.lane.b32.xlu0 %v2922_v44, %s6972_s23  ;;  %6689 = vrot.lane.b32.xlu1 %v6688_v5, %s6972_s23 }
 0xd22   :  { %3054 = vrot.lane.b32.xlu0 %v2934_v12, %s6972_s23  ;;  %3048 = vrot.lane.b32.xlu1 %v2940_v63, %s6971_s22 }
 0xd26   :  { %3052 = vrot.lane.b32.xlu1 %v2928_v57, %s6972_s23 }
 0xd2a   :  { %3056 = vrot.lane.b32.xlu1 %v2940_v63, %s6972_s23 }
 0xd71   :  { %v3035_v29 = vpop.permute.xlu1 %3034 }
 0xd72   :  { %6072 = vmatprep.mubr.msk.f32.mxu1 %vm241_vm2, %v3035_v29 }
 0xd78   :  { %v6670_v59 = vpop.permute.xlu1 %6669  ;;  %v6665_v34 = vpop.permute.xlu0 %6664 }
 0xd79   :  { %v6672_v11 = vunpack.i.h.bf16 %v6670_v59  ;;  %v6671_v31 = vunpack.i.l.bf16 %v6670_v59  ;;  %v6667_v17 = vunpack.i.h.bf16 %v6665_v34  ;;  %v6666_v27 = vunpack.i.l.bf16 %v6665_v34 }
 0xd7b   :  { %v6435_v22 = vpack.c.bf16 %v6667_v17, %v6666_v27  ;;  %v6447_v14 = vpack.c.bf16 %v6672_v11, %v6671_v31 }
 0xd7c   :  { %v3037_v4 = vpop.permute.xlu0 %3036 }
 0xd7d   :  { %6437 = vmatprep.subr.msk.bf16.mxu1 %vm7198_vm4, %v6435_v22 }
 0xd7e   :  { %6440 = vmatpush3.bf16.xpose.msk.msra.mxu1 %vm7198_vm4, %v6435_v22 }
 0xd7f   :  { %6449 = vmatprep.subr.msk.bf16.mxu1 %vm7198_vm4, %v6447_v14 }
 0xd80   :  { %v6675_v35 = vpop.permute.xlu1 %6674  ;;  %v3039_v9 = vpop.permute.xlu0 %3038 }
 0xd81   :  { %v6677_v55 = vunpack.i.h.bf16 %v6675_v35  ;;  %v6676_v54 = vunpack.i.l.bf16 %v6675_v35  ;;  %6079 = vmatprep.mubr.msk.f32.mxu0 %vm241_vm2, %v3039_v9 }
 0xd83   :  { %v6441_v37 = vpack.c.bf16 %v6677_v55, %v6676_v54 }
 0xd84   :  { %v3041_v56 = vpop.permute.xlu1 %3040  ;;  %v6680_v45 = vpop.permute.xlu0 %6679 }
 0xd85   :  { %v6682_v48 = vunpack.i.h.bf16 %v6680_v45  ;;  %v6681_v38 = vunpack.i.l.bf16 %v6680_v45  ;;  %6073 = vmatmul.mubr.msk.f32.vlgmr.msra.gmra.mrb[32].mxu1 %vm241_vm2, %v3037_v4  ;;  %6443 = vmatprep.subr.msk.bf16.mxu0 %vm7198_vm4, %v6441_v37 }
 0xd86   :  { %6446 = vmatpush3.bf16.xpose.msk.msra.mxu0 %vm7198_vm4, %v6441_v37  ;;  %6452 = vmatpush3.bf16.xpose.msk.msra.mxu1 %vm7198_vm4, %v6447_v14 }
 0xd87   :  { %v6459_v42 = vpack.c.bf16 %v6682_v48, %v6681_v38 }
 0xd88   :  { %v6685_v21 = vpop.permute.xlu1 %6684  ;;  %v3045_v40 = vpop.permute.xlu0 %3044 }
 0xd89   :  { %v6687_v13 = vunpack.i.h.bf16 %v6685_v21  ;;  %v6686_v49 = vunpack.i.l.bf16 %v6685_v21  ;;  %6461 = vmatprep.subr.msk.bf16.mxu1 %vm7198_vm4, %v6459_v42 }
 0xd8b   :  { %v6453_v61 = vpack.c.bf16 %v6687_v13, %v6686_v49 }
 0xd8c   :  { %v3043_v39 = vpop.permute.xlu1 %3042  ;;  %v3047_v43 = vpop.permute.xlu0 %3046 }
 0xd8d   :  { %6080 = vmatmul.mubr.msk.f32.vlgmr.msra.gmra.mrb[44].mxu0 %vm241_vm2, %v3041_v56  ;;  %6086 = vmatprep.mubr.msk.f32.mxu1 %vm241_vm2, %v3043_v39 }
 0xd8e   :  { %6455 = vmatprep.subr.msk.bf16.mxu0 %vm7198_vm4, %v6453_v61  ;;  %6087 = vmatmul.mubr.msk.f32.vlgmr.msra.gmra.mrb[34].mxu1 %vm241_vm2, %v3045_v40 }
 0xd8f   :  { %6458 = vmatpush3.bf16.xpose.msk.msra.mxu0 %vm7198_vm4, %v6453_v61  ;;  %6093 = vmatprep.mubr.msk.f32.mxu0 %vm241_vm2, %v3047_v43 }
 0xd90   :  { %6464 = vmatpush3.bf16.xpose.msk.msra.mxu1 %vm7198_vm4, %v6459_v42  ;;  %v6690_v47 = vpop.permute.xlu1 %6689  ;;  %v3051_v26 = vpop.permute.xlu0 %3050 }
 0xd91   :  { %6472 = vmatprep.subr.bf16.mxu1 %v7809_v41  ;;  %v6692_v60 = vunpack.i.h.bf16 %v6690_v47  ;;  %v6691_v16 = vunpack.i.l.bf16 %v6690_v47  ;;  %6100 = vmatprep.mubr.msk.f32.mxu1 %vm241_vm2, %v3051_v26 }
 0xd93   :  { %v6465_v6 = vpack.c.bf16 %v6692_v60, %v6691_v16 }
 0xd94   :  { %v3049_v18 = vpop.permute.xlu1 %3048  ;;  %v3055_v7 = vpop.permute.xlu0 %3054 }
 0xd95   :  { %6467 = vmatprep.subr.msk.bf16.mxu0 %vm7198_vm4, %v6465_v6 }
 0xd96   :  { %6094 = vmatmul.mubr.msk.f32.vlgmr.msra.gmra.mrb[46].mxu0 %vm241_vm2, %v3049_v18 }
 0xd97   :  { %6470 = vmatpush3.bf16.xpose.msk.msra.mxu0 %vm7198_vm4, %v6465_v6  ;;  %6107 = vmatprep.mubr.msk.f32.mxu0 %vm241_vm2, %v3055_v7  ;;  %vm5365_vm4 = vcmask 326656  }
 0xd98   :  { %6476 = vmatprep.subr.bf16.mxu0 %v7820_v20  ;;  %v3053_v0 = vpop.permute.xlu1 %3052 }
 0xd99   :  { %6101 = vmatmul.mubr.msk.f32.vlgmr.msra.gmra.mrb[36].mxu1 %vm241_vm2, %v3053_v0 }
 0xd9a   :  { %6474 = vmatpush3.bf16.msra.mxu1 %v7809_v41 }
 0xd9c   :  { %v3057_v1 = vpop.permute.xlu1 %3056 }
 0xd9e   :  { %6108 = vmatmul.mubr.msk.f32.vlgmr.msra.gmra.mrb[48].mxu0 %vm241_vm2, %v3057_v1 }
 0xd9f   :  { %6478 = vmatpush3.bf16.msra.mxu0 %v7820_v20 }
 0xde2   :  { %v6060_v50 = vpop.f32.mrb[30].mxu1 }
 0xde3   :  { %v7885_v44 = vsel %vm238_vm5, %v6060_v50, -1e+30  ;;  %v3200_v46 = vpop.f32.mrb[31].mxu1 }
 0xde4   :  { %v3809_v2 = vsel %vm70_vm0, %v7885_v44, -inf  ;;  %v7891_v19 = vsel %vm238_vm5, %v3200_v46, -1e+30 }
 0xde5   :  { %v3806_v30 = vsel %vm70_vm0, %v7891_v19, -inf  ;;  %3810 = vmax.xlane.f32.xlu1 %v3809_v2 }
 0xde6   :  { %3807 = vmax.xlane.f32.xlu0 %v3806_v30 }
 0xdea   :  { %v6067_v41 = vpop.f32.mrb[42].mxu0 }
 0xdeb   :  { %v7897_v57 = vsel %vm238_vm5, %v6067_v41, -1e+30  ;;  %v3283_v33 = vpop.f32.mrb[43].mxu0 }
 0xdec   :  { %v3815_v62 = vsel %vm70_vm0, %v7897_v57, -inf  ;;  %v7903_v8 = vsel %vm238_vm5, %v3283_v33, -1e+30 }
 0xded   :  { %3816 = vmax.xlane.f32.xlu0 %v3815_v62  ;;  %v3812_v12 = vsel %vm70_vm0, %v7903_v8, -inf }
 0xdf1   :  { %3813 = vmax.xlane.f32.xlu0 %v3812_v12 }
 0xe58   :  { %v6074_v23 = vpop.f32.mrb[32].mxu1 }
 0xe59   :  { %v7909_v24 = vsel %vm238_vm5, %v6074_v23, -1e+30  ;;  %v3366_v52 = vpop.f32.mrb[33].mxu1 }
 0xe5a   :  { %v3821_v20 = vsel %vm70_vm0, %v7909_v24, -inf  ;;  %v7915_v63 = vsel %vm238_vm5, %v3366_v52, -1e+30 }
 0xe5b   :  { %v3818_v25 = vsel %vm70_vm0, %v7915_v63, -inf  ;;  %3822 = vmax.xlane.f32.xlu1 %v3821_v20 }
 0xe5c   :  { %3819 = vmax.xlane.f32.xlu0 %v3818_v25 }
 0xe60   :  { %v6081_v5 = vpop.f32.mrb[44].mxu0 }
 0xe61   :  { %v7921_v32 = vsel %vm238_vm5, %v6081_v5, -1e+30  ;;  %v3449_v29 = vpop.f32.mrb[45].mxu0  ;;  %v6088_v59 = vpop.f32.mrb[34].mxu1 }
 0xe62   :  { %v3827_v34 = vsel %vm70_vm0, %v7921_v32, -inf  ;;  %v7927_v11 = vsel %vm238_vm5, %v6088_v59, -1e+30  ;;  %v3532_v31 = vpop.f32.mrb[35].mxu1  ;;  %v7931_v17 = vsel %vm238_vm5, %v3449_v29, -1e+30 }
 0xe63   :  { %v3833_v27 = vsel %vm70_vm0, %v7927_v11, -inf  ;;  %3828 = vmax.xlane.f32.xlu0 %v3827_v34  ;;  %v7937_v22 = vsel %vm238_vm5, %v3532_v31, -1e+30  ;;  %v3824_v4 = vsel %vm70_vm0, %v7931_v17, -inf }
 0xe64   :  { %3834 = vmax.xlane.f32.xlu1 %v3833_v27  ;;  %v3830_v14 = vsel %vm70_vm0, %v7937_v22, -inf }
 0xe67   :  { %3825 = vmax.xlane.f32.xlu0 %v3824_v4 }
 0xe68   :  { %3831 = vmax.xlane.f32.xlu1 %v3830_v14 }
 0xe69   :  { %v6095_v35 = vpop.f32.mrb[46].mxu0 }
 0xe6a   :  { %v7945_v9 = vsel %vm238_vm5, %v6095_v35, -1e+30  ;;  %v3615_v55 = vpop.f32.mrb[47].mxu0 }
 0xe6b   :  { %v3839_v54 = vsel %vm70_vm0, %v7945_v9, -inf  ;;  %v7951_v37 = vsel %vm238_vm5, %v3615_v55, -1e+30 }
 0xe6c   :  { %3840 = vmax.xlane.f32.xlu0 %v3839_v54  ;;  %v6102_v56 = vpop.f32.mrb[36].mxu1  ;;  %v3836_v42 = vsel %vm70_vm0, %v7951_v37, -inf }
 0xe6d   :  { %v7955_v45 = vsel %vm238_vm5, %v6102_v56, -1e+30  ;;  %v3698_v48 = vpop.f32.mrb[37].mxu1 }
 0xe6e   :  { %v3845_v38 = vsel %vm70_vm0, %v7955_v45, -inf  ;;  %v7963_v21 = vsel %vm238_vm5, %v3698_v48, -1e+30 }
 0xe6f   :  { %3846 = vmax.xlane.f32.xlu1 %v3845_v38  ;;  %v3842_v13 = vsel %vm70_vm0, %v7963_v21, -inf }
 0xe70   :  { %3837 = vmax.xlane.f32.xlu0 %v3836_v42 }
 0xe71   :  { %v6109_v40 = vpop.f32.mrb[48].mxu0 }
 0xe72   :  { %v3781_v49 = vpop.f32.mrb[49].mxu0  ;;  %v7969_v61 = vsel %vm238_vm5, %v6109_v40, -1e+30  ;;  %v3811_v7 = vpop.xlane.xlu1 %3810 }
 0xe73   :  { %v7973_v39 = vsel %vm238_vm5, %v3781_v49, -1e+30  ;;  %3843 = vmax.xlane.f32.xlu1 %v3842_v13  ;;  %v3851_v47 = vsel %vm70_vm0, %v7969_v61, -inf  ;;  %v3808_v36 = vpop.xlane.xlu0 %3807  ;;  %v3855_v50 = vsub.f32 %v7885_v44, %v3811_v7 }
 0xe74   :  { %v3848_v43 = vsel %vm70_vm0, %v7973_v39, -inf  ;;  %v3854_v60 = vsub.f32 %v7891_v19, %v3808_v36 }
 0xe75   :  { %3849 = vmax.xlane.f32.xlu0 %v3848_v43  ;;  %v3872_v2 = vmul.f32 1.442695, %v3855_v50 }
 0xe76   :  { %v3870_v16 = vmul.f32 1.442695, %v3854_v60 }
 0xe77   :  { %3852 = vmax.xlane.f32.xlu1 %v3851_v47 }
 0xe78   :  { %6857 = vpow2.f32 %v3870_v16 }
 0xe7a   :  { %v3817_v26 = vpop.xlane.xlu0 %3816 }
 0xe7b   :  { %v3857_v6 = vsub.f32 %v7897_v57, %v3817_v26 }
 0xe7d   :  { %v3876_v0 = vmul.f32 1.442695, %v3857_v6 }
 0xe7e   :  { %v3814_v18 = vpop.xlane.xlu0 %3813 }
 0xe7f   :  { %v3856_v1 = vsub.f32 %v7903_v8, %v3814_v18  ;;  %6859 = vpow2.f32 %v3876_v0 }
 0xe81   :  { %v3874_v46 = vmul.f32 1.442695, %v3856_v1 }
 0xe82   :  { %v7991_v30 = vpop.eup %6857 }
 0xe83   :  { %6861 = vpow2.f32 %v3874_v46  ;;  %v3902_v19 = vsel %vm70_vm0, %v7991_v30, 0.0 }
 0xe84   :  { %6863 = vpow2.f32 %v3872_v2 }
 0xe88   :  { %6699 = vrot.lane.b32.xlu1 %v7818_v15, %s6970_s21 }
 0xe89   :  { %v7995_v41 = vpop.eup %6859 }
 0xe8a   :  { %v3911_v57 = vsel %vm70_vm0, %v7995_v41, 0.0 }
 0xe8b   :  { %6694 = vrot.lane.b32.xlu0 %v7807_v28, %s6970_s21 }
 0xe8c   :  { %6704 = vrot.lane.b32.xlu1 %v7807_v28, %s6971_s22 }
 0xe8d   :  { %v7999_v33 = vpop.eup %6861 }
 0xe8e   :  { %v8001_v44 = vpop.eup %6863  ;;  %v3908_v62 = vsel %vm70_vm0, %v7999_v33, 0.0 }
 0xe8f   :  { %v3905_v8 = vsel %vm70_vm0, %v8001_v44, 0.0 }
 0xe90   :  { %6709 = vrot.lane.b32.xlu1 %v7818_v15, %s6971_s22 }
 0xeaa   :  { %3903 = vadd.xlane.f32.xlu0 %v3902_v19 }
 0xeae   :  { %3912 = vadd.xlane.f32.xlu0 %v3911_v57 }
 0xeb2   :  { %3909 = vadd.xlane.f32.xlu0 %v3908_v62 }
 0xeb4   :  { %3906 = vadd.xlane.f32.xlu1 %v3905_v8 }
 0xee8   :  { %v3823_v12 = vpop.xlane.xlu1 %3822 }
 0xee9   :  { %v3859_v23 = vsub.f32 %v7909_v24, %v3823_v12  ;;  %v3820_v52 = vpop.xlane.xlu0 %3819 }
 0xeea   :  { %v3858_v20 = vsub.f32 %v7915_v63, %v3820_v52 }
 0xeeb   :  { %v3880_v25 = vmul.f32 1.442695, %v3859_v23 }
 0xeec   :  { %v3878_v5 = vmul.f32 1.442695, %v3858_v20 }
 0xeed   :  { %6865 = vpow2.f32 %v3880_v25 }
 0xeee   :  { %6867 = vpow2.f32 %v3878_v5 }
 0xef0   :  { %v3829_v29 = vpop.xlane.xlu0 %3828 }
 0xef1   :  { %v3861_v59 = vsub.f32 %v7921_v32, %v3829_v29  ;;  %v3835_v34 = vpop.xlane.xlu1 %3834 }
 0xef2   :  { %v3863_v31 = vsub.f32 %v7927_v11, %v3835_v34 }
 0xef3   :  { %v3884_v27 = vmul.f32 1.442695, %v3861_v59 }
 0xef4   :  { %v3888_v4 = vmul.f32 1.442695, %v3863_v31  ;;  %v3826_v14 = vpop.xlane.xlu0 %3825 }
 0xef5   :  { %6869 = vpow2.f32 %v3884_v27  ;;  %v3860_v35 = vsub.f32 %v7931_v17, %v3826_v14  ;;  %v3832_v24 = vpop.xlane.xlu1 %3831 }
 0xef6   :  { %6871 = vpow2.f32 %v3888_v4  ;;  %v3862_v63 = vsub.f32 %v7937_v22, %v3832_v24 }
 0xef7   :  { %v8013_v55 = vpop.eup %6865  ;;  %v3882_v54 = vmul.f32 1.442695, %v3860_v35 }
 0xef8   :  { %v3886_v56 = vmul.f32 1.442695, %v3862_v63  ;;  %v3917_v32 = vsel %vm70_vm0, %v8013_v55, 0.0  ;;  %v8017_v48 = vpop.eup %6867 }
 0xef9   :  { %6873 = vpow2.f32 %v3882_v54  ;;  %v3841_v11 = vpop.xlane.xlu0 %3840  ;;  %3918 = vadd.xlane.f32.xlu1 %v3917_v32  ;;  %v3914_v22 = vsel %vm70_vm0, %v8017_v48, 0.0 }
 0xefa   :  { %6875 = vpow2.f32 %v3886_v56  ;;  %v3865_v38 = vsub.f32 %v7945_v9, %v3841_v11 }
 0xefc   :  { %v3892_v17 = vmul.f32 1.442695, %v3865_v38  ;;  %v3847_v42 = vpop.xlane.xlu1 %3846 }
 0xefd   :  { %v3838_v40 = vpop.xlane.xlu0 %3837  ;;  %v3867_v13 = vsub.f32 %v7955_v45, %v3847_v42  ;;  %3915 = vadd.xlane.f32.xlu1 %v3914_v22 }
 0xefe   :  { %6877 = vpow2.f32 %v3892_v17  ;;  %v3864_v49 = vsub.f32 %v7951_v37, %v3838_v40 }
 0xeff   :  { %v8024_v43 = vpop.eup %6869  ;;  %v3896_v47 = vmul.f32 1.442695, %v3867_v13 }
 0xf00   :  { %v8026_v36 = vpop.eup %6871  ;;  %v3890_v26 = vmul.f32 1.442695, %v3864_v49  ;;  %v3844_v60 = vpop.xlane.xlu1 %3843  ;;  %v3923_v9 = vsel %vm70_vm0, %v8024_v43, 0.0 }
 0xf01   :  { %6879 = vpow2.f32 %v3896_v47  ;;  %v3866_v16 = vsub.f32 %v7963_v21, %v3844_v60  ;;  %3924 = vadd.xlane.f32.xlu0 %v3923_v9  ;;  %v3929_v45 = vsel %vm70_vm0, %v8026_v36, 0.0 }
 0xf02   :  { %6881 = vpow2.f32 %v3890_v26  ;;  %v3850_v6 = vpop.xlane.xlu0 %3849  ;;  %3930 = vadd.xlane.f32.xlu1 %v3929_v45 }
 0xf03   :  { %v8033_v37 = vpop.eup %6873  ;;  %v3894_v18 = vmul.f32 1.442695, %v3866_v16  ;;  %v3868_v7 = vsub.f32 %v7973_v39, %v3850_v6 }
 0xf04   :  { %v8036_v0 = vpop.eup %6875  ;;  %v3853_v1 = vpop.xlane.xlu1 %3852  ;;  %v3920_v50 = vsel %vm70_vm0, %v8033_v37, 0.0 }
 0xf05   :  { %6883 = vpow2.f32 %v3894_v18  ;;  %v3898_v21 = vmul.f32 1.442695, %v3868_v7  ;;  %v3869_v46 = vsub.f32 %v7969_v61, %v3853_v1  ;;  %3921 = vadd.xlane.f32.xlu0 %v3920_v50  ;;  %v3926_v2 = vsel %vm70_vm0, %v8036_v0, 0.0 }
 0xf06   :  { %v6695_v19 = vpop.permute.xlu0 %6694  ;;  %3927 = vadd.xlane.f32.xlu1 %v3926_v2 }
 0xf07   :  { %6885 = vpow2.f32 %v3898_v21  ;;  %v3900_v57 = vmul.f32 1.442695, %v3869_v46  ;;  %v6697_v62 = vunpack.i.h.bf16 %v6695_v19  ;;  %v6696_v39 = vunpack.i.l.bf16 %v6695_v19 }
 0xf08   :  { %v8043_v8 = vpop.eup %6877  ;;  %v6700_v12 = vpop.permute.xlu1 %6699 }
 0xf09   :  { %6887 = vpow2.f32 %v3900_v57  ;;  %v8045_v23 = vpack.c.bf16 %v6697_v62, %v6696_v39  ;;  %v6702_v52 = vunpack.i.h.bf16 %v6700_v12  ;;  %v6701_v20 = vunpack.i.l.bf16 %v6700_v12 }
 0xf0a   :  { %v3935_v61 = vsel %vm70_vm0, %v8043_v8, 0.0 }
 0xf0b   :  { %v8049_v25 = vpop.eup %6879  ;;  %v6483_v5 = vpack.c.bf16 %v6702_v52, %v6701_v20  ;;  %3936 = vadd.xlane.f32.xlu0 %v3935_v61  ;;  %6480 = vmatprep.subr.bf16.mxu1 %v8045_v23 }
 0xf0c   :  { %v8052_v29 = vpop.eup %6881  ;;  %v3941_v59 = vsel %vm70_vm0, %v8049_v25, 0.0  ;;  %v6705_v63 = vpop.permute.xlu1 %6704 }
 0xf0d   :  { %v3932_v34 = vsel %vm70_vm0, %v8052_v29, 0.0  ;;  %3942 = vadd.xlane.f32.xlu1 %v3941_v59  ;;  %6484 = vmatprep.subr.bf16.mxu0 %v6483_v5  ;;  %v6707_v50 = vunpack.i.h.bf16 %v6705_v63  ;;  %v6706_v21 = vunpack.i.l.bf16 %v6705_v63 }
 0xf0f   :  { %v8058_v31 = vpop.eup %6883  ;;  %3933 = vadd.xlane.f32.xlu0 %v3932_v34  ;;  %v6487_v62 = vpack.c.bf16 %v6707_v50, %v6706_v21 }
 0xf10   :  { %v3938_v27 = vsel %vm70_vm0, %v8058_v31, 0.0  ;;  %v6710_v32 = vpop.permute.xlu1 %6709 }
 0xf11   :  { %v8062_v4 = vpop.eup %6885  ;;  %3939 = vadd.xlane.f32.xlu1 %v3938_v27  ;;  %v6712_v7 = vunpack.i.h.bf16 %v6710_v32  ;;  %v6711_v1 = vunpack.i.l.bf16 %v6710_v32 }
 0xf12   :  { %v3944_v14 = vsel %vm70_vm0, %v8062_v4, 0.0 }
 0xf13   :  { %v8066_v35 = vpop.eup %6887  ;;  %3945 = vadd.xlane.f32.xlu0 %v3944_v14  ;;  %v8080_v57 = vpack.c.bf16 %v6712_v7, %v6711_v1 }
 0xf14   :  { %v3947_v24 = vsel %vm70_vm0, %v8066_v35, 0.0 }
 0xf15   :  { %3948 = vadd.xlane.f32.xlu1 %v3947_v24 }
 0xf26   :  { %6719 = vrot.lane.b32.xlu1 %v7818_v15, %s6972_s23 }
 0xf29   :  { %6714 = vrot.lane.b32.xlu0 %v7807_v28, %s6972_s23 }
 0xf37   :  { %v3904_v54 = vpop.xlane.xlu0 %3903 }
 0xf38   :  { %6889 = vrcp.f32 %v3904_v54 }
 0xf3b   :  { %v3913_v56 = vpop.xlane.xlu0 %3912 }
 0xf3c   :  { %6891 = vrcp.f32 %v3913_v56 }
 0xf3f   :  { %v3910_v11 = vpop.xlane.xlu0 %3909 }
 0xf40   :  { %6893 = vrcp.f32 %v3910_v11 }
 0xf41   :  { %v3907_v38 = vpop.xlane.xlu1 %3906 }
 0xf42   :  { %v6890_v17 = vpop.eup %6889  ;;  %6895 = vrcp.f32 %v3907_v38 }
 0xf43   :  { %v3966_v42 = vmul.f32 %v6890_v17, %v3904_v54 }
 0xf45   :  { %v3982_v22 = vsub.f32 2.0, %v3966_v42 }
 0xf46   :  { %v6892_v40 = vpop.eup %6891 }
 0xf47   :  { %v3998_v13 = vmul.f32 %v6890_v17, %v3982_v22  ;;  %v3969_v49 = vmul.f32 %v6892_v40, %v3913_v56 }
 0xf49   :  { %v4014_v15 = vmul.f32 %v7991_v30, %v3998_v13  ;;  %v3985_v28 = vsub.f32 2.0, %v3969_v49 }
 0xf4a   :  { %v6894_v47 = vpop.eup %6893 }
 0xf4b   :  { %v3968_v26 = vmul.f32 %v6894_v47, %v3910_v11  ;;  %6114 = vmatprep.mubr.msk.f32.mxu1 %vm70_vm0, %v4014_v15  ;;  %v4001_v45 = vmul.f32 %v6892_v40, %v3985_v28 }
 0xf4c   :  { %v6896_v60 = vpop.eup %6895 }
 0xf4d   :  { %v3984_v9 = vsub.f32 2.0, %v3968_v26  ;;  %v3967_v16 = vmul.f32 %v6896_v60, %v3907_v38  ;;  %v4017_v30 = vmul.f32 %v7995_v41, %v4001_v45 }
 0xf4f   :  { %v4000_v6 = vmul.f32 %v6894_v47, %v3984_v9  ;;  %v3983_v18 = vsub.f32 2.0, %v3967_v16 }
 0xf51   :  { %v4016_v46 = vmul.f32 %v7999_v33, %v4000_v6  ;;  %v3999_v2 = vmul.f32 %v6896_v60, %v3983_v18 }
 0xf53   :  { %v4015_v19 = vmul.f32 %v8001_v44, %v3999_v2  ;;  %6121 = vmatprep.mubr.msk.f32.mxu0 %vm70_vm0, %v4016_v46 }
 0xf54   :  { %6122 = vmatmul.mubr.msk.f32.vlgmr.msra.gmra.mrb[50].mxu0 %vm70_vm0, %v4017_v30 }
 0xf55   :  { %6486 = vmatpush3.bf16.msra.mxu0 %v6483_v5  ;;  %6115 = vmatmul.mubr.msk.f32.vlgmr.msra.gmra.mrb[38].mxu1 %vm70_vm0, %v4015_v19 }
 0xf56   :  { %6492 = vmatprep.subr.bf16.mxu0 %v8080_v57  ;;  %6482 = vmatpush3.bf16.msra.mxu1 %v8045_v23 }
 0xf57   :  { %6488 = vmatprep.subr.bf16.mxu1 %v6487_v62 }
 0xf86   :  { %v3919_v33 = vpop.xlane.xlu1 %3918 }
 0xf87   :  { %6897 = vrcp.f32 %v3919_v33 }
 0xf8a   :  { %v3916_v41 = vpop.xlane.xlu1 %3915 }
 0xf8b   :  { %6899 = vrcp.f32 %v3916_v41 }
 0xf8e   :  { %v3925_v44 = vpop.xlane.xlu0 %3924 }
 0xf8f   :  { %6901 = vrcp.f32 %v3925_v44  ;;  %v3931_v39 = vpop.xlane.xlu1 %3930 }
 0xf90   :  { %6903 = vrcp.f32 %v3931_v39 }
 0xf91   :  { %v6898_v12 = vpop.eup %6897 }
 0xf92   :  { %v3971_v52 = vmul.f32 %v6898_v12, %v3919_v33  ;;  %v3922_v20 = vpop.xlane.xlu0 %3921 }
 0xf93   :  { %6905 = vrcp.f32 %v3922_v20  ;;  %v3928_v61 = vpop.xlane.xlu1 %3927 }
 0xf94   :  { %6907 = vrcp.f32 %v3928_v61  ;;  %v3987_v59 = vsub.f32 2.0, %v3971_v52 }
 0xf95   :  { %v6900_v5 = vpop.eup %6899 }
 0xf96   :  { %v3970_v34 = vmul.f32 %v6900_v5, %v3916_v41  ;;  %v4003_v24 = vmul.f32 %v6898_v12, %v3987_v59 }
 0xf98   :  { %v3986_v27 = vsub.f32 2.0, %v3970_v34  ;;  %v3937_v23 = vpop.xlane.xlu0 %3936  ;;  %v4019_v22 = vmul.f32 %v8013_v55, %v4003_v24 }
 0xf99   :  { %v6902_v14 = vpop.eup %6901  ;;  %6909 = vrcp.f32 %v3937_v23 }
 0xf9a   :  { %v6904_v63 = vpop.eup %6903  ;;  %v4002_v54 = vmul.f32 %v6900_v5, %v3986_v27  ;;  %v3973_v56 = vmul.f32 %v6902_v14, %v3925_v44  ;;  %v3943_v32 = vpop.xlane.xlu1 %3942 }
 0xf9b   :  { %v3975_v11 = vmul.f32 %v6904_v63, %v3931_v39  ;;  %6911 = vrcp.f32 %v3943_v32 }
 0xf9c   :  { %v4018_v38 = vmul.f32 %v8017_v48, %v4002_v54  ;;  %v3934_v17 = vpop.xlane.xlu0 %3933  ;;  %v3989_v40 = vsub.f32 2.0, %v3973_v56 }
 0xf9d   :  { %v6906_v42 = vpop.eup %6905  ;;  %6913 = vrcp.f32 %v3934_v17  ;;  %v3991_v49 = vsub.f32 2.0, %v3975_v11 }
 0xf9e   :  { %v6908_v13 = vpop.eup %6907  ;;  %v3972_v15 = vmul.f32 %v6906_v42, %v3922_v20  ;;  %6128 = vmatprep.mubr.msk.f32.mxu1 %vm70_vm0, %v4018_v38  ;;  %v3940_v47 = vpop.xlane.xlu1 %3939  ;;  %v4005_v48 = vmul.f32 %v6902_v14, %v3989_v40 }
 0xf9f   :  { %v3974_v28 = vmul.f32 %v6908_v13, %v3928_v61  ;;  %6915 = vrcp.f32 %v3940_v47  ;;  %6129 = vmatmul.mubr.msk.f32.vlgmr.msra.gmra.mrb[40].mxu1 %vm70_vm0, %v4019_v22  ;;  %v4007_v16 = vmul.f32 %v6904_v63, %v3991_v49 }
 0xfa0   :  { %v3988_v26 = vsub.f32 2.0, %v3972_v15  ;;  %v3946_v60 = vpop.xlane.xlu0 %3945  ;;  %6490 = vmatpush3.bf16.msra.mxu1 %v6487_v62  ;;  %v4021_v46 = vmul.f32 %v8024_v43, %v4005_v48  ;;  %v5544_v48 = vld [vmem:[%s8338_s7 + $0xa8] sm:$0xff] }
 0xfa1   :  { %v3990_v9 = vsub.f32 2.0, %v3974_v28  ;;  %6917 = vrcp.f32 %v3946_v60  ;;  %v4023_v62 = vmul.f32 %v8026_v36, %v4007_v16  ;;  %v5545_v16 = vld [vmem:[%s8338_s7 + $0xb0] sm:$0xff] }
 0xfa2   :  { %v4004_v55 = vmul.f32 %v6906_v42, %v3988_v26  ;;  %v3949_v45 = vpop.xlane.xlu1 %3948 }
 0xfa3   :  { %v6910_v6 = vpop.eup %6909  ;;  %v4006_v18 = vmul.f32 %v6908_v13, %v3990_v9  ;;  %6919 = vrcp.f32 %v3949_v45 }
 0xfa4   :  { %v4020_v7 = vmul.f32 %v8033_v37, %v4004_v55  ;;  %v3977_v1 = vmul.f32 %v6910_v6, %v3937_v23  ;;  %v6715_v50 = vpop.permute.xlu0 %6714  ;;  %v5546_v55 = vld [vmem:[%s8338_s7 + $0xb8] sm:$0xff] }
 0xfa5   :  { %v6912_v21 = vpop.eup %6911  ;;  %v4022_v2 = vmul.f32 %v8036_v0, %v4006_v18  ;;  %v6717_v30 = vunpack.i.h.bf16 %v6715_v50  ;;  %v6716_v19 = vunpack.i.l.bf16 %v6715_v50  ;;  %v5548_v18 = vld [vmem:[%s8338_s7 + $0xc8] sm:$0xff]  ;;  %v5549_v50 = vld [vmem:[%s8338_s7 + $0xd0] sm:$0xff] }
 0xfa6   :  { %v3979_v33 = vmul.f32 %v6912_v21, %v3943_v32  ;;  %6135 = vmatprep.mubr.msk.f32.mxu0 %vm70_vm0, %v4020_v7  ;;  %v6720_v41 = vpop.permute.xlu1 %6719  ;;  %v3993_v39 = vsub.f32 2.0, %v3977_v1 }
 0xfa7   :  { %v6914_v44 = vpop.eup %6913  ;;  %v6495_v12 = vpack.c.bf16 %v6717_v30, %v6716_v19  ;;  %v6722_v52 = vunpack.i.h.bf16 %v6720_v41  ;;  %v6721_v37 = vunpack.i.l.bf16 %v6720_v41  ;;  %6136 = vmatmul.mubr.msk.f32.vlgmr.msra.gmra.mrb[52].mxu0 %vm70_vm0, %v4021_v46  ;;  %6142 = vmatprep.mubr.msk.f32.mxu1 %vm70_vm0, %v4022_v2  ;;  %v5551_v19 = vld [vmem:[%s8338_s7 + $0xe0] sm:$0xff] }
 0xfa8   :  { %v3976_v43 = vmul.f32 %v6914_v44, %v3934_v17  ;;  %6494 = vmatpush3.bf16.msra.mxu0 %v8080_v57  ;;  %6143 = vmatmul.mubr.msk.f32.vlgmr.msra.gmra.mrb[42].mxu1 %vm70_vm0, %v4023_v62  ;;  %v3995_v36 = vsub.f32 2.0, %v3979_v33  ;;  %v4009_v34 = vmul.f32 %v6910_v6, %v3993_v39  ;;  %v6515_v6 = vpack.c.bf16 %v5546_v55, %v5545_v16  ;;  %v5552_v62 = vld [vmem:[%s8338_s7 + $0xe8] sm:$0xff] }
 0xfa9   :  { %v6916_v0 = vpop.eup %6915  ;;  %v6499_v20 = vpack.c.bf16 %v6722_v52, %v6721_v37  ;;  %6496 = vmatprep.subr.bf16.mxu1 %v6495_v12  ;;  %v6527_v33 = vpack.c.bf16 %v5552_v62, %v5551_v19 }
 0xfaa   :  { %v3992_v61 = vsub.f32 2.0, %v3976_v43  ;;  %v3978_v5 = vmul.f32 %v6916_v0, %v3940_v47  ;;  %6498 = vmatpush3.bf16.msra.mxu1 %v6495_v12  ;;  %v4011_v63 = vmul.f32 %v6912_v21, %v3995_v36  ;;  %v4025_v11 = vmul.f32 %v8043_v8, %v4009_v34  ;;  %v5550_v21 = vld [vmem:[%s8338_s7 + $0xd8] sm:$0xff]  ;;  %v5553_v43 = vld [vmem:[%s8338_s7 + $0xf0] sm:$0xff] }
 0xfab   :  { %v6918_v59 = vpop.eup %6917  ;;  %6500 = vmatprep.subr.bf16.mxu0 %v6499_v20  ;;  %v6523_v2 = vpack.c.bf16 %v5550_v21, %v5549_v50  ;;  %v5556_v50 = vld [vmem:[%s8339_s8 + $0x1] ss:$0 sm:$0xff] }
 0xfac   :  { %v4008_v27 = vmul.f32 %v6914_v44, %v3992_v61  ;;  %v3994_v23 = vsub.f32 2.0, %v3978_v5  ;;  %v3980_v14 = vmul.f32 %v6918_v59, %v3946_v60  ;;  %v4027_v22 = vmul.f32 %v8049_v25, %v4011_v63  ;;  %v5539_v25 = vld [vmem:[%s8338_s7 + $0x80] sm:$0xff] }
 0xfad   :  { %v6920_v24 = vpop.eup %6919  ;;  %v5543_v60 = vld [vmem:[%s8338_s7 + $0xa0] sm:$0xff] }
 0xfae   :  { %v4024_v54 = vmul.f32 %v8052_v29, %v4008_v27  ;;  %v4010_v57 = vmul.f32 %v6916_v0, %v3994_v23  ;;  %v3996_v56 = vsub.f32 2.0, %v3980_v14  ;;  %v3981_v32 = vmul.f32 %v6920_v24, %v3949_v45  ;;  %v5540_v29 = vld [vmem:[%s8338_s7 + $0x88] sm:$0xff]  ;;  %v5547_v45 = vld [vmem:[%s8338_s7 + $0xc0] sm:$0xff]  ;;  %v5554_v0 = vld [vmem:[%s8338_s7 + $0xf8] sm:$0xff] }
 0xfaf   :  { %v6511_v9 = vpack.c.bf16 %v5544_v48, %v5543_v60  ;;  %v6519_v7 = vpack.c.bf16 %v5548_v18, %v5547_v45  ;;  %v6531_v36 = vpack.c.bf16 %v5554_v0, %v5553_v43 }
 0xfb0   :  { %v4026_v38 = vmul.f32 %v8058_v31, %v4010_v57  ;;  %v4012_v17 = vmul.f32 %v6918_v59, %v3996_v56  ;;  %v3997_v42 = vsub.f32 2.0, %v3981_v32  ;;  %6149 = vmatprep.mubr.msk.f32.mxu0 %vm70_vm0, %v4024_v54  ;;  %v5541_v31 = vld [vmem:[%s8338_s7 + $0x90] sm:$0xff] }
 0xfb1   :  { %6150 = vmatmul.mubr.msk.f32.vlgmr.msra.gmra.mrb[54].mxu0 %vm70_vm0, %v4025_v11 }
 0xfb2   :  { %v4028_v40 = vmul.f32 %v8062_v4, %v4012_v17  ;;  %v4013_v13 = vmul.f32 %v6920_v24, %v3997_v42  ;;  %6502 = vmatpush3.bf16.msra.mxu0 %v6499_v20  ;;  %6156 = vmatprep.mubr.msk.f32.mxu1 %vm70_vm0, %v4026_v38  ;;  %v6503_v4 = vpack.c.bf16 %v5540_v29, %v5539_v25 }
 0xfb3   :  { %6157 = vmatmul.mubr.msk.f32.vlgmr.msra.gmra.mrb[44].mxu1 %vm70_vm0, %v4027_v22 }
 0xfb4   :  { %v4029_v8 = vmul.f32 %v8066_v35, %v4013_v13  ;;  %6163 = vmatprep.mubr.msk.f32.mxu0 %vm70_vm0, %v4028_v40  ;;  %v5542_v35 = vld [vmem:[%s8338_s7 + $0x98] sm:$0xff]  ;;  %6504 = vmatprep.subr.bf16.mxu1 %v6503_v4 }
 0xfb5   :  { %v6507_v49 = vpack.c.bf16 %v5542_v35, %v5541_v31  ;;  %6506 = vmatpush3.bf16.msra.mxu1 %v6503_v4 }
 0xfb6   :  { %6164 = vmatmul.mubr.msk.f32.vlgmr.msra.gmra.mrb[56].mxu0 %vm70_vm0, %v4029_v8  ;;  %vm6974_vm0 = vmmov 0  }
 0xfb7   :  { %6508 = vmatprep.subr.bf16.mxu1 %v6507_v49 }
 0xfb9   :  { %6510 = vmatpush3.bf16.msra.mxu1 %v6507_v49 }
 0xfba   :  { %6512 = vmatprep.subr.bf16.mxu1 %v6511_v9 }
 0xfbd   :  { %6514 = vmatpush3.bf16.msra.mxu1 %v6511_v9 }
 0xfbe   :  { %6516 = vmatprep.subr.bf16.mxu1 %v6515_v6 }
 0xfc1   :  { %6518 = vmatpush3.bf16.msra.mxu1 %v6515_v6 }
 0xfc2   :  { %6520 = vmatprep.subr.bf16.mxu1 %v6519_v7 }
 0xfc5   :  { %6522 = vmatpush3.bf16.msra.mxu1 %v6519_v7 }
 0xfc6   :  { %6524 = vmatprep.subr.bf16.mxu1 %v6523_v2 }
 0xfc9   :  { %6526 = vmatpush3.bf16.msra.mxu1 %v6523_v2 }
 0xfca   :  { %6528 = vmatprep.subr.bf16.mxu1 %v6527_v33 }
 0xfcd   :  { %6530 = vmatpush3.bf16.msra.mxu1 %v6527_v33 }
 0xfce   :  { %6532 = vmatprep.subr.bf16.mxu1 %v6531_v36 }
 0xfd1   :  { %6534 = vmatpush3.bf16.msra.mxu1 %v6531_v36 }
0x1027   :  { %v8123_v15 = vpop.f32.mrb[50].mxu0 }
0x1028   :  { %v8125_v47 = vpop.f32.mrb[51].mxu0  ;;  %v8127_v28 = vpop.f32.mrb[38].mxu1 }
0x1029   :  { %v8129_v26 = vpop.f32.mrb[39].mxu1 }
0x1072   :  { %v6130_v1 = vpop.f32.mrb[40].mxu1 }
0x1073   :  { %v4264_v46 = vpop.f32.mrb[41].mxu1 }
0x1074   :  { %v6723_v30 = vpack.i.bf16 %v6130_v1, %v4264_v46 }
0x1076   :  { %6724 = vrot.lane.b32.xlu0 %v6723_v30, %s6972_s23 }
0x107a   :  { %v6137_v41 = vpop.f32.mrb[52].mxu0 }
0x107b   :  { %v4345_v44 = vpop.f32.mrb[53].mxu0  ;;  %v6144_v39 = vpop.f32.mrb[42].mxu1 }
0x107c   :  { %v6733_v12 = vpack.i.bf16 %v6137_v41, %v4345_v44  ;;  %v4426_v52 = vpop.f32.mrb[43].mxu1 }
0x107d   :  { %v6728_v37 = vpack.i.bf16 %v6144_v39, %v4426_v52 }
0x107f   :  { %6729 = vrot.lane.b32.xlu1 %v6728_v37, %s6971_s22 }
0x1083   :  { %6734 = vrot.lane.b32.xlu1 %v6733_v12, %s6972_s23 }
0x1084   :  { %v6151_v20 = vpop.f32.mrb[54].mxu0 }
0x1085   :  { %v4507_v61 = vpop.f32.mrb[55].mxu0 }
0x1086   :  { %v6743_v5 = vpack.i.bf16 %v6151_v20, %v4507_v61  ;;  %v6158_v59 = vpop.f32.mrb[44].mxu1 }
0x1087   :  { %v4588_v34 = vpop.f32.mrb[45].mxu1 }
0x1088   :  { %v6738_v27 = vpack.i.bf16 %v6158_v59, %v4588_v34 }
0x1089   :  { %v6165_v23 = vpop.f32.mrb[56].mxu0 }
0x108a   :  { %6739 = vrot.lane.b32.xlu0 %v6738_v27, %s6970_s21  ;;  %v4669_v14 = vpop.f32.mrb[57].mxu0 }
0x108b   :  { %v6748_v24 = vpack.i.bf16 %v6165_v23, %v4669_v14 }
0x108d   :  { %6749 = vrot.lane.b32.xlu1 %v6748_v24, %s6970_s21 }
0x108e   :  { %6744 = vrot.lane.b32.xlu0 %v6743_v5, %s6971_s22 }
0x10e8   :  { %v6725_v54 = vpop.permute.xlu0 %6724 }
0x10e9   :  { %v6727_v57 = vunpack.i.h.bf16 %v6725_v54  ;;  %v6726_v56 = vunpack.i.l.bf16 %v6725_v54 }
0x10eb   :  { %v4727_v42 = vsel %vm241_vm2, %v8127_v28, %v6727_v57  ;;  %v4726_v13 = vsel %vm241_vm2, %v8129_v26, %v6726_v56 }
0x10f1   :  { %v6730_v63 = vpop.permute.xlu1 %6729 }
0x10f2   :  { %v6732_v32 = vunpack.i.h.bf16 %v6730_v63  ;;  %v6731_v11 = vunpack.i.l.bf16 %v6730_v63 }
0x10f4   :  { %v4730_v29 = vsel %vm2215_vm6, %v4726_v13, %v6731_v11  ;;  %v4731_v31 = vsel %vm2215_vm6, %v4727_v42, %v6732_v32  ;;  %v5561_v32 = vld [vmem:[%s8342_s11 + $0x20] sm:$0xff]  ;;  %v5562_v11 = vld [vmem:[%s8342_s11 + $0x28] sm:$0xff]  ;;  %v5564_v42 = vld [vmem:[%s8342_s11 + $0x38] sm:$0xff] }
0x10f5   :  { %v6735_v38 = vpop.permute.xlu1 %6734 }
0x10f6   :  { %v6737_v8 = vunpack.i.h.bf16 %v6735_v38  ;;  %v6736_v25 = vunpack.i.l.bf16 %v6735_v38  ;;  %v5563_v38 = vld [vmem:[%s8342_s11 + $0x30] sm:$0xff] }
0x10f8   :  { %v4728_v26 = vsel %vm241_vm2, %v8125_v47, %v6736_v25  ;;  %v4729_v55 = vsel %vm241_vm2, %v8123_v15, %v6737_v8 }
0x10fc   :  { %v6740_v17 = vpop.permute.xlu0 %6739 }
0x10fd   :  { %v6742_v22 = vunpack.i.h.bf16 %v6740_v17  ;;  %v6741_v40 = vunpack.i.l.bf16 %v6740_v17  ;;  %v6535_v17 = vpack.c.bf16 %v5562_v11, %v5561_v32 }
0x10ff   :  { %v6750_v4 = vpop.permute.xlu1 %6749  ;;  %v4734_v35 = vsel %vm2220_vm7, %v4730_v29, %v6741_v40  ;;  %v4735_v49 = vsel %vm2220_vm7, %v4731_v31, %v6742_v22  ;;  %v6539_v22 = vpack.c.bf16 %v5564_v42, %v5563_v38  ;;  %6536 = vmatprep.subr.bf16.mxu0 %v6535_v17 }
0x1100   :  { %6198 = vmatprep.mubr.f32.mxu1 %v4734_v35  ;;  %v6745_v60 = vpop.permute.xlu0 %6744  ;;  %v6752_v9 = vunpack.i.h.bf16 %v6750_v4  ;;  %v6751_v16 = vunpack.i.l.bf16 %v6750_v4  ;;  %6538 = vmatpush3.bf16.msra.mxu0 %v6535_v17 }
0x1101   :  { %v6747_v48 = vunpack.i.h.bf16 %v6745_v60  ;;  %v6746_v28 = vunpack.i.l.bf16 %v6745_v60  ;;  %6199 = vmatmul.mubr.f32.vlgmr.msra.gmra.mrb[46].mxu1 %v4735_v49  ;;  %6540 = vmatprep.subr.bf16.mxu0 %v6539_v22 }
0x1103   :  { %v4732_v45 = vsel %vm2215_vm6, %v4728_v26, %v6746_v28  ;;  %v4733_v6 = vsel %vm2215_vm6, %v4729_v55, %v6747_v48 }
0x1104   :  { %v4736_v18 = vsel %vm2220_vm7, %v4732_v45, %v6751_v16  ;;  %v4737_v7 = vsel %vm2220_vm7, %v4733_v6, %v6752_v9  ;;  %6542 = vmatpush3.bf16.msra.mxu0 %v6539_v22  ;;  %v5559_v16 = vld [vmem:[%s8340_s9 + $0x1] ss:$0 sm:$0xff] }
0x1105   :  { %6201 = vmatprep.mubr.f32.mxu1 %v4736_v18  ;;  %v5560_v6 = vld [vmem:[%s8341_s10 + $0x1] ss:$0 sm:$0xff] }
0x1106   :  { %6202 = vmatmul.mubr.f32.gmra.mrb[48].mxu1 %v4737_v7 }
0x11d4   :  { %v6200_v1 = vpop.f32.mrb[46].mxu1 }
0x11d5   :  { %v4841_v47 = vadd.f32 %v6200_v1, %v7705_v10  ;;  %v4821_v21 = vpop.f32.mrb[47].mxu1 }
0x11d6   :  { %v4840_v15 = vadd.f32 %v4821_v21, %v7708_v3 }
0x11d7   :  { %v4853_v46 = vadd.f32 %v5556_v50, %v4841_v47 }
0x11d8   :  { %v8194_v2 = vadd.f32 %v5556_v50, %v4840_v15 }
0x11d9   :  { %v6203_v30 = vpop.f32.mrb[48].mxu1  ;;  %v4863_v19 = vsel %vm241_vm2, %v4853_v46, 0.0 }
0x11da   :  { %4864 = vadd.xlane.f32.xlu1 %v4863_v19  ;;  %v4831_v62 = vpop.f32.mrb[49].mxu1  ;;  %v4860_v33 = vsel %vm241_vm2, %v8194_v2, 0.0  ;;  %v4843_v41 = vadd.f32 %v6203_v30, %v7715_v51 }
0x11db   :  { %v4842_v44 = vadd.f32 %v4831_v62, %v7718_v53  ;;  %4861 = vadd.xlane.f32.xlu0 %v4860_v33 }
0x11dc   :  { %v4855_v39 = vadd.f32 %v5556_v50, %v4843_v41  ;;  %v5579_v41 = vld [vmem:[%s8344_s13 + $0x40] sm:$0xff] }
0x11dd   :  { %v8201_v10 = vadd.f32 %v5556_v50, %v4842_v44  ;;  %v5580_v44 = vld [vmem:[%s8344_s13 + $0x48] sm:$0xff] }
0x11de   :  { %v4869_v12 = vsel %vm241_vm2, %v4855_v39, 0.0 }
0x11df   :  { %v4866_v3 = vsel %vm241_vm2, %v8201_v10, 0.0 }
0x11e0   :  { %4867 = vadd.xlane.f32.xlu0 %v4866_v3  ;;  %v5581_v3 = vld [vmem:[%s8344_s13 + $0x50] sm:$0xff] }
0x11e4   :  { %4870 = vadd.xlane.f32.xlu0 %v4869_v12  ;;  %v5582_v12 = vld [vmem:[%s8344_s13 + $0x58] sm:$0xff] }
0x1267   :  { %v4865_v52 = vpop.xlane.xlu1 %4864 }
0x1268   :  { %v4873_v37 = vmul.f32 0.03125, %v4865_v52  ;;  %v4862_v43 = vpop.xlane.xlu0 %4861  ;;  %v6547_v52 = vpack.c.bf16 %v5582_v12, %v5581_v3 }
0x1269   :  { %v4872_v0 = vmul.f32 0.03125, %v4862_v43  ;;  %v5584_v43 = vld [vmem:[%s8344_s13 + $0x68] sm:$0xff] }
0x126a   :  { %v4877_v36 = vsub.f32 %v4853_v46, %v4873_v37  ;;  %v5583_v37 = vld [vmem:[%s8344_s13 + $0x60] sm:$0xff] }
0x126b   :  { %v4876_v51 = vsub.f32 %v8194_v2, %v4872_v0  ;;  %v6551_v0 = vpack.c.bf16 %v5584_v43, %v5583_v37 }
0x126c   :  { %v4881_v20 = vmul.f32 %v4877_v36, %v4877_v36 }
0x126d   :  { %v4868_v53 = vpop.xlane.xlu0 %4867  ;;  %v4880_v61 = vmul.f32 %v4876_v51, %v4876_v51 }
0x126e   :  { %v4874_v5 = vmul.f32 0.03125, %v4868_v53  ;;  %v4887_v59 = vsel %vm241_vm2, %v4881_v20, 0.0  ;;  %v5566_v53 = vld [vmem:[%s8343_s12 + $0x1] ss:$0 sm:$0xff] }
0x126f   :  { %4888 = vadd.xlane.f32.xlu1 %v4887_v59  ;;  %v4884_v34 = vsel %vm241_vm2, %v4880_v61, 0.0 }
0x1270   :  { %v4878_v27 = vsub.f32 %v8201_v10, %v4874_v5  ;;  %4885 = vadd.xlane.f32.xlu0 %v4884_v34 }
0x1271   :  { %v4871_v23 = vpop.xlane.xlu0 %4870 }
0x1272   :  { %v4875_v14 = vmul.f32 0.03125, %v4871_v23  ;;  %v4882_v24 = vmul.f32 %v4878_v27, %v4878_v27 }
0x1274   :  { %v4879_v63 = vsub.f32 %v4855_v39, %v4875_v14  ;;  %v4890_v54 = vsel %vm241_vm2, %v4882_v24, 0.0  ;;  %v6543_v39 = vpack.c.bf16 %v5580_v44, %v5579_v41 }
0x1275   :  { %4891 = vadd.xlane.f32.xlu0 %v4890_v54 }
0x1276   :  { %v4883_v57 = vmul.f32 %v4879_v63, %v4879_v63  ;;  %6544 = vmatprep.subr.bf16.mxu0 %v6543_v39 }
0x1278   :  { %v4893_v56 = vsel %vm241_vm2, %v4883_v57, 0.0 }
0x1279   :  { %4894 = vadd.xlane.f32.xlu1 %v4893_v56 }
0x12fc   :  { %v4889_v40 = vpop.xlane.xlu1 %4888 }
0x12fd   :  { %v4897_v13 = vmul.f32 0.03125, %v4889_v40  ;;  %v4886_v8 = vpop.xlane.xlu0 %4885 }
0x12fe   :  { %v4896_v25 = vmul.f32 0.03125, %v4886_v8 }
0x12ff   :  { %v4901_v29 = vadd.f32 1e-05, %v4897_v13 }
0x1300   :  { %v4900_v31 = vadd.f32 1e-05, %v4896_v25 }
0x1301   :  { %6921 = vrsqrt.f32 %v4901_v29 }
0x1302   :  { %6923 = vrsqrt.f32 %v4900_v31  ;;  %v4892_v4 = vpop.xlane.xlu0 %4891 }
0x1303   :  { %v4898_v35 = vmul.f32 0.03125, %v4892_v4 }
0x1305   :  { %v4902_v49 = vadd.f32 1e-05, %v4898_v35 }
0x1306   :  { %v4895_v60 = vpop.xlane.xlu1 %4894 }
0x1307   :  { %6925 = vrsqrt.f32 %v4902_v49  ;;  %v4899_v48 = vmul.f32 0.03125, %v4895_v60 }
0x1309   :  { %v4903_v28 = vadd.f32 1e-05, %v4899_v48 }
0x130b   :  { %v6922_v9 = vpop.eup %6921  ;;  %6927 = vrsqrt.f32 %v4903_v28 }
0x130c   :  { %v6924_v26 = vpop.eup %6923  ;;  %v4909_v55 = vmul.f32 %v6922_v9, %v4877_v36  ;;  %v5585_v36 = vld [vmem:[%s8344_s13 + $0x70] sm:$0xff] }
0x130d   :  { %v4908_v45 = vmul.f32 %v6924_v26, %v4876_v51  ;;  %v5586_v51 = vld [vmem:[%s8344_s13 + $0x78] sm:$0xff] }
0x130e   :  { %v4919_v18 = vmul.f32 %v5559_v16, %v4909_v55  ;;  %v6555_v20 = vpack.c.bf16 %v5586_v51, %v5585_v36 }
0x130f   :  { %v4918_v7 = vmul.f32 %v5559_v16, %v4908_v45 }
0x1310   :  { %v4929_v47 = vadd.f32 %v5560_v6, %v4919_v18 }
0x1311   :  { %v6926_v1 = vpop.eup %6925  ;;  %v4928_v50 = vadd.f32 %v5560_v6, %v4918_v7 }
0x1312   :  { %v4910_v21 = vmul.f32 %v6926_v1, %v4878_v27 }
0x1313   :  { %6212 = vmatprep.mubr.msk.f32.mxu0 %vm241_vm2, %v4928_v50 }
0x1314   :  { %6213 = vmatmul.mubr.msk.f32.vlgmr.msra.gmra.mrb[58].mxu0 %vm241_vm2, %v4929_v47  ;;  %v4920_v15 = vmul.f32 %v5559_v16, %v4910_v21 }
0x1315   :  { %v6928_v46 = vpop.eup %6927  ;;  %6546 = vmatpush3.bf16.msra.mxu0 %v6543_v39 }
0x1316   :  { %v4930_v30 = vadd.f32 %v5560_v6, %v4920_v15  ;;  %v4911_v19 = vmul.f32 %v6928_v46, %v4879_v63  ;;  %6548 = vmatprep.subr.bf16.mxu0 %v6547_v52 }
0x1318   :  { %6215 = vmatprep.mubr.msk.f32.mxu0 %vm241_vm2, %v4930_v30  ;;  %v4921_v62 = vmul.f32 %v5559_v16, %v4911_v19 }
0x1319   :  { %6550 = vmatpush3.bf16.msra.mxu0 %v6547_v52 }
0x131a   :  { %v4931_v33 = vadd.f32 %v5560_v6, %v4921_v62  ;;  %6552 = vmatprep.subr.bf16.mxu0 %v6551_v0 }
0x131c   :  { %6216 = vmatmul.mubr.msk.f32.gmra.mrb[60].mxu0 %vm241_vm2, %v4931_v33 }
0x131d   :  { %6554 = vmatpush3.bf16.msra.mxu0 %v6551_v0 }
0x131e   :  { %6556 = vmatprep.subr.bf16.mxu0 %v6555_v20 }
0x1321   :  { %6558 = vmatpush3.bf16.msra.mxu0 %v6555_v20 }
0x13e7   :  { %v6214_v61 = vpop.f32.mrb[58].mxu0 }
0x13e8   :  { %v8261_v5 = vadd.f32 %v6214_v61, %v5566_v53  ;;  %v5023_v59 = vpop.f32.mrb[59].mxu0 }
0x13e9   :  { %v8263_v34 = vadd.f32 %v5566_v53, %v5023_v59 }
0x13ea   :  { %v8266_v27 = vmul.f32 0.70710677, %v8261_v5 }
0x13eb   :  { %v8269_v23 = vmul.f32 0.70710677, %v8263_v34 }
0x13ec   :  { %v5047_v14 = vand.u32 2147483647, %v8266_v27  ;;  %vm5135_vm12 = vcmp.lt.f32.partialorder %v8266_v27, 0.0 }
0x13ed   :  { %v5046_v24 = vand.u32 2147483647, %v8269_v23  ;;  %vm5134_vm13 = vcmp.lt.f32.partialorder %v8269_v23, 0.0 }
0x13ee   :  { %v5051_v63 = vmul.f32 0.3275911, %v5047_v14  ;;  %v5111_v60 = vsub.f32 0.0, %v5047_v14 }
0x13ef   :  { %v5050_v54 = vmul.f32 0.3275911, %v5046_v24  ;;  %v6217_v57 = vpop.f32.mrb[60].mxu0  ;;  %v5110_v9 = vsub.f32 0.0, %v5046_v24 }
0x13f0   :  { %v5055_v56 = vadd.f32 1.0, %v5051_v63  ;;  %v8273_v32 = vadd.f32 %v6217_v57, %v5566_v53  ;;  %v5033_v11 = vpop.f32.mrb[61].mxu0  ;;  %v5115_v55 = vmul.f32 %v5111_v60, %v5047_v14 }
0x13f1   :  { %v5054_v38 = vadd.f32 1.0, %v5050_v54  ;;  %v8275_v17 = vadd.f32 %v5566_v53, %v5033_v11  ;;  %v5114_v18 = vmul.f32 %v5110_v9, %v5046_v24 }
0x13f2   :  { %6929 = vrcp.f32 %v5055_v56  ;;  %v8278_v42 = vmul.f32 0.70710677, %v8273_v32  ;;  %v5120_v15 = vmul.f32 1.442695, %v5115_v55 }
0x13f3   :  { %6931 = vrcp.f32 %v5054_v38  ;;  %v8281_v22 = vmul.f32 0.70710677, %v8275_v17  ;;  %v5118_v33 = vmul.f32 1.442695, %v5114_v18 }
0x13f4   :  { %v5049_v40 = vand.u32 2147483647, %v8278_v42  ;;  %vm5137_vm14 = vcmp.lt.f32.partialorder %v8278_v42, 0.0  ;;  %v6973_v42 = vmov 0.0|0.0  }
0x13f5   :  { %v5048_v13 = vand.u32 2147483647, %v8281_v22  ;;  %vm5136_vm15 = vcmp.lt.f32.partialorder %v8281_v22, 0.0  ;;  %6559 = vmatprep.subr.bf16.mxu0 %v6973_v42  ;;  %v5273_v22 = vld [vmem:[%s8346_s15 + $0x8] sm:$0xff] }
0x13f6   :  { %v5053_v8 = vmul.f32 0.3275911, %v5049_v40  ;;  %v5113_v30 = vsub.f32 0.0, %v5049_v40 }
0x13f7   :  { %v5052_v25 = vmul.f32 0.3275911, %v5048_v13  ;;  %v5112_v44 = vsub.f32 0.0, %v5048_v13 }
0x13f8   :  { %v5057_v29 = vadd.f32 1.0, %v5053_v8  ;;  %v5117_v43 = vmul.f32 %v5113_v30, %v5049_v40 }
0x13f9   :  { %v5056_v31 = vadd.f32 1.0, %v5052_v25  ;;  %v5116_v20 = vmul.f32 %v5112_v44, %v5048_v13 }
0x13fa   :  { %6933 = vrcp.f32 %v5057_v29  ;;  %v5124_v63 = vmul.f32 1.442695, %v5117_v43 }
0x13fb   :  { %6935 = vrcp.f32 %v5056_v31  ;;  %v5122_v11 = vmul.f32 1.442695, %v5116_v20 }
0x13fc   :  { %v6930_v4 = vpop.eup %6929  ;;  %6937 = vpow2.f32 %v5120_v15 }
0x13fd   :  { %v6932_v35 = vpop.eup %6931  ;;  %v5063_v49 = vmul.f32 %v6930_v4, %v5055_v56  ;;  %6939 = vpow2.f32 %v5118_v33 }
0x13fe   :  { %v5062_v48 = vmul.f32 %v6932_v35, %v5054_v38  ;;  %6941 = vpow2.f32 %v5124_v63 }
0x13ff   :  { %v5067_v28 = vsub.f32 2.0, %v5063_v49  ;;  %6943 = vpow2.f32 %v5122_v11 }
0x1400   :  { %v5066_v16 = vsub.f32 2.0, %v5062_v48 }
0x1401   :  { %v5071_v26 = vmul.f32 %v6930_v4, %v5067_v28 }
0x1402   :  { %v5070_v45 = vmul.f32 %v6932_v35, %v5066_v16 }
0x1403   :  { %v5075_v6 = vmul.f32 1.0614054, %v5071_v26 }
0x1404   :  { %v6934_v7 = vpop.eup %6933  ;;  %v5074_v1 = vmul.f32 1.0614054, %v5070_v45 }
0x1405   :  { %v6936_v50 = vpop.eup %6935  ;;  %v5572_v47 = vadd.f32 -1.4531521, %v5075_v6  ;;  %v5065_v21 = vmul.f32 %v6934_v7, %v5057_v29 }
0x1406   :  { %v5571_v46 = vadd.f32 -1.4531521, %v5074_v1  ;;  %v5064_v19 = vmul.f32 %v6936_v50, %v5056_v31  ;;  %v6938_v13 = vpop.eup %6937 }
0x1407   :  { %v5083_v62 = vmul.f32 %v5572_v47, %v5071_v26  ;;  %v5069_v41 = vsub.f32 2.0, %v5065_v21  ;;  %v6940_v48 = vpop.eup %6939 }
0x1408   :  { %v5082_v39 = vmul.f32 %v5571_v46, %v5070_v45  ;;  %v5068_v3 = vsub.f32 2.0, %v5064_v19  ;;  %v6942_v46 = vpop.eup %6941 }
0x1409   :  { %v5087_v12 = vadd.f32 1.4214138, %v5083_v62  ;;  %v5073_v52 = vmul.f32 %v6934_v7, %v5069_v41  ;;  %v6944_v33 = vpop.eup %6943  ;;  %v5146_v41 = vmul.f32 0.5, %v8263_v34 }
0x140a   :  { %v5086_v37 = vadd.f32 1.4214138, %v5082_v39  ;;  %v5072_v0 = vmul.f32 %v6936_v50, %v5068_v3  ;;  %v5147_v3 = vmul.f32 0.5, %v8261_v5  ;;  %v5148_v5 = vmul.f32 0.5, %v8275_v17 }
0x140b   :  { %v5091_v36 = vmul.f32 %v5087_v12, %v5071_v26  ;;  %v5077_v51 = vmul.f32 1.0614054, %v5073_v52 }
0x140c   :  { %v5090_v53 = vmul.f32 %v5086_v37, %v5070_v45  ;;  %v5076_v61 = vmul.f32 1.0614054, %v5072_v0 }
0x140d   :  { %v5576_v59 = vadd.f32 -0.28449672, %v5091_v36  ;;  %v5574_v14 = vadd.f32 -1.4531521, %v5077_v51 }
0x140e   :  { %v5575_v24 = vadd.f32 -0.28449672, %v5090_v53  ;;  %v5573_v54 = vadd.f32 -1.4531521, %v5076_v61  ;;  %v5149_v53 = vmul.f32 0.5, %v8273_v32  ;;  %v5274_v32 = vld [vmem:[%s8346_s15 + $0x10] sm:$0xff] }
0x140f   :  { %v5099_v57 = vmul.f32 %v5576_v59, %v5071_v26  ;;  %v5085_v56 = vmul.f32 %v5574_v14, %v5073_v52  ;;  %v5272_v14 = vld [vmem:[%s8346_s15] sm:$0xff] }
0x1410   :  { %v5098_v38 = vmul.f32 %v5575_v24, %v5070_v45  ;;  %v5084_v8 = vmul.f32 %v5573_v54, %v5072_v0  ;;  %v6560_v17 = vpack.c.bf16 %v5273_v22, %v5272_v14  ;;  %v5275_v24 = vld [vmem:[%s8346_s15 + $0x18] sm:$0xff]  ;;  %s6975_s15 = smov 8  }
0x1411   :  { %v5103_v25 = vadd.f32 0.2548296, %v5099_v57  ;;  %v5089_v29 = vadd.f32 1.4214138, %v5085_v56  ;;  %v6563_v63 = vpack.c.bf16 %v5275_v24, %v5274_v32  ;;  %v5588_v56 = vld [vmem:[%s8345_s14 + $0x1] ss:$0 sm:$0xff] }
0x1412   :  { %v5102_v40 = vadd.f32 0.2548296, %v5098_v38  ;;  %v5088_v31 = vadd.f32 1.4214138, %v5084_v8  ;;  %s6976_s14 = smov [#allocation2]  }
0x1413   :  { %v5107_v4 = vmul.f32 %v5103_v25, %v5071_v26  ;;  %v5093_v35 = vmul.f32 %v5089_v29, %v5073_v52  ;;  %s5374_s24 = sshll.u32 %s6976_s14, 4  ;;  %s5375_s24 = int_to_ptr.vmem [resolvable:$true] %s5374_s24 }
0x1414   :  { %v5106_v49 = vmul.f32 %v5102_v40, %v5070_v45  ;;  %v5092_v60 = vmul.f32 %v5088_v31, %v5072_v0  ;;  %s6945_s25 = scalar_lea.vmem %s5375_s24, 32  ;;  %p6950_p1 = scmp.lt.s32.totalorder %s5375_s24, %s5375_s24 }
0x1415   :  { %v5127_v28 = vmul.f32 %v6938_v13, %v5107_v4  ;;  %v5578_v9 = vadd.f32 -0.28449672, %v5093_v35  ;;  %p6946_p0 = scmp.ne.s32.totalorder %s5375_s24, %s6945_s25  ;;  %p6951_p2 = scmp.lt.s32.totalorder %s6945_s25, %s6945_s25 }
0x1416   :  { %v5126_v16 = vmul.f32 %v6940_v48, %v5106_v49  ;;  %v5577_v55 = vadd.f32 -0.28449672, %v5092_v60 }
0x1417   :  { %v5131_v6 = vsub.f32 1.0, %v5127_v28  ;;  %v5101_v18 = vmul.f32 %v5578_v9, %v5073_v52  ;;  %p6952_p3 = por %p6951_p2, %p6950_p1 }
0x1418   :  { %v5130_v7 = vsub.f32 1.0, %v5126_v16  ;;  %v5100_v1 = vmul.f32 %v5577_v55, %v5072_v0 }
0x1419   :  { %v5139_v50 = vsub.f32 0.0, %v5131_v6  ;;  %v5105_v47 = vadd.f32 0.2548296, %v5101_v18  ;;  %p6953_p4 = pnand %p6952_p3, %p6946_p0 }
0x141a   :  { %v5138_v21 = vsub.f32 0.0, %v5130_v7  ;;  %v5104_v26 = vadd.f32 0.2548296, %v5100_v1 }
0x141b   :  { %v5143_v15 = vsel %vm5135_vm12, %v5139_v50, %v5131_v6  ;;  %v5109_v45 = vmul.f32 %v5105_v47, %v5073_v52 }
0x141c   :  { %v5151_v30 = vadd.f32 1.0, %v5143_v15  ;;  %v5142_v19 = vsel %vm5134_vm13, %v5138_v21, %v5130_v7  ;;  %v5108_v62 = vmul.f32 %v5104_v26, %v5072_v0 }
0x141d   :  { %v5150_v44 = vadd.f32 1.0, %v5142_v19  ;;  %v5129_v39 = vmul.f32 %v6942_v46, %v5109_v45 }
0x141e   :  { %v5128_v12 = vmul.f32 %v6944_v33, %v5108_v62  ;;  %v5155_v43 = vmul.f32 %v5151_v30, %v5147_v3 }
0x141f   :  { %v5154_v37 = vmul.f32 %v5150_v44, %v5146_v41  ;;  %v5133_v27 = vsub.f32 1.0, %v5129_v39 }
0x1420   :  { %v5132_v36 = vsub.f32 1.0, %v5128_v12 }
0x1421   :  { %v5141_v51 = vsub.f32 0.0, %v5133_v27  ;;  %6234 = vmatprep.mubr.msk.f32.mxu0 %vm2215_vm6, %v5154_v37 }
0x1422   :  { %v5140_v23 = vsub.f32 0.0, %v5132_v36  ;;  %6235 = vmatmul.mubr.msk.f32.vlgmr.msra.gmra.mrb[62].mxu0 %vm2215_vm6, %v5155_v43 }
0x1423   :  { %v5145_v52 = vsel %vm5137_vm14, %v5141_v51, %v5133_v27  ;;  %6561 = vmatpush3.bf16.msra.mxu0 %v6560_v17 }
0x1424   :  { %v5153_v34 = vadd.f32 1.0, %v5145_v52  ;;  %v5144_v0 = vsel %vm5136_vm15, %v5140_v23, %v5132_v36  ;;  %6562 = vmatprep.subr.bf16.mxu0 %v6973_v42 }
0x1425   :  { %v5152_v20 = vadd.f32 1.0, %v5144_v0 }
0x1426   :  { %v5157_v59 = vmul.f32 %v5153_v34, %v5149_v53 }
0x1427   :  { %v5156_v61 = vmul.f32 %v5152_v20, %v5148_v5  ;;  %6564 = vmatpush3.bf16.msra.mxu0 %v6563_v63 }
0x1429   :  { %6237 = vmatprep.mubr.msk.f32.mxu0 %vm2215_vm6, %v5156_v61 }
0x142a   :  { %6238 = vmatmul.mubr.msk.f32.gmra.mrb[64].mxu0 %vm2215_vm6, %v5157_v59 }
0x142b   :  { %6248 = vmatprep.mubr.msk.f32.mxu0 %vm6974_vm0, %v6969_v58  ;;  %v5593_v58 = vld [vmem:[%s8347_s16] ss:$0 sm:$0xff] }
0x14f5   :  { %v6236_v54 = vpop.f32.mrb[62].mxu0 }
0x14f6   :  { %v5253_v57 = vpop.f32.mrb[63].mxu0 }
0x14f7   :  { %v5254_v8 = vadd.f32 %v5588_v56, %v5253_v57 }
0x14f9   :  { %v5270_v40 = vadd.f32 %v5254_v8, %v8194_v2 }
0x14fd   :  { %v6239_v11 = vpop.f32.mrb[64].mxu0 }
0x14fe   :  { %v5262_v38 = vpop.f32.mrb[65].mxu0 }
0x14ff   :  { %v5263_v25 = vadd.f32 %v5588_v56, %v5262_v38 }
0x1501   :  { %v5271_v29 = vadd.f32 %v5263_v25, %v8201_v10 }
0x1503   :  { %v5285_v31 = vrot.slane %v5271_v29, 7 }
0x1505   :  { %v5287_v4 = vsel %vm5286_vm1, %v5285_v31, %v5270_v40 }
0x1506   :  { %5360 = vrot.lane.b32.xlu0 %v5287_v4, %s6975_s15  ;;  %6249 = vmatmul.mubr.msk.f32.vlgmr.msra.gmra.mrb[66].mxu0 %vm241_vm2, %v5287_v4 }
0x1578   :  { %v5361_v10 = vpop.permute.xlu0 %5360 }
0x15d9   :  { %v5356_v35 = vpop.f32.mrb[66].mxu0 }
0x15da   :  { %v5357_v13 = vadd.f32 %v5593_v58, %v5356_v35  ;;  %v6250_v49 = vpop.f32.mrb[67].mxu0 }
0x15dc   :  { %v5364_v60 = vsel %vm5363_vm3, %v5357_v13, %v5361_v10 }
0x15dd   :  { %v5366_v2 = vsel %vm5365_vm4, %v5364_v60, 0.0 }
0x15de   :  { %5367 = vst [vmem:[#allocation2] sm:$0x3] %v5366_v2 }
0x15df   :  { %6956 = shalt.err (!%p6953_p4)
}
0x15e0   :  { %s6957_s2 = scalar_lea.hbm %s8348_s17, 32 }
0x15e1   :  { %p6958_p5 = scmp.ne.s32.totalorder %s8348_s17, %s6957_s2  ;;  %p6961_p6 = scmp.lt.u32.totalorder %s6957_s2, %s8348_s17 }
0x15e3   :  { %p6963_p7 = pnand %p6961_p6, %p6958_p5 }
0x15e5   :  { %6966 = shalt.err (!%p6963_p7)
}
0x15e6   :  { %5377 = dma.vmem_to_hbm [thread:$0]  %s5375_s24, 32, %s8348_s17, [#allocation3]  }
0x15e7   :  { %6967 = dma.done.wait [#allocation3], 32  }
0x15e8   :  { %6968 = vsyncadd [#allocation3], 4294967264 }
0x15e9   :  { %5381 = vsyncpa [#allocation3], 1 }

</bundles_post_ra>
